<compile_context>
chip_gen: v5e
topology: v5e:2x2
jax: 0.10.0
libtpu: 0.0.40
codegen_flags: <defaults>
</compile_context>

<pallas_src>
import jax
import jax.numpy as jnp
from jax import lax
from jax.experimental import pallas as pl
from jax.experimental.pallas import tpu as pltpu


def _ge1_kernel(xpad_ref, w1_ref, b1_ref, m_ref, bf_ref, o_ref, y1pad_ref):
    # xpad_ref block: (B, H+2, W+2, C) pre-padded input, float32.
    B, Hp, Wp, C = xpad_ref.shape
    H, W = Hp - 2, Wp - 2
    OUT = m_ref.shape[1]
    M = B * H * W

    # Keep the 1-pixel zero border of the stage-1 padded scratch valid.  Only
    # four thin strips are written; the interior is fully overwritten below.
    # Re-zeroing every step keeps this correct even if the batch grid axis is
    # sharded across TensorCores (scratch is per-core and uninitialized).
    zrow = jnp.zeros((B, 1, Wp, C), jnp.float32)
    zcol = jnp.zeros((B, Hp, 1, C), jnp.float32)
    y1pad_ref[:, 0:1, :, :] = zrow
    y1pad_ref[:, Hp - 1:Hp, :, :] = zrow
    y1pad_ref[:, :, 0:1, :] = zcol
    y1pad_ref[:, :, Wp - 1:Wp, :] = zcol

    def im2col(src_ref):
        # Build an (M, 9*C) slab; column k*C + c holds src[b, h+dy, w+dx, c]
        # with k = 3*dy + dx.  One wide K=9C matmul replaces nine K=C matmuls
        # (better MXU occupancy for the small channel counts of this block).
        views = []
        for dy in range(3):
            for dx in range(3):
                views.append(
                    src_ref[:, dy:dy + H, dx:dx + W, :].reshape(M, C))
        return jnp.concatenate(views, axis=1)

    # ---- stage 1: 3x3 conv (BN1 scale pre-folded into w1) + bias + ReLU ----
    y1 = jnp.dot(im2col(xpad_ref), w1_ref[...],
                 preferred_element_type=jnp.float32) + b1_ref[...]
    y1 = jnp.maximum(y1, 0.0)
    y1pad_ref[:, 1:H + 1, 1:W + 1, :] = y1.reshape(B, H, W, C)

    # ---- stages 2+3: depthwise 3x3 + BN2 + 1x1 conv + BN3, collapsed ----
    # ---- host-side into one (9*C, OUT) matmul + bias                 ----
    y3 = jnp.dot(im2col(y1pad_ref), m_ref[...],
                 preferred_element_type=jnp.float32) + bf_ref[...]

    # ---- residual add + ReLU (x interior read straight from the padded VMEM tile) ----
    x_in = xpad_ref[:, 1:H + 1, 1:W + 1, :].reshape(M, C)
    out = jnp.maximum(y3 + x_in, 0.0)                       # (M, OUT)

    # ---- lane-dense store: pack (B, H, W, OUT) -> (B, H, W*OUT) ----
    out4 = out.reshape(B, H, W, OUT)
    o_ref[...] = jnp.concatenate([out4[:, :, w, :] for w in range(W)], axis=-1)


def gather_and_expansion_layer1(x_nhwc, params, batch_block=1):
    """x_nhwc: (N, H, W, C) float32. Returns (N, H, W, C) float32."""
    N, H, W, C = x_nhwc.shape
    w1f, b1 = params["w1f"], params["b1"]
    mw, bf = params["mw"], params["bf"]
    OUT = mw.shape[1]
    assert OUT == C, "residual add requires out_dim == in_dim"
    assert N % batch_block == 0, "batch_block must divide N"
    B = batch_block
    Hp, Wp = H + 2, W + 2

    # Pre-pad once in XLA; the kernel DMAs the padded tile directly.
    xp = jnp.pad(x_nhwc, ((0, 0), (1, 1), (1, 1), (0, 0)))

    def full_spec(a):
        z = (0,) * a.ndim
        return pl.BlockSpec(a.shape, lambda n, z=z: z)

    # Advisory cost hint for XLA's scheduler around the custom call.
    flops = 2 * N * H * W * 9 * C * (C + OUT)
    bytes_accessed = 4 * (xp.size + N * H * W * OUT
                          + w1f.size + b1.size + mw.size + bf.size)

    out_flat = pl.pallas_call(
        _ge1_kernel,
        out_shape=jax.ShapeDtypeStruct((N, H, W * OUT), jnp.float32),
        grid_spec=pltpu.PrefetchScalarGridSpec(
            num_scalar_prefetch=0,
            grid=(N // B,),
            in_specs=[
                pl.BlockSpec((B, Hp, Wp, C), lambda n: (n, 0, 0, 0)),
                full_spec(w1f), full_spec(b1), full_spec(mw), full_spec(bf),
            ],
            out_specs=pl.BlockSpec((B, H, W * OUT), lambda n: (n, 0, 0)),
            scratch_shapes=[
                pltpu.VMEM((B, Hp, Wp, C), jnp.float32),   # zero-bordered stage-1 output
            ],
        ),
        compiler_params=pltpu.CompilerParams(
            dimension_semantics=("parallel",)),
        cost_estimate=pl.CostEstimate(flops=flops, transcendentals=0,
                                      bytes_accessed=bytes_accessed),
    )(xp, w1f, b1, mw, bf)

    # Kernel writes lane-dense (N, H, W*OUT); restore NHWC outside.
    return out_flat.reshape(N, H, W, OUT)


def make_params(key, in_dim, out_dim, expand):
    """Deterministic synthetic params; BN folded (eval mode) and the whole
    DW+BN+1x1+BN stack collapsed host-side into a single matmul weight + bias."""
    E = expand
    cexp = E * in_dim
    eps = 1e-5
    keys = jax.random.split(key, 15)

    def bn_fold(kg, kb, km, kv, dim):
        gamma = jax.random.uniform(kg, (dim,), jnp.float32, 0.5, 1.5)
        beta = 0.1 * jax.random.normal(kb, (dim,), jnp.float32)
        mean = 0.1 * jax.random.normal(km, (dim,), jnp.float32)
        var = jax.random.uniform(kv, (dim,), jnp.float32, 0.5, 1.5)
        scale = gamma / jnp.sqrt(var + eps)
        bias = beta - mean * scale
        return scale, bias

    # Conv 3x3 (in->in). PyTorch OIHW -> HWIO.
    w1_pt = 0.2 * jax.random.normal(keys[0], (in_dim, in_dim, 3, 3), jnp.float32)
    w1_hwio = jnp.transpose(w1_pt, (2, 3, 1, 0))                  # (3,3,Ci,Co)
    s1, b1 = bn_fold(keys[1], keys[2], keys[3], keys[4], in_dim)

    # Depthwise 3x3 (in -> E*in), groups=in. PyTorch (E*in,1,3,3); out chan j uses in chan j//E.
    wdw_pt = 0.2 * jax.random.normal(keys[5], (cexp, 1, 3, 3), jnp.float32)
    wdw_hwio = jnp.transpose(wdw_pt, (2, 3, 1, 0))                # (3,3,1,E*in)
    s2, b2 = bn_fold(keys[6], keys[7], keys[8], keys[9], cexp)

    # 1x1 conv (E*in -> out). PyTorch (out, E*in, 1, 1) -> HWIO.
    w3_pt = 0.2 * jax.random.normal(keys[10], (out_dim, cexp, 1, 1), jnp.float32)
    w3_hwio = jnp.transpose(w3_pt, (2, 3, 1, 0))                  # (1,1,E*in,out)
    s3, b3 = bn_fold(keys[11], keys[12], keys[13], keys[14], out_dim)

    # ---------------- host-side algebraic folding for the kernel ----------------
    # Stage 1: fold BN1 scale into the conv weight -> (9*Ci, Co); keep BN1 bias.
    w1f = (w1_hwio * s1[None, None, None, :]).reshape(9 * in_dim, in_dim)
    b1k = b1.reshape(1, in_dim)

    # Stages 2+3: M[k,c,o] = s3[o] * sum_e wdw[e,k,c] * s2[e,c] * w3[e,c,o]
    #             bias     = b3 + s3 * sum_{e,c} b2[e,c] * w3[e,c,o]
    wdw_e = jnp.transpose(wdw_hwio.reshape(9, in_dim, E), (2, 0, 1))              # (E,9,C)
    s2_e = jnp.transpose(s2.reshape(in_dim, E), (1, 0))                           # (E,C)
    b2_e = jnp.transpose(b2.reshape(in_dim, E), (1, 0))                           # (E,C)
    w3_e = jnp.transpose(w3_hwio[0, 0].reshape(in_dim, E, out_dim), (1, 0, 2))    # (E,C,OUT)
    mw = jnp.einsum("ekc,ec,eco,o->kco", wdw_e, s2_e, w3_e, s3)
    mw = mw.reshape(9 * in_dim, out_dim)                                          # (9*C, OUT)
    bf = (b3 + s3 * jnp.einsum("ec,eco->o", b2_e, w3_e)).reshape(1, out_dim)

    params = dict(w1f=w1f, b1=b1k, mw=mw, bf=bf)
    ref_params = dict(w1=w1_hwio, s1=s1, b1=b1, wdw=wdw_hwio, s2=s2, b2=b2,
                      w3=w3_hwio, s3=s3, b3=b3)
    return params, ref_params


def ref_forward(x_nhwc, p, in_dim):
    """Pure-JAX reference (lax convolutions), NHWC."""
    dn = ("NHWC", "HWIO", "NHWC")
    hp = lax.Precision.HIGHEST
    y = lax.conv_general_dilated(x_nhwc, p["w1"], (1, 1), "SAME",
                                 dimension_numbers=dn, precision=hp)
    y = jnp.maximum(y * p["s1"] + p["b1"], 0.0)
    y = lax.conv_general_dilated(y, p["wdw"], (1, 1), "SAME",
                                 dimension_numbers=dn,
                                 feature_group_count=in_dim, precision=hp)
    y = y * p["s2"] + p["b2"]
    y = lax.conv_general_dilated(y, p["w3"], (1, 1), "SAME",
                                 dimension_numbers=dn, precision=hp)
    y = y * p["s3"] + p["b3"]
    return jnp.maximum(y + x_nhwc, 0.0)


if __name__ == "__main__":
    in_dim = out_dim = 8
    expand = 6
    N, H, W = 2, 16, 16

    key = jax.random.PRNGKey(0)
    kx, kp = jax.random.split(key)
    # PyTorch-style NCHW input, then transpose to the kernel's NHWC layout.
    x_nchw = jax.random.normal(kx, (N, in_dim, H, W), jnp.float32)
    x = jnp.transpose(x_nchw, (0, 2, 3, 1))

    params, ref_params = make_params(kp, in_dim, out_dim, expand)

    out = gather_and_expansion_layer1(x, params, batch_block=1)
    out = jax.block_until_ready(out)

    ref = ref_forward(x, ref_params, in_dim)
    max_diff = float(jnp.max(jnp.abs(out - ref)))
    if not jnp.allclose(out, ref, rtol=2e-3, atol=2e-3):
        raise AssertionError(f"mismatch vs reference, max abs diff = {max_diff}")
    print("KERNEL_OK")
</pallas_src>

<mosaic_0001>
module attributes {stable_mosaic.version = 11 : i64} {
  func.func @_ge1_kernel(%arg0: i32, %arg1: memref<1x18x18x8xf32, #tpu.memory_space<vmem>>, %arg2: memref<72x8xf32, #tpu.memory_space<vmem>>, %arg3: memref<1x8xf32, #tpu.memory_space<vmem>>, %arg4: memref<72x8xf32, #tpu.memory_space<vmem>>, %arg5: memref<1x8xf32, #tpu.memory_space<vmem>>, %arg6: memref<1x16x128xf32, #tpu.memory_space<vmem>>, %arg7: memref<1x18x18x8xf32, #tpu.memory_space<vmem>>) attributes {dimension_semantics = [#tpu.dimension_semantics<parallel>], iteration_bounds = array<i64: 2>, scalar_prefetch = 0 : i64, scratch_operands = 1 : i64, tpu.core_type = #tpu.core_type<tc>, window_params = [{transform_indices = @transform_0, window_bounds = array<i64: 1, 18, 18, 8>}, {pipeline_mode = #tpu.pipeline_mode<synchronous>, transform_indices = @transform_1, window_bounds = array<i64: 72, 8>}, {pipeline_mode = #tpu.pipeline_mode<synchronous>, transform_indices = @transform_2, window_bounds = array<i64: 1, 8>}, {pipeline_mode = #tpu.pipeline_mode<synchronous>, transform_indices = @transform_3, window_bounds = array<i64: 72, 8>}, {pipeline_mode = #tpu.pipeline_mode<synchronous>, transform_indices = @transform_4, window_bounds = array<i64: 1, 8>}, {transform_indices = @transform_5, window_bounds = array<i64: 1, 16, 128>}]} {
    %cst = arith.constant 0.000000e+00 : f32
    %0 = vector.broadcast %cst : f32 to vector<1x1x18x8xf32>
    %cst_0 = arith.constant 0.000000e+00 : f32
    %1 = vector.broadcast %cst_0 : f32 to vector<1x18x1x8xf32>
    %c0 = arith.constant 0 : index
    %c0_1 = arith.constant 0 : index
    %c0_2 = arith.constant 0 : index
    %c0_3 = arith.constant 0 : index
    %2 = vector.load %arg7[%c0, %c0_1, %c0_2, %c0_3] : memref<1x18x18x8xf32, #tpu.memory_space<vmem>>, vector<1x1x18x8xf32>
    tpu.vector_store %arg7[%c0, %c0_1, %c0_2, %c0_3], %0 {strides = array<i32>} : memref<1x18x18x8xf32, #tpu.memory_space<vmem>>, vector<1x1x18x8xf32>,
    %c0_4 = arith.constant 0 : index
    %c17 = arith.constant 17 : index
    %c0_5 = arith.constant 0 : index
    %c0_6 = arith.constant 0 : index
    %3 = vector.load %arg7[%c0_4, %c17, %c0_5, %c0_6] : memref<1x18x18x8xf32, #tpu.memory_space<vmem>>, vector<1x1x18x8xf32>
    tpu.vector_store %arg7[%c0_4, %c17, %c0_5, %c0_6], %0 {strides = array<i32>} : memref<1x18x18x8xf32, #tpu.memory_space<vmem>>, vector<1x1x18x8xf32>,
    %c0_7 = arith.constant 0 : index
    %c0_8 = arith.constant 0 : index
    %c0_9 = arith.constant 0 : index
    %c0_10 = arith.constant 0 : index
    %4 = vector.load %arg7[%c0_7, %c0_8, %c0_9, %c0_10] : memref<1x18x18x8xf32, #tpu.memory_space<vmem>>, vector<1x18x1x8xf32>
    tpu.vector_store %arg7[%c0_7, %c0_8, %c0_9, %c0_10], %1 {strides = array<i32>} : memref<1x18x18x8xf32, #tpu.memory_space<vmem>>, vector<1x18x1x8xf32>,
    %c0_11 = arith.constant 0 : index
    %c0_12 = arith.constant 0 : index
    %c17_13 = arith.constant 17 : index
    %c0_14 = arith.constant 0 : index
    %5 = vector.load %arg7[%c0_11, %c0_12, %c17_13, %c0_14] : memref<1x18x18x8xf32, #tpu.memory_space<vmem>>, vector<1x18x1x8xf32>
    tpu.vector_store %arg7[%c0_11, %c0_12, %c17_13, %c0_14], %1 {strides = array<i32>} : memref<1x18x18x8xf32, #tpu.memory_space<vmem>>, vector<1x18x1x8xf32>,
    %c0_15 = arith.constant 0 : index
    %c0_16 = arith.constant 0 : index
    %c0_17 = arith.constant 0 : index
    %c0_18 = arith.constant 0 : index
    %6 = vector.load %arg1[%c0_15, %c0_16, %c0_17, %c0_18] : memref<1x18x18x8xf32, #tpu.memory_space<vmem>>, vector<1x16x16x8xf32>
    %7 = vector.shape_cast %6 : vector<1x16x16x8xf32> to vector<256x8xf32>
    %c0_19 = arith.constant 0 : index
    %c0_20 = arith.constant 0 : index
    %c1 = arith.constant 1 : index
    %c0_21 = arith.constant 0 : index
    %8 = vector.load %arg1[%c0_19, %c0_20, %c1, %c0_21] : memref<1x18x18x8xf32, #tpu.memory_space<vmem>>, vector<1x16x16x8xf32>
    %9 = vector.shape_cast %8 : vector<1x16x16x8xf32> to vector<256x8xf32>
    %c0_22 = arith.constant 0 : index
    %c0_23 = arith.constant 0 : index
    %c2 = arith.constant 2 : index
    %c0_24 = arith.constant 0 : index
    %10 = vector.load %arg1[%c0_22, %c0_23, %c2, %c0_24] : memref<1x18x18x8xf32, #tpu.memory_space<vmem>>, vector<1x16x16x8xf32>
    %11 = vector.shape_cast %10 : vector<1x16x16x8xf32> to vector<256x8xf32>
    %c0_25 = arith.constant 0 : index
    %c1_26 = arith.constant 1 : index
    %c0_27 = arith.constant 0 : index
    %c0_28 = arith.constant 0 : index
    %12 = vector.load %arg1[%c0_25, %c1_26, %c0_27, %c0_28] : memref<1x18x18x8xf32, #tpu.memory_space<vmem>>, vector<1x16x16x8xf32>
    %13 = vector.shape_cast %12 : vector<1x16x16x8xf32> to vector<256x8xf32>
    %c0_29 = arith.constant 0 : index
    %c1_30 = arith.constant 1 : index
    %c1_31 = arith.constant 1 : index
    %c0_32 = arith.constant 0 : index
    %14 = vector.load %arg1[%c0_29, %c1_30, %c1_31, %c0_32] : memref<1x18x18x8xf32, #tpu.memory_space<vmem>>, vector<1x16x16x8xf32>
    %15 = vector.shape_cast %14 : vector<1x16x16x8xf32> to vector<256x8xf32>
    %c0_33 = arith.constant 0 : index
    %c1_34 = arith.constant 1 : index
    %c2_35 = arith.constant 2 : index
    %c0_36 = arith.constant 0 : index
    %16 = vector.load %arg1[%c0_33, %c1_34, %c2_35, %c0_36] : memref<1x18x18x8xf32, #tpu.memory_space<vmem>>, vector<1x16x16x8xf32>
    %17 = vector.shape_cast %16 : vector<1x16x16x8xf32> to vector<256x8xf32>
    %c0_37 = arith.constant 0 : index
    %c2_38 = arith.constant 2 : index
    %c0_39 = arith.constant 0 : index
    %c0_40 = arith.constant 0 : index
    %18 = vector.load %arg1[%c0_37, %c2_38, %c0_39, %c0_40] : memref<1x18x18x8xf32, #tpu.memory_space<vmem>>, vector<1x16x16x8xf32>
    %19 = vector.shape_cast %18 : vector<1x16x16x8xf32> to vector<256x8xf32>
    %c0_41 = arith.constant 0 : index
    %c2_42 = arith.constant 2 : index
    %c1_43 = arith.constant 1 : index
    %c0_44 = arith.constant 0 : index
    %20 = vector.load %arg1[%c0_41, %c2_42, %c1_43, %c0_44] : memref<1x18x18x8xf32, #tpu.memory_space<vmem>>, vector<1x16x16x8xf32>
    %21 = vector.shape_cast %20 : vector<1x16x16x8xf32> to vector<256x8xf32>
    %c0_45 = arith.constant 0 : index
    %c2_46 = arith.constant 2 : index
    %c2_47 = arith.constant 2 : index
    %c0_48 = arith.constant 0 : index
    %22 = vector.load %arg1[%c0_45, %c2_46, %c2_47, %c0_48] : memref<1x18x18x8xf32, #tpu.memory_space<vmem>>, vector<1x16x16x8xf32>
    %23 = vector.shape_cast %22 : vector<1x16x16x8xf32> to vector<256x8xf32>
    %24 = tpu.concatenate %7, %9, %11, %13, %15, %17, %19, %21, %23 in 1 : vector<256x8xf32>, vector<256x8xf32>, vector<256x8xf32>, vector<256x8xf32>, vector<256x8xf32>, vector<256x8xf32>, vector<256x8xf32>, vector<256x8xf32>, vector<256x8xf32> -> vector<256x72xf32>
    %c0_49 = arith.constant 0 : index
    %c0_50 = arith.constant 0 : index
    %25 = vector.load %arg2[%c0_49, %c0_50] : memref<72x8xf32, #tpu.memory_space<vmem>>, vector<72x8xf32>
    %cst_51 = arith.constant dense<0.000000e+00> : vector<256x8xf32>
    %26 = tpu.matmul %24, %25, %cst_51 {dimension_numbers = #tpu.dot_dimension_numbers<[1], [0], [0], [1], [0, 0, 1, 1], [], []>} : vector<256x72xf32>, vector<72x8xf32>, vector<256x8xf32> -> vector<256x8xf32>
    %c0_52 = arith.constant 0 : index
    %c0_53 = arith.constant 0 : index
    %27 = vector.load %arg3[%c0_52, %c0_53] : memref<1x8xf32, #tpu.memory_space<vmem>>, vector<1x8xf32>
    %28 = vector.broadcast %27 : vector<1x8xf32> to vector<256x8xf32>
    %29 = arith.addf %26, %28 : vector<256x8xf32>
    %cst_54 = arith.constant 0.000000e+00 : f32
    %30 = vector.broadcast %cst_54 : f32 to vector<256x8xf32>
    %31 = arith.maximumf %29, %30 : vector<256x8xf32>
    %32 = vector.shape_cast %31 : vector<256x8xf32> to vector<1x16x16x8xf32>
    %c0_55 = arith.constant 0 : index
    %c1_56 = arith.constant 1 : index
    %c1_57 = arith.constant 1 : index
    %c0_58 = arith.constant 0 : index
    %33 = vector.load %arg7[%c0_55, %c1_56, %c1_57, %c0_58] : memref<1x18x18x8xf32, #tpu.memory_space<vmem>>, vector<1x16x16x8xf32>
    tpu.vector_store %arg7[%c0_55, %c1_56, %c1_57, %c0_58], %32 {strides = array<i32>} : memref<1x18x18x8xf32, #tpu.memory_space<vmem>>, vector<1x16x16x8xf32>,
    %c0_59 = arith.constant 0 : index
    %c0_60 = arith.constant 0 : index
    %c0_61 = arith.constant 0 : index
    %c0_62 = arith.constant 0 : index
    %34 = vector.load %arg7[%c0_59, %c0_60, %c0_61, %c0_62] : memref<1x18x18x8xf32, #tpu.memory_space<vmem>>, vector<1x16x16x8xf32>
    %35 = vector.shape_cast %34 : vector<1x16x16x8xf32> to vector<256x8xf32>
    %c0_63 = arith.constant 0 : index
    %c0_64 = arith.constant 0 : index
    %c1_65 = arith.constant 1 : index
    %c0_66 = arith.constant 0 : index
    %36 = vector.load %arg7[%c0_63, %c0_64, %c1_65, %c0_66] : memref<1x18x18x8xf32, #tpu.memory_space<vmem>>, vector<1x16x16x8xf32>
    %37 = vector.shape_cast %36 : vector<1x16x16x8xf32> to vector<256x8xf32>
    %c0_67 = arith.constant 0 : index
    %c0_68 = arith.constant 0 : index
    %c2_69 = arith.constant 2 : index
    %c0_70 = arith.constant 0 : index
    %38 = vector.load %arg7[%c0_67, %c0_68, %c2_69, %c0_70] : memref<1x18x18x8xf32, #tpu.memory_space<vmem>>, vector<1x16x16x8xf32>
    %39 = vector.shape_cast %38 : vector<1x16x16x8xf32> to vector<256x8xf32>
    %c0_71 = arith.constant 0 : index
    %c1_72 = arith.constant 1 : index
    %c0_73 = arith.constant 0 : index
    %c0_74 = arith.constant 0 : index
    %40 = vector.load %arg7[%c0_71, %c1_72, %c0_73, %c0_74] : memref<1x18x18x8xf32, #tpu.memory_space<vmem>>, vector<1x16x16x8xf32>
    %41 = vector.shape_cast %40 : vector<1x16x16x8xf32> to vector<256x8xf32>
    %c0_75 = arith.constant 0 : index
    %c1_76 = arith.constant 1 : index
    %c1_77 = arith.constant 1 : index
    %c0_78 = arith.constant 0 : index
    %42 = vector.load %arg7[%c0_75, %c1_76, %c1_77, %c0_78] : memref<1x18x18x8xf32, #tpu.memory_space<vmem>>, vector<1x16x16x8xf32>
    %43 = vector.shape_cast %42 : vector<1x16x16x8xf32> to vector<256x8xf32>
    %c0_79 = arith.constant 0 : index
    %c1_80 = arith.constant 1 : index
    %c2_81 = arith.constant 2 : index
    %c0_82 = arith.constant 0 : index
    %44 = vector.load %arg7[%c0_79, %c1_80, %c2_81, %c0_82] : memref<1x18x18x8xf32, #tpu.memory_space<vmem>>, vector<1x16x16x8xf32>
    %45 = vector.shape_cast %44 : vector<1x16x16x8xf32> to vector<256x8xf32>
    %c0_83 = arith.constant 0 : index
    %c2_84 = arith.constant 2 : index
    %c0_85 = arith.constant 0 : index
    %c0_86 = arith.constant 0 : index
    %46 = vector.load %arg7[%c0_83, %c2_84, %c0_85, %c0_86] : memref<1x18x18x8xf32, #tpu.memory_space<vmem>>, vector<1x16x16x8xf32>
    %47 = vector.shape_cast %46 : vector<1x16x16x8xf32> to vector<256x8xf32>
    %c0_87 = arith.constant 0 : index
    %c2_88 = arith.constant 2 : index
    %c1_89 = arith.constant 1 : index
    %c0_90 = arith.constant 0 : index
    %48 = vector.load %arg7[%c0_87, %c2_88, %c1_89, %c0_90] : memref<1x18x18x8xf32, #tpu.memory_space<vmem>>, vector<1x16x16x8xf32>
    %49 = vector.shape_cast %48 : vector<1x16x16x8xf32> to vector<256x8xf32>
    %c0_91 = arith.constant 0 : index
    %c2_92 = arith.constant 2 : index
    %c2_93 = arith.constant 2 : index
    %c0_94 = arith.constant 0 : index
    %50 = vector.load %arg7[%c0_91, %c2_92, %c2_93, %c0_94] : memref<1x18x18x8xf32, #tpu.memory_space<vmem>>, vector<1x16x16x8xf32>
    %51 = vector.shape_cast %50 : vector<1x16x16x8xf32> to vector<256x8xf32>
    %52 = tpu.concatenate %35, %37, %39, %41, %43, %45, %47, %49, %51 in 1 : vector<256x8xf32>, vector<256x8xf32>, vector<256x8xf32>, vector<256x8xf32>, vector<256x8xf32>, vector<256x8xf32>, vector<256x8xf32>, vector<256x8xf32>, vector<256x8xf32> -> vector<256x72xf32>
    %c0_95 = arith.constant 0 : index
    %c0_96 = arith.constant 0 : index
    %53 = vector.load %arg4[%c0_95, %c0_96] : memref<72x8xf32, #tpu.memory_space<vmem>>, vector<72x8xf32>
    %cst_97 = arith.constant dense<0.000000e+00> : vector<256x8xf32>
    %54 = tpu.matmul %52, %53, %cst_97 {dimension_numbers = #tpu.dot_dimension_numbers<[1], [0], [0], [1], [0, 0, 1, 1], [], []>} : vector<256x72xf32>, vector<72x8xf32>, vector<256x8xf32> -> vector<256x8xf32>
    %c0_98 = arith.constant 0 : index
    %c0_99 = arith.constant 0 : index
    %55 = vector.load %arg5[%c0_98, %c0_99] : memref<1x8xf32, #tpu.memory_space<vmem>>, vector<1x8xf32>
    %56 = vector.broadcast %55 : vector<1x8xf32> to vector<256x8xf32>
    %57 = arith.addf %54, %56 : vector<256x8xf32>
    %c0_100 = arith.constant 0 : index
    %c1_101 = arith.constant 1 : index
    %c1_102 = arith.constant 1 : index
    %c0_103 = arith.constant 0 : index
    %58 = vector.load %arg1[%c0_100, %c1_101, %c1_102, %c0_103] : memref<1x18x18x8xf32, #tpu.memory_space<vmem>>, vector<1x16x16x8xf32>
    %59 = vector.shape_cast %58 : vector<1x16x16x8xf32> to vector<256x8xf32>
    %60 = arith.addf %57, %59 : vector<256x8xf32>
    %cst_104 = arith.constant 0.000000e+00 : f32
    %61 = vector.broadcast %cst_104 : f32 to vector<256x8xf32>
    %62 = arith.maximumf %60, %61 : vector<256x8xf32>
    %63 = vector.shape_cast %62 : vector<256x8xf32> to vector<1x16x16x8xf32>
    %64 = vector.extract_strided_slice %63 {offsets = [0, 0, 0, 0], sizes = [1, 16, 1, 8], strides = [1, 1, 1, 1]} : vector<1x16x16x8xf32> to vector<1x16x1x8xf32>
    %65 = vector.shape_cast %64 : vector<1x16x1x8xf32> to vector<1x16x8xf32>
    %66 = vector.extract_strided_slice %63 {offsets = [0, 0, 1, 0], sizes = [1, 16, 1, 8], strides = [1, 1, 1, 1]} : vector<1x16x16x8xf32> to vector<1x16x1x8xf32>
    %67 = vector.shape_cast %66 : vector<1x16x1x8xf32> to vector<1x16x8xf32>
    %68 = vector.extract_strided_slice %63 {offsets = [0, 0, 2, 0], sizes = [1, 16, 1, 8], strides = [1, 1, 1, 1]} : vector<1x16x16x8xf32> to vector<1x16x1x8xf32>
    %69 = vector.shape_cast %68 : vector<1x16x1x8xf32> to vector<1x16x8xf32>
    %70 = vector.extract_strided_slice %63 {offsets = [0, 0, 3, 0], sizes = [1, 16, 1, 8], strides = [1, 1, 1, 1]} : vector<1x16x16x8xf32> to vector<1x16x1x8xf32>
    %71 = vector.shape_cast %70 : vector<1x16x1x8xf32> to vector<1x16x8xf32>
    %72 = vector.extract_strided_slice %63 {offsets = [0, 0, 4, 0], sizes = [1, 16, 1, 8], strides = [1, 1, 1, 1]} : vector<1x16x16x8xf32> to vector<1x16x1x8xf32>
    %73 = vector.shape_cast %72 : vector<1x16x1x8xf32> to vector<1x16x8xf32>
    %74 = vector.extract_strided_slice %63 {offsets = [0, 0, 5, 0], sizes = [1, 16, 1, 8], strides = [1, 1, 1, 1]} : vector<1x16x16x8xf32> to vector<1x16x1x8xf32>
    %75 = vector.shape_cast %74 : vector<1x16x1x8xf32> to vector<1x16x8xf32>
    %76 = vector.extract_strided_slice %63 {offsets = [0, 0, 6, 0], sizes = [1, 16, 1, 8], strides = [1, 1, 1, 1]} : vector<1x16x16x8xf32> to vector<1x16x1x8xf32>
    %77 = vector.shape_cast %76 : vector<1x16x1x8xf32> to vector<1x16x8xf32>
    %78 = vector.extract_strided_slice %63 {offsets = [0, 0, 7, 0], sizes = [1, 16, 1, 8], strides = [1, 1, 1, 1]} : vector<1x16x16x8xf32> to vector<1x16x1x8xf32>
    %79 = vector.shape_cast %78 : vector<1x16x1x8xf32> to vector<1x16x8xf32>
    %80 = vector.extract_strided_slice %63 {offsets = [0, 0, 8, 0], sizes = [1, 16, 1, 8], strides = [1, 1, 1, 1]} : vector<1x16x16x8xf32> to vector<1x16x1x8xf32>
    %81 = vector.shape_cast %80 : vector<1x16x1x8xf32> to vector<1x16x8xf32>
    %82 = vector.extract_strided_slice %63 {offsets = [0, 0, 9, 0], sizes = [1, 16, 1, 8], strides = [1, 1, 1, 1]} : vector<1x16x16x8xf32> to vector<1x16x1x8xf32>
    %83 = vector.shape_cast %82 : vector<1x16x1x8xf32> to vector<1x16x8xf32>
    %84 = vector.extract_strided_slice %63 {offsets = [0, 0, 10, 0], sizes = [1, 16, 1, 8], strides = [1, 1, 1, 1]} : vector<1x16x16x8xf32> to vector<1x16x1x8xf32>
    %85 = vector.shape_cast %84 : vector<1x16x1x8xf32> to vector<1x16x8xf32>
    %86 = vector.extract_strided_slice %63 {offsets = [0, 0, 11, 0], sizes = [1, 16, 1, 8], strides = [1, 1, 1, 1]} : vector<1x16x16x8xf32> to vector<1x16x1x8xf32>
    %87 = vector.shape_cast %86 : vector<1x16x1x8xf32> to vector<1x16x8xf32>
    %88 = vector.extract_strided_slice %63 {offsets = [0, 0, 12, 0], sizes = [1, 16, 1, 8], strides = [1, 1, 1, 1]} : vector<1x16x16x8xf32> to vector<1x16x1x8xf32>
    %89 = vector.shape_cast %88 : vector<1x16x1x8xf32> to vector<1x16x8xf32>
    %90 = vector.extract_strided_slice %63 {offsets = [0, 0, 13, 0], sizes = [1, 16, 1, 8], strides = [1, 1, 1, 1]} : vector<1x16x16x8xf32> to vector<1x16x1x8xf32>
    %91 = vector.shape_cast %90 : vector<1x16x1x8xf32> to vector<1x16x8xf32>
    %92 = vector.extract_strided_slice %63 {offsets = [0, 0, 14, 0], sizes = [1, 16, 1, 8], strides = [1, 1, 1, 1]} : vector<1x16x16x8xf32> to vector<1x16x1x8xf32>
    %93 = vector.shape_cast %92 : vector<1x16x1x8xf32> to vector<1x16x8xf32>
    %94 = vector.extract_strided_slice %63 {offsets = [0, 0, 15, 0], sizes = [1, 16, 1, 8], strides = [1, 1, 1, 1]} : vector<1x16x16x8xf32> to vector<1x16x1x8xf32>
    %95 = vector.shape_cast %94 : vector<1x16x1x8xf32> to vector<1x16x8xf32>
    %96 = tpu.concatenate %65, %67, %69, %71, %73, %75, %77, %79, %81, %83, %85, %87, %89, %91, %93, %95 in 2 : vector<1x16x8xf32>, vector<1x16x8xf32>, vector<1x16x8xf32>, vector<1x16x8xf32>, vector<1x16x8xf32>, vector<1x16x8xf32>, vector<1x16x8xf32>, vector<1x16x8xf32>, vector<1x16x8xf32>, vector<1x16x8xf32>, vector<1x16x8xf32>, vector<1x16x8xf32>, vector<1x16x8xf32>, vector<1x16x8xf32>, vector<1x16x8xf32>, vector<1x16x8xf32> -> vector<1x16x128xf32>
    %c0_105 = arith.constant 0 : index
    %c0_106 = arith.constant 0 : index
    %c0_107 = arith.constant 0 : index
    %97 = vector.load %arg6[%c0_105, %c0_106, %c0_107] : memref<1x16x128xf32, #tpu.memory_space<vmem>>, vector<1x16x128xf32>
    tpu.vector_store %arg6[%c0_105, %c0_106, %c0_107], %96 {strides = array<i32>} : memref<1x16x128xf32, #tpu.memory_space<vmem>>, vector<1x16x128xf32>,
    return
  }
  func.func @transform_0(%arg0: i32) -> (i32, i32, i32, i32) {
    %c0_i32 = arith.constant 0 : i32
    %c0_i32_0 = arith.constant 0 : i32
    %c0_i32_1 = arith.constant 0 : i32
    %c0_i32_2 = arith.constant 0 : i32
    return %arg0, %c0_i32, %c0_i32_0, %c0_i32_1 : i32, i32, i32, i32
  }
  func.func @transform_1(%arg0: i32) -> (i32, i32) {
    %c0_i32 = arith.constant 0 : i32
    %c0_i32_0 = arith.constant 0 : i32
    %c0_i32_1 = arith.constant 0 : i32
    return %c0_i32, %c0_i32_0 : i32, i32
  }
  func.func @transform_2(%arg0: i32) -> (i32, i32) {
    %c0_i32 = arith.constant 0 : i32
    %c0_i32_0 = arith.constant 0 : i32
    %c0_i32_1 = arith.constant 0 : i32
    return %c0_i32, %c0_i32_0 : i32, i32
  }
  func.func @transform_3(%arg0: i32) -> (i32, i32) {
    %c0_i32 = arith.constant 0 : i32
    %c0_i32_0 = arith.constant 0 : i32
    %c0_i32_1 = arith.constant 0 : i32
    return %c0_i32, %c0_i32_0 : i32, i32
  }
  func.func @transform_4(%arg0: i32) -> (i32, i32) {
    %c0_i32 = arith.constant 0 : i32
    %c0_i32_0 = arith.constant 0 : i32
    %c0_i32_1 = arith.constant 0 : i32
    return %c0_i32, %c0_i32_0 : i32, i32
  }
  func.func @transform_5(%arg0: i32) -> (i32, i32, i32) {
    %c0_i32 = arith.constant 0 : i32
    %c0_i32_0 = arith.constant 0 : i32
    %c0_i32_1 = arith.constant 0 : i32
    return %arg0, %c0_i32, %c0_i32_0 : i32, i32, i32
  }
}

</mosaic_0001>

<bundles_post_ra>
// kernel: tpu_custom_call.1
= control target key start
LH: loop header
LB: loop body
LE: loop exit
PB: predicated region body
PF: predicated region fallthrough
CT: control target
= control target key end

     0   :  { %10 = vsyncpa [#allocation4], 0  ;;  %s9556_s0 = inlined_call_operand.vmem [shape: f32[2,18,18,8], index: 0, kind: input, shape index: {}]   ;;  %s9557_s1 = inlined_call_operand.vmem [shape: f32[72,8], index: 1, kind: input, shape index: {}]   ;;  %s9558_s2 = inlined_call_operand.vmem [shape: f32[1,8], index: 2, kind: input, shape index: {}]   ;;  %s9559_s3 = inlined_call_operand.vmem [shape: f32[72,8], index: 3, kind: input, shape index: {}]   ;;  %s9560_s4 = inlined_call_operand.vmem [shape: f32[1,8], index: 4, kind: input, shape index: {}]   ;;  %s9561_s5 = inlined_call_operand.hbm [shape: f32[2,16,128], index: 5, kind: output, shape index: {}]  }
   0x1   :  { %12 = vsyncpa [#allocation4 + $0x1], 0  ;;  %s5254_s18 = smov 0   ;;  %s5256_s19 = smov 0  }
   0x2   :  { %s5258_s20 = smov 0   ;;  %s5260_s21 = smov 0  }
   0x3 LB: > { %s5275_s22 = sadd.s32 4294967295, %s5205_s21   ;;  %s4716_s23 = sadd.s32 4294967294, %s5205_s21   ;;  %s5205_s21 = sphi %s5260_s21, %s10273_s21   ;;  %s5201_s20 = sphi %s5258_s20, %s10272_s20   ;;  %s5197_s19 = sphi %s5256_s19, %s10271_s19   ;;  %s5193_s18 = sphi %s5254_s18, %s10270_s18  }
   0x4   : > { %s5279_s24 = sadd.s32 1, %s5205_s21   ;;  %s135_s25 = sadd.s32 1, %s5201_s20 }
   0x5   : > { %s132_s26 = ssub.s32 %s5205_s21, %s5279_s24  ;;  %p145_p0 = scmp.ne.s32.totalorder %s5201_s20, %s5197_s19 }
   0x6   : > { %p133_p1 = scmp.eq.s32.totalorder %s132_s26, 0  ;;  %p146_p2 = scmp.eq.s32.totalorder %s5275_s22, 1 }
   0x7   : > { %p151_p3 = scmp.ne.s32.totalorder %s5197_s19, %s5193_s18  ;;  %p152_p4 = scmp.eq.s32.totalorder %s4716_s23, 1 }
   0x8   : > { %s5290_s27 = scalar_select %p133_p1, %s5201_s20, %s135_s25  }
   0x9   : > { %p5292_p5 = por %p146_p2, %p145_p0  ;;  %p5296_p6 = por %p152_p4, %p151_p3 }
   0xa   : > { %p4719_p7 = scmp.ge.s32.totalorder %s5205_s21, 1  ;;  %p190_p8 = scmp.lt.s32.totalorder %s5205_s21, 3 }
   0xc   : > { %p191_p9 = pnand %p4719_p7, %p190_p8 }
   0xe   : > { %194 = sbr.rel (%p191_p9) target bundleno = 2055 (0x807), region = 40 }
  0x13   : > { %p218_p10 = scmp.lt.s32.totalorder %s5275_s22, 1  ;;  %s5207_s10 = smov 8   ;;  %vm223_vm0 = vcmask 64512   ;;  %vm1615_vm1 = vcmask 130048   ;;  %vm1648_vm2 = vcmask 195584   ;;  %vm1714_vm3 = vcmask 326656  }
  0x14   : > { %s5208_s11 = smov 16   ;;  %s5209_s12 = smov 24   ;;  %vm1681_vm4 = vcmask 261120   ;;  %vm1747_vm5 = vcmask 392192   ;;  %vm1813_vm6 = vcmask 523264   ;;  %vm1780_vm7 = vcmask 457728  }
  0x15   : > { %s219_s30 = scalar_select %p218_p10, %s5275_s22, 1  ;;  %vm1859_vm8 = vcmask 588800   ;;  %vm232_vm9 = vcmask 57344   ;;  %vm226_vm10 = vcmask 58368   ;;  %vm4038_vm11 = vcmask 1041409  }
  0x16   : > { %s5210_s13 = smov 32   ;;  %s5211_s14 = smov 40   ;;  %vm4041_vm12 = vcmask 1042434   ;;  %vm4044_vm13 = vcmask 1043459   ;;  %vm4047_vm14 = vcmask 1044484   ;;  %vm4050_vm15 = vcmask 1045509  }
  0x17   : > { %s5034_s6 = smul.u32 432, %s219_s30  ;;  %s5212_s15 = smov 48  }
  0x18   : > { %s5213_s16 = smov 56   ;;  %s5214_s17 = smov 64  }
  0x19   : > { %s5307_s9 = scalar_lea.vmem %s9556_s0, %s5034_s6  ;;  %s5015_s25 = sshll.u32 %s5275_s22, 4 }
  0x1a   : > { %v5310_v0 = vld [vmem:[%s5307_s9 + $0x31] sm:$0xff]  ;;  %v5313_v1 = vld [vmem:[%s5307_s9 + $0x19] sm:$0xff]  ;;  %v301_v2 = vld [vmem:[%s5307_s9 + $0x1] sm:$0xff]  ;;  %s4650_s6 = scalar_lea.hbm %s9561_s5, %s5015_s25 }
  0x1b   : > { %599 = vrot.lane.b32.xlu2 %v5310_v0, %s5207_s10  ;;  %595 = vrot.lane.b32.xlu1 %v5313_v1, %s5207_s10  ;;  %v5322_v3 = vld [vmem:[%s5307_s9 + $0x39] sm:$0xff]  ;;  %v5325_v4 = vld [vmem:[%s5307_s9 + $0x21] sm:$0xff]  ;;  %s4653_s22 = sshll.u32 %s4650_s6, 4  ;;  %s4654_s22 = int_to_ptr.hbm [resolvable:$true] %s4653_s22 }
  0x1c   : > { %591 = vrot.lane.b32.xlu0 %v301_v2, %s5207_s10  ;;  %v302_v5 = vld [vmem:[%s5307_s9 + $0x9] sm:$0xff]  ;;  %v5334_v6 = vld [vmem:[%s5307_s9 + $0x61] sm:$0xff]  ;;  %v5337_v7 = vld [vmem:[%s5307_s9 + $0x51] sm:$0xff] }
  0x1d   : > { %v5340_v8 = vld [vmem:[%s5307_s9 + $0x49] sm:$0xff]  ;;  %v5349_v9 = vld [vmem:[%s5307_s9 + $0x81] sm:$0xff]  ;;  %v5352_v10 = vld [vmem:[%s5307_s9 + $0x79] sm:$0xff] }
  0x1e   : > { %v5355_v11 = vld [vmem:[%s5307_s9 + $0x69] sm:$0xff]  ;;  %v5367_v13 = vld [vmem:[%s5307_s9 + $0x99] sm:$0xff]  ;;  %v5370_v14 = vld [vmem:[%s5307_s9 + $0x91] sm:$0xff] }
  0x1f   : > { %v5364_v12 = vld [vmem:[%s5307_s9 + $0xa9] sm:$0xff]  ;;  %v5382_v16 = vld [vmem:[%s5307_s9 + $0xc1] sm:$0xff]  ;;  %v5385_v17 = vld [vmem:[%s5307_s9 + $0xb1] sm:$0xff] }
  0x20   : > { %v5379_v15 = vld [vmem:[%s5307_s9 + $0xc9] sm:$0xff]  ;;  %v5394_v18 = vld [vmem:[%s5307_s9 + $0xf1] sm:$0xff]  ;;  %v5397_v19 = vld [vmem:[%s5307_s9 + $0xe1] sm:$0xff] }
  0x21   : > { %v5400_v20 = vld [vmem:[%s5307_s9 + $0xd9] sm:$0xff]  ;;  %v5409_v21 = vld [vmem:[%s5307_s9 + $0x111] sm:$0xff]  ;;  %v5412_v22 = vld [vmem:[%s5307_s9 + $0x109] sm:$0xff] }
  0x22   : > { %v5415_v23 = vld [vmem:[%s5307_s9 + $0xf9] sm:$0xff]  ;;  %v5427_v25 = vld [vmem:[%s5307_s9 + $0x129] sm:$0xff]  ;;  %v5430_v26 = vld [vmem:[%s5307_s9 + $0x121] sm:$0xff] }
  0x23   : > { %601 = vrot.lane.b32.xlu2 %v5322_v3, %s5207_s10  ;;  %597 = vrot.lane.b32.xlu1 %v5325_v4, %s5207_s10  ;;  %v5424_v24 = vld [vmem:[%s5307_s9 + $0x139] sm:$0xff]  ;;  %v5442_v28 = vld [vmem:[%s5307_s9 + $0x151] sm:$0xff] }
  0x24   : > { %593 = vrot.lane.b32.xlu0 %v302_v5, %s5207_s10  ;;  %v5439_v27 = vld [vmem:[%s5307_s9 + $0x159] sm:$0xff]  ;;  %v5445_v29 = vld [vmem:[%s5307_s9 + $0x141] sm:$0xff]  ;;  %v5455_v31 = vld [vmem:[%s5307_s9 + $0x171] sm:$0xff] }
  0x25   : > { %v333_v30 = vld [vmem:[%s5307_s9 + $0x2] sm:$0xff]  ;;  %v5469_v34 = vld [vmem:[%s5307_s9 + $0x1a] sm:$0xff]  ;;  %v334_v35 = vld [vmem:[%s5307_s9 + $0xa] sm:$0xff] }
  0x26   : > { %v5458_v32 = vld [vmem:[%s5307_s9 + $0x169] sm:$0xff]  ;;  %v5483_v38 = vld [vmem:[%s5307_s9 + $0x3a] sm:$0xff]  ;;  %v5486_v39 = vld [vmem:[%s5307_s9 + $0x32] sm:$0xff] }
  0x27   : > { %v5466_v33 = vld [vmem:[%s5307_s9 + $0x22] sm:$0xff]  ;;  %v5480_v37 = vld [vmem:[%s5307_s9 + $0x4a] sm:$0xff]  ;;  %v5503_v43 = vld [vmem:[%s5307_s9 + $0x52] sm:$0xff] }
  0x28   : > { %v5497_v41 = vld [vmem:[%s5307_s9 + $0x6a] sm:$0xff]  ;;  %v5500_v42 = vld [vmem:[%s5307_s9 + $0x62] sm:$0xff]  ;;  %v5514_v45 = vld [vmem:[%s5307_s9 + $0x92] sm:$0xff] }
  0x29   : > { %v5517_v46 = vld [vmem:[%s5307_s9 + $0x82] sm:$0xff]  ;;  %v5520_v47 = vld [vmem:[%s5307_s9 + $0x7a] sm:$0xff]  ;;  %v5535_v51 = vld [vmem:[%s5307_s9 + $0xb2] sm:$0xff] }
  0x2a   : > { %v5538_v52 = vld [vmem:[%s5307_s9 + $0xaa] sm:$0xff]  ;;  %v5541_v53 = vld [vmem:[%s5307_s9 + $0x9a] sm:$0xff]  ;;  %v5562_v59 = vld [vmem:[%s5307_s9 + $0xc2] sm:$0xff] }
  0x2b   : > { %607 = vrot.lane.b32.xlu2 %v5334_v6, %s5207_s10  ;;  %605 = vrot.lane.b32.xlu1 %v5337_v7, %s5207_s10  ;;  %v5556_v57 = vld [vmem:[%s5307_s9 + $0xda] sm:$0xff]  ;;  %v5559_v58 = vld [vmem:[%s5307_s9 + $0xca] sm:$0xff] }
  0x2c   : > { %603 = vrot.lane.b32.xlu0 %v5340_v8, %s5207_s10  ;;  %v5577_v63 = vld [vmem:[%s5307_s9 + $0xfa] sm:$0xff]  ;;  %v5580_v2 = vld [vmem:[%s5307_s9 + $0xf2] sm:$0xff]  ;;  %v5583_v5 = vld [vmem:[%s5307_s9 + $0xe2] sm:$0xff] }
  0x33   : > { %613 = vrot.lane.b32.xlu2 %v5349_v9, %s5207_s10  ;;  %611 = vrot.lane.b32.xlu1 %v5352_v10, %s5207_s10 }
  0x34   : > { %609 = vrot.lane.b32.xlu0 %v5355_v11, %s5207_s10 }
  0x3b   : > { %619 = vrot.lane.b32.xlu2 %v5364_v12, %s5207_s10  ;;  %617 = vrot.lane.b32.xlu1 %v5367_v13, %s5207_s10 }
  0x3c   : > { %615 = vrot.lane.b32.xlu0 %v5370_v14, %s5207_s10 }
  0x43   : > { %625 = vrot.lane.b32.xlu2 %v5379_v15, %s5207_s10  ;;  %623 = vrot.lane.b32.xlu1 %v5382_v16, %s5207_s10 }
  0x44   : > { %621 = vrot.lane.b32.xlu0 %v5385_v17, %s5207_s10 }
  0x4b   : > { %631 = vrot.lane.b32.xlu2 %v5394_v18, %s5207_s10  ;;  %629 = vrot.lane.b32.xlu1 %v5397_v19, %s5207_s10 }
  0x4c   : > { %627 = vrot.lane.b32.xlu0 %v5400_v20, %s5207_s10 }
  0x53   : > { %637 = vrot.lane.b32.xlu2 %v5409_v21, %s5207_s10  ;;  %635 = vrot.lane.b32.xlu1 %v5412_v22, %s5207_s10 }
  0x54   : > { %633 = vrot.lane.b32.xlu0 %v5415_v23, %s5207_s10 }
  0x5b   : > { %643 = vrot.lane.b32.xlu2 %v5424_v24, %s5207_s10  ;;  %641 = vrot.lane.b32.xlu1 %v5427_v25, %s5207_s10 }
  0x5c   : > { %639 = vrot.lane.b32.xlu0 %v5430_v26, %s5207_s10 }
  0x63   : > { %649 = vrot.lane.b32.xlu2 %v5439_v27, %s5207_s10  ;;  %647 = vrot.lane.b32.xlu1 %v5442_v28, %s5207_s10 }
  0x64   : > { %645 = vrot.lane.b32.xlu0 %v5445_v29, %s5207_s10 }
  0x6b   : > { %719 = vrot.lane.b32.xlu2 %v333_v30, %s5208_s11  ;;  %653 = vrot.lane.b32.xlu1 %v5455_v31, %s5207_s10 }
  0x6c   : > { %651 = vrot.lane.b32.xlu0 %v5458_v32, %s5207_s10 }
  0x73   : > { %725 = vrot.lane.b32.xlu2 %v5466_v33, %s5208_s11  ;;  %723 = vrot.lane.b32.xlu1 %v5469_v34, %s5208_s11 }
  0x74   : > { %721 = vrot.lane.b32.xlu0 %v334_v35, %s5208_s11 }
  0x75   : > { %v5477_v36 = vpop.permute.xlu2 %599 }
  0x76   : > { %9612 = vst [vmem:[#allocation6_spill] sm:$0xff] %v5477_v36  ;;  %v5640_v36 = vld [vmem:[%s5307_s9 + $0x16a] sm:$0xff] }
  0x77   : > { %9634 = vst [vmem:[#allocation28_spill] sm:$0xff] %v5640_v36 }
  0x7b   : > { %731 = vrot.lane.b32.xlu2 %v5480_v37, %s5208_s11  ;;  %729 = vrot.lane.b32.xlu1 %v5483_v38, %s5208_s11 }
  0x7c   : > { %727 = vrot.lane.b32.xlu0 %v5486_v39, %s5208_s11 }
  0x7d   : > { %v5494_v40 = vpop.permute.xlu2 %601 }
  0x7e   : > { %9613 = vst [vmem:[#allocation7_spill] sm:$0xff] %v5494_v40  ;;  %v5625_v40 = vld [vmem:[%s5307_s9 + $0x12a] sm:$0xff] }
  0x83   : > { %737 = vrot.lane.b32.xlu2 %v5497_v41, %s5208_s11  ;;  %735 = vrot.lane.b32.xlu1 %v5500_v42, %s5208_s11 }
  0x84   : > { %733 = vrot.lane.b32.xlu0 %v5503_v43, %s5208_s11 }
  0x85   : > { %v5511_v44 = vpop.permute.xlu2 %607 }
  0x86   : > { %9614 = vst [vmem:[#allocation8_spill] sm:$0xff] %v5511_v44  ;;  %v5601_v44 = vld [vmem:[%s5307_s9 + $0x112] sm:$0xff] }
  0x8b   : > { %743 = vrot.lane.b32.xlu2 %v5514_v45, %s5208_s11  ;;  %741 = vrot.lane.b32.xlu1 %v5517_v46, %s5208_s11 }
  0x8c   : > { %739 = vrot.lane.b32.xlu0 %v5520_v47, %s5208_s11 }
  0x8d   : > { %v5528_v48 = vpop.permute.xlu2 %613  ;;  %v5530_v49 = vpop.permute.xlu1 %595 }
  0x8e   : > { %9615 = vst [vmem:[#allocation9_spill] sm:$0xff] %v5528_v48  ;;  %v5532_v50 = vpop.permute.xlu0 %591  ;;  %v5598_v48 = vld [vmem:[%s5307_s9 + $0x122] sm:$0xff] }
  0x8f   : > { %9616 = vst [vmem:[#allocation10_spill] sm:$0xff] %v5530_v49  ;;  %v5646_v49 = vld [vmem:[%s5307_s9 + $0x152] sm:$0xff] }
  0x90   : > { %9617 = vst [vmem:[#allocation11_spill] sm:$0xff] %v5532_v50  ;;  %v271_v50 = vld [vmem:[%s5307_s9 + $0x18] sm:$0xff] }
  0x91   : > { %9636 = vst [vmem:[#allocation30_spill] sm:$0xff] %v5646_v49 }
  0x93   : > { %749 = vrot.lane.b32.xlu2 %v5535_v51, %s5208_s11  ;;  %747 = vrot.lane.b32.xlu1 %v5538_v52, %s5208_s11 }
  0x94   : > { %745 = vrot.lane.b32.xlu0 %v5541_v53, %s5208_s11 }
  0x95   : > { %v5549_v54 = vpop.permute.xlu2 %619  ;;  %v5551_v55 = vpop.permute.xlu1 %597 }
  0x96   : > { %9618 = vst [vmem:[#allocation12_spill] sm:$0xff] %v5549_v54  ;;  %v5553_v56 = vpop.permute.xlu0 %593 }
  0x97   : > { %9619 = vst [vmem:[#allocation13_spill] sm:$0xff] %v5551_v55  ;;  %v5643_v55 = vld [vmem:[%s5307_s9 + $0x15a] sm:$0xff] }
  0x98   : > { %9620 = vst [vmem:[#allocation14_spill] sm:$0xff] %v5553_v56  ;;  %v5661_v56 = vld [vmem:[%s5307_s9 + $0x172] sm:$0xff] }
  0x99   : > { %9635 = vst [vmem:[#allocation29_spill] sm:$0xff] %v5643_v55 }
  0x9a   : > { %9640 = vst [vmem:[#allocation34_spill] sm:$0xff] %v5661_v56 }
  0x9b   : > { %755 = vrot.lane.b32.xlu2 %v5556_v57, %s5208_s11  ;;  %753 = vrot.lane.b32.xlu1 %v5559_v58, %s5208_s11 }
  0x9c   : > { %751 = vrot.lane.b32.xlu0 %v5562_v59, %s5208_s11 }
  0x9d   : > { %v5570_v60 = vpop.permute.xlu2 %625  ;;  %v5572_v61 = vpop.permute.xlu1 %605 }
  0x9e   : > { %9621 = vst [vmem:[#allocation15_spill] sm:$0xff] %v5570_v60  ;;  %v5574_v62 = vpop.permute.xlu0 %603  ;;  %v5619_v60 = vld [vmem:[%s5307_s9 + $0x142] sm:$0xff] }
  0x9f   : > { %9622 = vst [vmem:[#allocation16_spill] sm:$0xff] %v5572_v61  ;;  %v5604_v61 = vld [vmem:[%s5307_s9 + $0x10a] sm:$0xff] }
  0xa0   : > { %9623 = vst [vmem:[#allocation17_spill] sm:$0xff] %v5574_v62  ;;  %v5622_v62 = vld [vmem:[%s5307_s9 + $0x13a] sm:$0xff] }
  0xa1   : > { %9630 = vst [vmem:[#allocation24_spill] sm:$0xff] %v5619_v60 }
  0xa3   : > { %761 = vrot.lane.b32.xlu2 %v5577_v63, %s5208_s11  ;;  %759 = vrot.lane.b32.xlu1 %v5580_v2, %s5208_s11 }
  0xa4   : > { %757 = vrot.lane.b32.xlu0 %v5583_v5, %s5208_s11 }
  0xa5   : > { %v5591_v30 = vpop.permute.xlu2 %631  ;;  %v5593_v35 = vpop.permute.xlu1 %611 }
  0xa6   : > { %9624 = vst [vmem:[#allocation18_spill] sm:$0xff] %v5591_v30  ;;  %v5595_v54 = vpop.permute.xlu0 %609 }
  0xa7   : > { %9625 = vst [vmem:[#allocation19_spill] sm:$0xff] %v5593_v35 }
  0xa8   : > { %9626 = vst [vmem:[#allocation20_spill] sm:$0xff] %v5595_v54 }
  0xab   : > { %767 = vrot.lane.b32.xlu2 %v5598_v48, %s5208_s11  ;;  %765 = vrot.lane.b32.xlu1 %v5601_v44, %s5208_s11 }
  0xac   : > { %763 = vrot.lane.b32.xlu0 %v5604_v61, %s5208_s11 }
  0xad   : > { %v5612_v35 = vpop.permute.xlu2 %637  ;;  %v5614_v30 = vpop.permute.xlu1 %617 }
  0xae   : > { %9627 = vst [vmem:[#allocation21_spill] sm:$0xff] %v5612_v35  ;;  %v5616_v54 = vpop.permute.xlu0 %615 }
  0xaf   : > { %9628 = vst [vmem:[#allocation22_spill] sm:$0xff] %v5614_v30 }
  0xb0   : > { %9629 = vst [vmem:[#allocation23_spill] sm:$0xff] %v5616_v54 }
  0xb3   : > { %773 = vrot.lane.b32.xlu2 %v5619_v60, %s5208_s11  ;;  %771 = vrot.lane.b32.xlu1 %v5622_v62, %s5208_s11  ;;  %v272_v60 = vld [vmem:[%s5307_s9 + $0x20] sm:$0xff] }
  0xb4   : > { %769 = vrot.lane.b32.xlu0 %v5625_v40, %s5208_s11 }
  0xb5   : > { %v5633_v30 = vpop.permute.xlu2 %643  ;;  %v5635_v35 = vpop.permute.xlu1 %623 }
  0xb6   : > { %9631 = vst [vmem:[#allocation25_spill] sm:$0xff] %v5633_v30  ;;  %v5637_v54 = vpop.permute.xlu0 %621 }
  0xb7   : > { %9632 = vst [vmem:[#allocation26_spill] sm:$0xff] %v5635_v35 }
  0xb8   : > { %9633 = vst [vmem:[#allocation27_spill] sm:$0xff] %v5637_v54 }
  0xbb   : > { %779 = vrot.lane.b32.xlu2 %v5640_v36, %s5208_s11  ;;  %777 = vrot.lane.b32.xlu1 %v5643_v55, %s5208_s11  ;;  %v274_v36 = vld [vmem:[%s5307_s9 + $0x38] sm:$0xff]  ;;  %v273_v55 = vld [vmem:[%s5307_s9 + $0x30] sm:$0xff] }
  0xbc   : > { %775 = vrot.lane.b32.xlu0 %v5646_v49, %s5208_s11  ;;  %v5677_v49 = vld [vmem:[%s5307_s9 + $0x48] sm:$0xff] }
  0xbd   : > { %v5654_v30 = vpop.permute.xlu2 %649  ;;  %v5656_v54 = vpop.permute.xlu1 %629  ;;  %9644 = vst [vmem:[#allocation38_spill] sm:$0xff] %v5677_v49 }
  0xbe   : > { %9637 = vst [vmem:[#allocation31_spill] sm:$0xff] %v5654_v30  ;;  %v5658_v35 = vpop.permute.xlu0 %627 }
  0xbf   : > { %9638 = vst [vmem:[#allocation32_spill] sm:$0xff] %v5656_v54 }
  0xc0   : > { %9639 = vst [vmem:[#allocation33_spill] sm:$0xff] %v5658_v35 }
  0xc3   : > { %849 = vrot.lane.b32.xlu2 %v272_v60, %s5209_s12  ;;  %847 = vrot.lane.b32.xlu1 %v271_v50, %s5209_s12 }
  0xc4   : > { %781 = vrot.lane.b32.xlu0 %v5661_v56, %s5208_s11  ;;  %v5695_v56 = vld [vmem:[%s5307_s9 + $0x50] sm:$0xff] }
  0xc5   : > { %v5669_v30 = vpop.permute.xlu2 %719  ;;  %v5671_v54 = vpop.permute.xlu1 %635  ;;  %9649 = vst [vmem:[#allocation43_spill] sm:$0xff] %v5695_v56 }
  0xc6   : > { %9641 = vst [vmem:[#allocation35_spill] sm:$0xff] %v5669_v30  ;;  %v5673_v35 = vpop.permute.xlu0 %633  ;;  %v5692_v30 = vld [vmem:[%s5307_s9 + $0x68] sm:$0xff] }
  0xc7   : > { %9642 = vst [vmem:[#allocation36_spill] sm:$0xff] %v5671_v54 }
  0xc8   : > { %9643 = vst [vmem:[#allocation37_spill] sm:$0xff] %v5673_v35  ;;  %v277_v35 = vld [vmem:[%s5307_s9 + $0x60] sm:$0xff] }
  0xc9   : > { %9648 = vst [vmem:[#allocation42_spill] sm:$0xff] %v5692_v30 }
  0xcb   : > { %855 = vrot.lane.b32.xlu2 %v5677_v49, %s5209_s12  ;;  %853 = vrot.lane.b32.xlu1 %v274_v36, %s5209_s12  ;;  %v5713_v49 = vld [vmem:[%s5307_s9 + $0x78] sm:$0xff] }
  0xcc   : > { %851 = vrot.lane.b32.xlu0 %v273_v55, %s5209_s12  ;;  %9654 = vst [vmem:[#allocation48_spill] sm:$0xff] %v5713_v49 }
  0xcd   : > { %v5684_v50 = vpop.permute.xlu2 %725  ;;  %v5686_v60 = vpop.permute.xlu1 %641 }
  0xce   : > { %9645 = vst [vmem:[#allocation39_spill] sm:$0xff] %v5684_v50  ;;  %v5688_v54 = vpop.permute.xlu0 %639  ;;  %v5710_v50 = vld [vmem:[%s5307_s9 + $0x90] sm:$0xff] }
  0xcf   : > { %9646 = vst [vmem:[#allocation40_spill] sm:$0xff] %v5686_v60 }
  0xd0   : > { %9647 = vst [vmem:[#allocation41_spill] sm:$0xff] %v5688_v54  ;;  %v280_v54 = vld [vmem:[%s5307_s9 + $0x80] sm:$0xff] }
  0xd1   : > { %9653 = vst [vmem:[#allocation47_spill] sm:$0xff] %v5710_v50 }
  0xd3   : > { %861 = vrot.lane.b32.xlu2 %v5692_v30, %s5209_s12  ;;  %859 = vrot.lane.b32.xlu1 %v277_v35, %s5209_s12  ;;  %v5728_v30 = vld [vmem:[%s5307_s9 + $0xb0] sm:$0xff] }
  0xd4   : > { %857 = vrot.lane.b32.xlu0 %v5695_v56, %s5209_s12  ;;  %9658 = vst [vmem:[#allocation52_spill] sm:$0xff] %v5728_v30  ;;  %v5731_v56 = vld [vmem:[%s5307_s9 + $0x98] sm:$0xff] }
  0xd5   : > { %v5702_v36 = vpop.permute.xlu2 %731  ;;  %v5704_v55 = vpop.permute.xlu1 %647  ;;  %9659 = vst [vmem:[#allocation53_spill] sm:$0xff] %v5731_v56 }
  0xd6   : > { %9650 = vst [vmem:[#allocation44_spill] sm:$0xff] %v5702_v36  ;;  %v5706_v60 = vpop.permute.xlu0 %645  ;;  %v283_v36 = vld [vmem:[%s5307_s9 + $0xa8] sm:$0xff] }
  0xd7   : > { %9651 = vst [vmem:[#allocation45_spill] sm:$0xff] %v5704_v55 }
  0xd8   : > { %9652 = vst [vmem:[#allocation46_spill] sm:$0xff] %v5706_v60 }
  0xdb   : > { %867 = vrot.lane.b32.xlu2 %v5710_v50, %s5209_s12  ;;  %865 = vrot.lane.b32.xlu1 %v280_v54, %s5209_s12  ;;  %v5746_v50 = vld [vmem:[%s5307_s9 + $0xd8] sm:$0xff] }
  0xdc   : > { %863 = vrot.lane.b32.xlu0 %v5713_v49, %s5209_s12  ;;  %9663 = vst [vmem:[#allocation57_spill] sm:$0xff] %v5746_v50  ;;  %v5749_v49 = vld [vmem:[%s5307_s9 + $0xc0] sm:$0xff] }
  0xdd   : > { %v5720_v35 = vpop.permute.xlu2 %737  ;;  %v5722_v55 = vpop.permute.xlu1 %653  ;;  %9664 = vst [vmem:[#allocation58_spill] sm:$0xff] %v5749_v49 }
  0xde   : > { %9655 = vst [vmem:[#allocation49_spill] sm:$0xff] %v5720_v35  ;;  %v5724_v60 = vpop.permute.xlu0 %651  ;;  %v286_v35 = vld [vmem:[%s5307_s9 + $0xc8] sm:$0xff] }
  0xdf   : > { %9656 = vst [vmem:[#allocation50_spill] sm:$0xff] %v5722_v55 }
  0xe0   : > { %9657 = vst [vmem:[#allocation51_spill] sm:$0xff] %v5724_v60 }
  0xe3   : > { %873 = vrot.lane.b32.xlu2 %v5728_v30, %s5209_s12  ;;  %871 = vrot.lane.b32.xlu1 %v283_v36, %s5209_s12  ;;  %v5764_v30 = vld [vmem:[%s5307_s9 + $0xf8] sm:$0xff] }
  0xe4   : > { %869 = vrot.lane.b32.xlu0 %v5731_v56, %s5209_s12  ;;  %9668 = vst [vmem:[#allocation62_spill] sm:$0xff] %v5764_v30  ;;  %v5767_v56 = vld [vmem:[%s5307_s9 + $0xe0] sm:$0xff] }
  0xe5   : > { %v5738_v54 = vpop.permute.xlu2 %743  ;;  %v5740_v55 = vpop.permute.xlu1 %723  ;;  %9669 = vst [vmem:[#allocation63_spill] sm:$0xff] %v5767_v56 }
  0xe6   : > { %9660 = vst [vmem:[#allocation54_spill] sm:$0xff] %v5738_v54  ;;  %v5742_v60 = vpop.permute.xlu0 %721 }
  0xe7   : > { %9661 = vst [vmem:[#allocation55_spill] sm:$0xff] %v5740_v55 }
  0xe8   : > { %9662 = vst [vmem:[#allocation56_spill] sm:$0xff] %v5742_v60  ;;  %v289_v60 = vld [vmem:[%s5307_s9 + $0xf0] sm:$0xff] }
  0xeb   : > { %879 = vrot.lane.b32.xlu2 %v5746_v50, %s5209_s12  ;;  %877 = vrot.lane.b32.xlu1 %v286_v35, %s5209_s12  ;;  %v5784_v50 = vld [vmem:[%s5307_s9 + $0x120] sm:$0xff] }
  0xec   : > { %875 = vrot.lane.b32.xlu0 %v5749_v49, %s5209_s12  ;;  %9674 = vst [vmem:[#allocation68_spill] sm:$0xff] %v5784_v50  ;;  %v5787_v49 = vld [vmem:[%s5307_s9 + $0x108] sm:$0xff] }
  0xed   : > { %v5756_v36 = vpop.permute.xlu2 %749  ;;  %v5758_v54 = vpop.permute.xlu1 %729  ;;  %9675 = vst [vmem:[#allocation69_spill] sm:$0xff] %v5787_v49 }
  0xee   : > { %9665 = vst [vmem:[#allocation59_spill] sm:$0xff] %v5756_v36  ;;  %v5760_v55 = vpop.permute.xlu0 %727 }
  0xef   : > { %9666 = vst [vmem:[#allocation60_spill] sm:$0xff] %v5758_v54 }
  0xf0   : > { %9667 = vst [vmem:[#allocation61_spill] sm:$0xff] %v5760_v55  ;;  %v5781_v55 = vld [vmem:[%s5307_s9 + $0x110] sm:$0xff] }
  0xf1   : > { %9673 = vst [vmem:[#allocation67_spill] sm:$0xff] %v5781_v55 }
  0xf3   : > { %885 = vrot.lane.b32.xlu2 %v5764_v30, %s5209_s12  ;;  %883 = vrot.lane.b32.xlu1 %v289_v60, %s5209_s12  ;;  %v5805_v30 = vld [vmem:[%s5307_s9 + $0x140] sm:$0xff] }
  0xf4   : > { %881 = vrot.lane.b32.xlu0 %v5767_v56, %s5209_s12  ;;  %9680 = vst [vmem:[#allocation74_spill] sm:$0xff] %v5805_v30  ;;  %v5808_v56 = vld [vmem:[%s5307_s9 + $0x128] sm:$0xff] }
  0xf5   : > { %v5774_v35 = vpop.permute.xlu2 %755  ;;  %v5776_v36 = vpop.permute.xlu1 %735  ;;  %9681 = vst [vmem:[#allocation75_spill] sm:$0xff] %v5808_v56 }
  0xf6   : > { %9670 = vst [vmem:[#allocation64_spill] sm:$0xff] %v5774_v35  ;;  %v5778_v54 = vpop.permute.xlu0 %733 }
  0xf7   : > { %9671 = vst [vmem:[#allocation65_spill] sm:$0xff] %v5776_v36 }
  0xf8   : > { %9672 = vst [vmem:[#allocation66_spill] sm:$0xff] %v5778_v54  ;;  %v5802_v54 = vld [vmem:[%s5307_s9 + $0x138] sm:$0xff] }
  0xf9   : > { %9679 = vst [vmem:[#allocation73_spill] sm:$0xff] %v5802_v54 }
  0xfb   : > { %891 = vrot.lane.b32.xlu2 %v5784_v50, %s5209_s12  ;;  %889 = vrot.lane.b32.xlu1 %v5781_v55, %s5209_s12  ;;  %v5823_v50 = vld [vmem:[%s5307_s9 + $0x158] sm:$0xff]  ;;  %v5829_v55 = vld [vmem:[%s5307_s9 + $0x150] sm:$0xff] }
  0xfc   : > { %887 = vrot.lane.b32.xlu0 %v5787_v49, %s5209_s12  ;;  %v5826_v49 = vld [vmem:[%s5307_s9 + $0x168] sm:$0xff] }
  0xfd   : > { %v5795_v60 = vpop.permute.xlu2 %761  ;;  %v5797_v36 = vpop.permute.xlu1 %741  ;;  %9685 = vst [vmem:[#allocation79_spill] sm:$0xff] %v5826_v49 }
  0xfe   : > { %9676 = vst [vmem:[#allocation70_spill] sm:$0xff] %v5795_v60  ;;  %v5799_v35 = vpop.permute.xlu0 %739 }
  0xff   : > { %9677 = vst [vmem:[#allocation71_spill] sm:$0xff] %v5797_v36 }
 0x100   : > { %9678 = vst [vmem:[#allocation72_spill] sm:$0xff] %v5799_v35 }
 0x103   : > { %897 = vrot.lane.b32.xlu2 %v5805_v30, %s5209_s12  ;;  %895 = vrot.lane.b32.xlu1 %v5802_v54, %s5209_s12  ;;  %v5844_v30 = vld [vmem:[%s5307_s9 + $0x188] sm:$0xff]  ;;  %v5850_v54 = vld [vmem:[%s5307_s9 + $0x170] sm:$0xff] }
 0x104   : > { %893 = vrot.lane.b32.xlu0 %v5808_v56, %s5209_s12  ;;  %9689 = vst [vmem:[#allocation83_spill] sm:$0xff] %v5844_v30  ;;  %v5847_v56 = vld [vmem:[%s5307_s9 + $0x180] sm:$0xff] }
 0x105   : > { %v5816_v36 = vpop.permute.xlu2 %767  ;;  %v5818_v60 = vpop.permute.xlu1 %747  ;;  %9690 = vst [vmem:[#allocation84_spill] sm:$0xff] %v5850_v54 }
 0x106   : > { %9682 = vst [vmem:[#allocation76_spill] sm:$0xff] %v5816_v36  ;;  %v5820_v35 = vpop.permute.xlu0 %745 }
 0x107   : > { %9683 = vst [vmem:[#allocation77_spill] sm:$0xff] %v5818_v60 }
 0x108   : > { %9684 = vst [vmem:[#allocation78_spill] sm:$0xff] %v5820_v35 }
 0x10b   : > { %903 = vrot.lane.b32.xlu2 %v5826_v49, %s5209_s12  ;;  %901 = vrot.lane.b32.xlu1 %v5823_v50, %s5209_s12 }
 0x10c   : > { %899 = vrot.lane.b32.xlu0 %v5829_v55, %s5209_s12 }
 0x10d   : > { %v5837_v36 = vpop.permute.xlu2 %773  ;;  %v5839_v60 = vpop.permute.xlu1 %753 }
 0x10e   : > { %9686 = vst [vmem:[#allocation80_spill] sm:$0xff] %v5837_v36  ;;  %v5841_v35 = vpop.permute.xlu0 %751 }
 0x10f   : > { %9687 = vst [vmem:[#allocation81_spill] sm:$0xff] %v5839_v60 }
 0x110   : > { %9688 = vst [vmem:[#allocation82_spill] sm:$0xff] %v5841_v35 }
 0x113   : > { %909 = vrot.lane.b32.xlu2 %v5844_v30, %s5209_s12  ;;  %907 = vrot.lane.b32.xlu1 %v5847_v56, %s5209_s12 }
 0x114   : > { %905 = vrot.lane.b32.xlu0 %v5850_v54, %s5209_s12 }
 0x115   : > { %v5858_v36 = vpop.permute.xlu2 %779  ;;  %v5860_v60 = vpop.permute.xlu1 %759 }
 0x116   : > { %9691 = vst [vmem:[#allocation85_spill] sm:$0xff] %v5858_v36  ;;  %v5862_v35 = vpop.permute.xlu0 %757  ;;  %v5988_v36 = vld [vmem:[%s5307_s9 + $0x181] sm:$0xff] }
 0x117   : > { %9692 = vst [vmem:[#allocation86_spill] sm:$0xff] %v5860_v60  ;;  %v4872_v60 = vld [vmem:[%s5307_s9 + $0x139] sm:$0xff] }
 0x118   : > { %9693 = vst [vmem:[#allocation87_spill] sm:$0xff] %v5862_v35  ;;  %v4898_v35 = vld [vmem:[%s5307_s9 + $0xf2] sm:$0xff] }
 0x11b   : > { %979 = vrot.lane.b32.xlu2 %v5310_v0, %s5210_s13  ;;  %977 = vrot.lane.b32.xlu1 %v5325_v4, %s5210_s13 }
 0x11c   : > { %975 = vrot.lane.b32.xlu0 %v5313_v1, %s5210_s13 }
 0x11d   : > { %v5870_v30 = vpop.permute.xlu2 %849  ;;  %v5872_v49 = vpop.permute.xlu1 %765 }
 0x11e   : > { %9694 = vst [vmem:[#allocation88_spill] sm:$0xff] %v5872_v49  ;;  %v5874_v54 = vpop.permute.xlu0 %763  ;;  %v9761_v49 = vld [vmem:[#allocation67_spill] sm:$0xff] }
 0x11f   : > { %9695 = vst [vmem:[#allocation89_spill] sm:$0xff] %v5874_v54  ;;  %v9776_v54 = vld [vmem:[#allocation84_spill] sm:$0xff] }
 0x123   : > { %985 = vrot.lane.b32.xlu2 %v5337_v7, %s5210_s13  ;;  %983 = vrot.lane.b32.xlu1 %v5340_v8, %s5210_s13 }
 0x124   : > { %981 = vrot.lane.b32.xlu0 %v5322_v3, %s5210_s13 }
 0x125   : > { %v5882_v0 = vpop.permute.xlu2 %855  ;;  %v5884_v4 = vpop.permute.xlu1 %771 }
 0x126   : > { %9696 = vst [vmem:[#allocation90_spill] sm:$0xff] %v5884_v4  ;;  %v5886_v1 = vpop.permute.xlu0 %769  ;;  %v4818_v4 = vld [vmem:[%s5307_s9 + $0x30] sm:$0xff] }
 0x127   : > { %9697 = vst [vmem:[#allocation91_spill] sm:$0xff] %v5886_v1 }
 0x12b   : > { %991 = vrot.lane.b32.xlu2 %v5352_v10, %s5210_s13  ;;  %989 = vrot.lane.b32.xlu1 %v5355_v11, %s5210_s13 }
 0x12c   : > { %987 = vrot.lane.b32.xlu0 %v5334_v6, %s5210_s13 }
 0x12d   : > { %v5894_v7 = vpop.permute.xlu2 %861  ;;  %v5896_v8 = vpop.permute.xlu1 %777 }
 0x12e   : > { %9698 = vst [vmem:[#allocation92_spill] sm:$0xff] %v5896_v8  ;;  %v5898_v3 = vpop.permute.xlu0 %775 }
 0x12f   : > { %9699 = vst [vmem:[#allocation93_spill] sm:$0xff] %v5898_v3  ;;  %v6111_v3 = vld [vmem:[%s5307_s9 + $0x182] sm:$0xff] }
 0x133   : > { %997 = vrot.lane.b32.xlu2 %v5367_v13, %s5210_s13  ;;  %995 = vrot.lane.b32.xlu1 %v5370_v14, %s5210_s13 }
 0x134   : > { %993 = vrot.lane.b32.xlu0 %v5349_v9, %s5210_s13 }
 0x135   : > { %v5906_v10 = vpop.permute.xlu2 %867  ;;  %v5908_v11 = vpop.permute.xlu1 %847 }
 0x136   : > { %9700 = vst [vmem:[#allocation94_spill] sm:$0xff] %v5906_v10  ;;  %v5910_v6 = vpop.permute.xlu0 %781  ;;  %v4873_v10 = vld [vmem:[%s5307_s9 + $0x141] sm:$0xff] }
 0x137   : > { %9701 = vst [vmem:[#allocation95_spill] sm:$0xff] %v5910_v6  ;;  %v5985_v6 = vld [vmem:[%s5307_s9 + $0x189] sm:$0xff] }
 0x13b   : > { %1003 = vrot.lane.b32.xlu2 %v5382_v16, %s5210_s13  ;;  %1001 = vrot.lane.b32.xlu1 %v5385_v17, %s5210_s13 }
 0x13c   : > { %999 = vrot.lane.b32.xlu0 %v5364_v12, %s5210_s13 }
 0x13d   : > { %v5918_v13 = vpop.permute.xlu2 %873  ;;  %v5920_v14 = vpop.permute.xlu1 %853 }
 0x13e   : > { %9702 = vst [vmem:[#allocation96_spill] sm:$0xff] %v5918_v13  ;;  %v5922_v9 = vpop.permute.xlu0 %851  ;;  %v4834_v13 = vld [vmem:[%s5307_s9 + $0xf0] sm:$0xff] }
 0x143   : > { %1009 = vrot.lane.b32.xlu2 %v5397_v19, %s5210_s13  ;;  %1007 = vrot.lane.b32.xlu1 %v5400_v20, %s5210_s13 }
 0x144   : > { %1005 = vrot.lane.b32.xlu0 %v5379_v15, %s5210_s13 }
 0x145   : > { %v5930_v16 = vpop.permute.xlu2 %879  ;;  %v5932_v17 = vpop.permute.xlu1 %859 }
 0x146   : > { %v5934_v12 = vpop.permute.xlu0 %857 }
 0x14b   : > { %1015 = vrot.lane.b32.xlu2 %v5412_v22, %s5210_s13  ;;  %1013 = vrot.lane.b32.xlu1 %v5415_v23, %s5210_s13 }
 0x14c   : > { %1011 = vrot.lane.b32.xlu0 %v5394_v18, %s5210_s13 }
 0x14d   : > { %v5942_v19 = vpop.permute.xlu2 %885  ;;  %v5944_v20 = vpop.permute.xlu1 %865 }
 0x14e   : > { %9703 = vst [vmem:[#allocation97_spill] sm:$0xff] %v5942_v19  ;;  %v5946_v15 = vpop.permute.xlu0 %863  ;;  %v1853_v19 = vld [vmem:[%s9557_s1 + $0x38] sm:$0xff] }
 0x14f   : > { %9704 = vst [vmem:[#allocation98_spill] sm:$0xff] %v5944_v20  ;;  %v4895_v20 = vld [vmem:[%s5307_s9 + $0xca] sm:$0xff] }
 0x153   : > { %1021 = vrot.lane.b32.xlu2 %v5427_v25, %s5210_s13  ;;  %1019 = vrot.lane.b32.xlu1 %v5430_v26, %s5210_s13 }
 0x154   : > { %1017 = vrot.lane.b32.xlu0 %v5409_v21, %s5210_s13 }
 0x155   : > { %v5954_v22 = vpop.permute.xlu2 %891  ;;  %v5956_v18 = vpop.permute.xlu1 %871 }
 0x156   : > { %9705 = vst [vmem:[#allocation99_spill] sm:$0xff] %v5954_v22  ;;  %v5958_v23 = vpop.permute.xlu0 %869 }
 0x157   : > { %9706 = vst [vmem:[#allocation100_spill] sm:$0xff] %v5956_v18 }
 0x158   : > { %9707 = vst [vmem:[#allocation101_spill] sm:$0xff] %v5958_v23  ;;  %v4856_v23 = vld [vmem:[%s5307_s9 + $0x79] sm:$0xff] }
 0x15b   : > { %1027 = vrot.lane.b32.xlu2 %v5442_v28, %s5210_s13  ;;  %1025 = vrot.lane.b32.xlu1 %v5445_v29, %s5210_s13 }
 0x15c   : > { %1023 = vrot.lane.b32.xlu0 %v5424_v24, %s5210_s13 }
 0x15d   : > { %v5966_v25 = vpop.permute.xlu2 %897  ;;  %v5968_v21 = vpop.permute.xlu1 %877 }
 0x15e   : > { %9708 = vst [vmem:[#allocation102_spill] sm:$0xff] %v5966_v25  ;;  %v5970_v26 = vpop.permute.xlu0 %875  ;;  %v9742_v25 = vld [vmem:[#allocation43_spill] sm:$0xff] }
 0x15f   : > { %9709 = vst [vmem:[#allocation103_spill] sm:$0xff] %v5968_v21  ;;  %v4822_v21 = vld [vmem:[%s5307_s9 + $0x60] sm:$0xff] }
 0x160   : > { %9710 = vst [vmem:[#allocation104_spill] sm:$0xff] %v5970_v26  ;;  %v9746_v26 = vld [vmem:[#allocation48_spill] sm:$0xff] }
 0x163   : > { %1033 = vrot.lane.b32.xlu2 %v5455_v31, %s5210_s13  ;;  %1031 = vrot.lane.b32.xlu1 %v5458_v32, %s5210_s13 }
 0x164   : > { %1029 = vrot.lane.b32.xlu0 %v5439_v27, %s5210_s13 }
 0x165   : > { %v5978_v28 = vpop.permute.xlu2 %903  ;;  %v5980_v29 = vpop.permute.xlu1 %883 }
 0x166   : > { %9711 = vst [vmem:[#allocation105_spill] sm:$0xff] %v5978_v28  ;;  %v5982_v24 = vpop.permute.xlu0 %881 }
 0x16b   : > { %1103 = vrot.lane.b32.xlu2 %v5469_v34, %s5211_s14  ;;  %1037 = vrot.lane.b32.xlu1 %v5985_v6, %s5210_s13 }
 0x16c   : > { %1035 = vrot.lane.b32.xlu0 %v5988_v36, %s5210_s13 }
 0x16d   : > { %v5996_v27 = vpop.permute.xlu2 %909  ;;  %v5998_v31 = vpop.permute.xlu1 %889 }
 0x16e   : > { %9712 = vst [vmem:[#allocation106_spill] sm:$0xff] %v5996_v27  ;;  %v6000_v32 = vpop.permute.xlu0 %887  ;;  %v9730_v27 = vld [vmem:[#allocation29_spill] sm:$0xff] }
 0x16f   : > { %9713 = vst [vmem:[#allocation107_spill] sm:$0xff] %v5998_v31  ;;  %v4853_v31 = vld [vmem:[%s5307_s9 + $0x51] sm:$0xff] }
 0x170   : > { %9714 = vst [vmem:[#allocation108_spill] sm:$0xff] %v6000_v32  ;;  %v4868_v32 = vld [vmem:[%s5307_s9 + $0x109] sm:$0xff] }
 0x173   : > { %1109 = vrot.lane.b32.xlu2 %v5483_v38, %s5211_s14  ;;  %1107 = vrot.lane.b32.xlu1 %v5486_v39, %s5211_s14 }
 0x174   : > { %1105 = vrot.lane.b32.xlu0 %v5466_v33, %s5211_s14 }
 0x175   : > { %v6008_v34 = vpop.permute.xlu2 %979  ;;  %v6010_v8 = vpop.permute.xlu1 %895 }
 0x176   : > { %9715 = vst [vmem:[#allocation109_spill] sm:$0xff] %v6010_v8  ;;  %v6012_v28 = vpop.permute.xlu0 %893  ;;  %v4825_v8 = vld [vmem:[%s5307_s9 + $0x80] sm:$0xff] }
 0x177   : > { %9716 = vst [vmem:[#allocation110_spill] sm:$0xff] %v6012_v28  ;;  %v4831_v28 = vld [vmem:[%s5307_s9 + $0xc8] sm:$0xff] }
 0x17b   : > { %1115 = vrot.lane.b32.xlu2 %v5500_v42, %s5211_s14  ;;  %1113 = vrot.lane.b32.xlu1 %v5503_v43, %s5211_s14 }
 0x17c   : > { %1111 = vrot.lane.b32.xlu0 %v5480_v37, %s5211_s14 }
 0x17d   : > { %v6020_v38 = vpop.permute.xlu2 %985  ;;  %v6022_v39 = vpop.permute.xlu1 %901 }
 0x17e   : > { %9717 = vst [vmem:[#allocation111_spill] sm:$0xff] %v6022_v39  ;;  %v6024_v33 = vpop.permute.xlu0 %899  ;;  %v9735_v39 = vld [vmem:[#allocation34_spill] sm:$0xff] }
 0x17f   : > { %9718 = vst [vmem:[#allocation112_spill] sm:$0xff] %v6024_v33  ;;  %v4819_v33 = vld [vmem:[%s5307_s9 + $0x38] sm:$0xff] }
 0x183   : > { %1121 = vrot.lane.b32.xlu2 %v5517_v46, %s5211_s14  ;;  %1119 = vrot.lane.b32.xlu1 %v5520_v47, %s5211_s14 }
 0x184   : > { %1117 = vrot.lane.b32.xlu0 %v5497_v41, %s5211_s14 }
 0x185   : > { %v6032_v42 = vpop.permute.xlu2 %991  ;;  %v6034_v43 = vpop.permute.xlu1 %907 }
 0x186   : > { %9719 = vst [vmem:[#allocation113_spill] sm:$0xff] %v6032_v42  ;;  %v6036_v37 = vpop.permute.xlu0 %905  ;;  %v4907_v42 = vld [vmem:[%s5307_s9 + $0x15a] sm:$0xff] }
 0x187   : > { %9720 = vst [vmem:[#allocation114_spill] sm:$0xff] %v6034_v43 }
 0x188   : > { %9721 = vst [vmem:[#allocation115_spill] sm:$0xff] %v6036_v37 }
 0x18b   : > { %1127 = vrot.lane.b32.xlu2 %v5538_v52, %s5211_s14  ;;  %1125 = vrot.lane.b32.xlu1 %v5541_v53, %s5211_s14 }
 0x18c   : > { %1123 = vrot.lane.b32.xlu0 %v5514_v45, %s5211_s14 }
 0x18d   : > { %v6044_v46 = vpop.permute.xlu2 %997  ;;  %v6046_v47 = vpop.permute.xlu1 %977 }
 0x18e   : > { %9722 = vst [vmem:[#allocation116_spill] sm:$0xff] %v6044_v46  ;;  %v6048_v41 = vpop.permute.xlu0 %975  ;;  %v4854_v46 = vld [vmem:[%s5307_s9 + $0x61] sm:$0xff] }
 0x193   : > { %1133 = vrot.lane.b32.xlu2 %v5559_v58, %s5211_s14  ;;  %1131 = vrot.lane.b32.xlu1 %v5562_v59, %s5211_s14 }
 0x194   : > { %1129 = vrot.lane.b32.xlu0 %v5535_v51, %s5211_s14 }
 0x195   : > { %v6056_v52 = vpop.permute.xlu2 %1003  ;;  %v6058_v53 = vpop.permute.xlu1 %983 }
 0x196   : > { %9723 = vst [vmem:[#allocation117_spill] sm:$0xff] %v6056_v52  ;;  %v6060_v45 = vpop.permute.xlu0 %981 }
 0x19b   : > { %1139 = vrot.lane.b32.xlu2 %v5580_v2, %s5211_s14  ;;  %1137 = vrot.lane.b32.xlu1 %v5583_v5, %s5211_s14 }
 0x19c   : > { %1135 = vrot.lane.b32.xlu0 %v5556_v57, %s5211_s14 }
 0x19d   : > { %v6068_v58 = vpop.permute.xlu2 %1009  ;;  %v6070_v59 = vpop.permute.xlu1 %989 }
 0x19e   : > { %v6072_v51 = vpop.permute.xlu0 %987 }
 0x1a3   : > { %1145 = vrot.lane.b32.xlu2 %v5601_v44, %s5211_s14  ;;  %1143 = vrot.lane.b32.xlu1 %v5604_v61, %s5211_s14 }
 0x1a4   : > { %1141 = vrot.lane.b32.xlu0 %v5577_v63, %s5211_s14 }
 0x1a5   : > { %v6080_v2 = vpop.permute.xlu2 %1015  ;;  %v6082_v5 = vpop.permute.xlu1 %995 }
 0x1a6   : > { %9724 = vst [vmem:[#allocation118_spill] sm:$0xff] %v6080_v2  ;;  %v6084_v57 = vpop.permute.xlu0 %993  ;;  %v4869_v2 = vld [vmem:[%s5307_s9 + $0x111] sm:$0xff] }
 0x1a7   : > { %9725 = vst [vmem:[#allocation119_spill] sm:$0xff] %v6082_v5  ;;  %v4865_v5 = vld [vmem:[%s5307_s9 + $0xe1] sm:$0xff] }
 0x1a8   : > { %9726 = vst [vmem:[#allocation120_spill] sm:$0xff] %v6084_v57  ;;  %v4892_v57 = vld [vmem:[%s5307_s9 + $0xaa] sm:$0xff] }
 0x1ab   : > { %1151 = vrot.lane.b32.xlu2 %v5622_v62, %s5211_s14  ;;  %1149 = vrot.lane.b32.xlu1 %v5625_v40, %s5211_s14  ;;  %v9731_v62 = vld [vmem:[#allocation30_spill] sm:$0xff]  ;;  %v9732_v40 = vld [vmem:[#allocation24_spill] sm:$0xff] }
 0x1ac   : > { %1147 = vrot.lane.b32.xlu0 %v5598_v48, %s5211_s14 }
 0x1ad   : > { %v6092_v44 = vpop.permute.xlu2 %1021  ;;  %v6094_v61 = vpop.permute.xlu1 %1001 }
 0x1ae   : > { %9727 = vst [vmem:[#allocation121_spill] sm:$0xff] %v6092_v44  ;;  %v6096_v63 = vpop.permute.xlu0 %999 }
 0x1af   : > { %9728 = vst [vmem:[#allocation122_spill] sm:$0xff] %v6094_v61 }
 0x1b0   : > { %9729 = vst [vmem:[#allocation123_spill] sm:$0xff] %v6096_v63  ;;  %v9767_v63 = vld [vmem:[#allocation75_spill] sm:$0xff] }
 0x1b3   : > { %1157 = vrot.lane.b32.xlu2 %v9730_v27, %s5211_s14  ;;  %1155 = vrot.lane.b32.xlu1 %v9731_v62, %s5211_s14  ;;  %v9736_v27 = vld [vmem:[#allocation28_spill] sm:$0xff] }
 0x1b4   : > { %1153 = vrot.lane.b32.xlu0 %v9732_v40, %s5211_s14 }
 0x1b5   : > { %v6104_v43 = vpop.permute.xlu2 %1027  ;;  %v6106_v48 = vpop.permute.xlu1 %1007 }
 0x1b6   : > { %9733 = vst [vmem:[#allocation29_spill] sm:$0xff] %v6104_v43  ;;  %v6108_v37 = vpop.permute.xlu0 %1005 }
 0x1b7   : > { %9734 = vst [vmem:[#allocation30_spill] sm:$0xff] %v6108_v37  ;;  %v6128_v37 = vld [vmem:[%s5307_s9 + $0x18a] sm:$0xff] }
 0x1bb   : > { %1163 = vrot.lane.b32.xlu2 %v6111_v3, %s5211_s14  ;;  %1161 = vrot.lane.b32.xlu1 %v9735_v39, %s5211_s14 }
 0x1bc   : > { %1159 = vrot.lane.b32.xlu0 %v9736_v27, %s5211_s14 }
 0x1bd   : > { %v6119_v62 = vpop.permute.xlu2 %1033  ;;  %v6121_v40 = vpop.permute.xlu1 %1013 }
 0x1be   : > { %9737 = vst [vmem:[#allocation24_spill] sm:$0xff] %v6119_v62  ;;  %v6123_v43 = vpop.permute.xlu0 %1011 }
 0x1bf   : > { %9738 = vst [vmem:[#allocation34_spill] sm:$0xff] %v6121_v40  ;;  %v4889_v40 = vld [vmem:[%s5307_s9 + $0x82] sm:$0xff] }
 0x1c0   : > { %9739 = vst [vmem:[#allocation28_spill] sm:$0xff] %v6123_v43 }
 0x1c3   : > { %1233 = vrot.lane.b32.xlu2 %v4819_v33, %s5212_s15  ;;  %1231 = vrot.lane.b32.xlu1 %v4818_v4, %s5212_s15  ;;  %v9743_v33 = vld [vmem:[#allocation38_spill] sm:$0xff] }
 0x1c4   : > { %1165 = vrot.lane.b32.xlu0 %v6128_v37, %s5211_s14 }
 0x1c5   : > { %v6134_v39 = vpop.permute.xlu2 %1103  ;;  %v6136_v27 = vpop.permute.xlu1 %1019 }
 0x1c6   : > { %9740 = vst [vmem:[#allocation124_spill] sm:$0xff] %v6136_v27  ;;  %v6138_v62 = vpop.permute.xlu0 %1017 }
 0x1c7   : > { %9741 = vst [vmem:[#allocation125_spill] sm:$0xff] %v6138_v62  ;;  %v4850_v62 = vld [vmem:[%s5307_s9 + $0x31] sm:$0xff] }
 0x1cb   : > { %1239 = vrot.lane.b32.xlu2 %v4822_v21, %s5212_s15  ;;  %1237 = vrot.lane.b32.xlu1 %v9742_v25, %s5212_s15  ;;  %v9747_v21 = vld [vmem:[#allocation42_spill] sm:$0xff] }
 0x1cc   : > { %1235 = vrot.lane.b32.xlu0 %v9743_v33, %s5212_s15 }
 0x1cd   : > { %v6146_v4 = vpop.permute.xlu2 %1109  ;;  %v6148_v1 = vpop.permute.xlu1 %1025 }
 0x1ce   : > { %9744 = vst [vmem:[#allocation43_spill] sm:$0xff] %v6148_v1  ;;  %v6150_v52 = vpop.permute.xlu0 %1023  ;;  %v4828_v1 = vld [vmem:[%s5307_s9 + $0xa8] sm:$0xff] }
 0x1cf   : > { %9745 = vst [vmem:[#allocation38_spill] sm:$0xff] %v6150_v52  ;;  %v9750_v52 = vld [vmem:[#allocation53_spill] sm:$0xff] }
 0x1d3   : > { %1245 = vrot.lane.b32.xlu2 %v4825_v8, %s5212_s15  ;;  %1243 = vrot.lane.b32.xlu1 %v9746_v26, %s5212_s15  ;;  %v9751_v8 = vld [vmem:[#allocation47_spill] sm:$0xff] }
 0x1d4   : > { %1241 = vrot.lane.b32.xlu0 %v9747_v21, %s5212_s15 }
 0x1d5   : > { %v6158_v25 = vpop.permute.xlu2 %1115  ;;  %v6160_v61 = vpop.permute.xlu1 %1031 }
 0x1d6   : > { %9748 = vst [vmem:[#allocation48_spill] sm:$0xff] %v6160_v61  ;;  %v6162_v33 = vpop.permute.xlu0 %1029  ;;  %v9755_v61 = vld [vmem:[#allocation58_spill] sm:$0xff] }
 0x1d7   : > { %9749 = vst [vmem:[#allocation42_spill] sm:$0xff] %v6162_v33 }
 0x1db   : > { %1251 = vrot.lane.b32.xlu2 %v4828_v1, %s5212_s15  ;;  %1249 = vrot.lane.b32.xlu1 %v9750_v52, %s5212_s15  ;;  %v9756_v1 = vld [vmem:[#allocation52_spill] sm:$0xff] }
 0x1dc   : > { %1247 = vrot.lane.b32.xlu0 %v9751_v8, %s5212_s15 }
 0x1dd   : > { %v6170_v26 = vpop.permute.xlu2 %1121  ;;  %v6172_v44 = vpop.permute.xlu1 %1037 }
 0x1de   : > { %9752 = vst [vmem:[#allocation53_spill] sm:$0xff] %v6170_v26  ;;  %v6174_v21 = vpop.permute.xlu0 %1035  ;;  %v4874_v26 = vld [vmem:[%s5307_s9 + $0x151] sm:$0xff] }
 0x1df   : > { %9753 = vst [vmem:[#allocation47_spill] sm:$0xff] %v6172_v44  ;;  %v9758_v44 = vld [vmem:[#allocation63_spill] sm:$0xff] }
 0x1e0   : > { %9754 = vst [vmem:[#allocation126_spill] sm:$0xff] %v6174_v21 }
 0x1e3   : > { %1257 = vrot.lane.b32.xlu2 %v4831_v28, %s5212_s15  ;;  %1255 = vrot.lane.b32.xlu1 %v9755_v61, %s5212_s15  ;;  %v9759_v28 = vld [vmem:[#allocation57_spill] sm:$0xff] }
 0x1e4   : > { %1253 = vrot.lane.b32.xlu0 %v9756_v1, %s5212_s15 }
 0x1e5   : > { %v6182_v33 = vpop.permute.xlu2 %1127  ;;  %v6184_v52 = vpop.permute.xlu1 %1107 }
 0x1e6   : > { %9757 = vst [vmem:[#allocation58_spill] sm:$0xff] %v6182_v33  ;;  %v6186_v8 = vpop.permute.xlu0 %1105  ;;  %v9762_v33 = vld [vmem:[#allocation69_spill] sm:$0xff] }
 0x1eb   : > { %1263 = vrot.lane.b32.xlu2 %v4834_v13, %s5212_s15  ;;  %1261 = vrot.lane.b32.xlu1 %v9758_v44, %s5212_s15  ;;  %v9763_v13 = vld [vmem:[#allocation62_spill] sm:$0xff] }
 0x1ec   : > { %1259 = vrot.lane.b32.xlu0 %v9759_v28, %s5212_s15 }
 0x1ed   : > { %v6194_v21 = vpop.permute.xlu2 %1133  ;;  %v6196_v61 = vpop.permute.xlu1 %1113 }
 0x1ee   : > { %9760 = vst [vmem:[#allocation52_spill] sm:$0xff] %v6194_v21  ;;  %v6198_v1 = vpop.permute.xlu0 %1111  ;;  %v9766_v21 = vld [vmem:[#allocation73_spill] sm:$0xff] }
 0x1f3   : > { %1269 = vrot.lane.b32.xlu2 %v9761_v49, %s5212_s15  ;;  %1267 = vrot.lane.b32.xlu1 %v9762_v33, %s5212_s15  ;;  %v9768_v49 = vld [vmem:[#allocation68_spill] sm:$0xff] }
 0x1f4   : > { %1265 = vrot.lane.b32.xlu0 %v9763_v13, %s5212_s15 }
 0x1f5   : > { %v6206_v27 = vpop.permute.xlu2 %1139  ;;  %v6208_v44 = vpop.permute.xlu1 %1119 }
 0x1f6   : > { %9764 = vst [vmem:[#allocation63_spill] sm:$0xff] %v6206_v27  ;;  %v6210_v28 = vpop.permute.xlu0 %1117 }
 0x1f7   : > { %9765 = vst [vmem:[#allocation57_spill] sm:$0xff] %v6208_v44 }
 0x1fb   : > { %1275 = vrot.lane.b32.xlu2 %v9766_v21, %s5212_s15  ;;  %1273 = vrot.lane.b32.xlu1 %v9767_v63, %s5212_s15  ;;  %v9772_v21 = vld [vmem:[#allocation74_spill] sm:$0xff] }
 0x1fc   : > { %1271 = vrot.lane.b32.xlu0 %v9768_v49, %s5212_s15 }
 0x1fd   : > { %v6218_v33 = vpop.permute.xlu2 %1145  ;;  %v6220_v13 = vpop.permute.xlu1 %1125 }
 0x1fe   : > { %9769 = vst [vmem:[#allocation67_spill] sm:$0xff] %v6218_v33  ;;  %v6222_v18 = vpop.permute.xlu0 %1123  ;;  %v4851_v33 = vld [vmem:[%s5307_s9 + $0x39] sm:$0xff] }
 0x1ff   : > { %9770 = vst [vmem:[#allocation69_spill] sm:$0xff] %v6220_v13  ;;  %v4848_v13 = vld [vmem:[%s5307_s9 + $0x198] sm:$0xff] }
 0x200   : > { %9771 = vst [vmem:[#allocation62_spill] sm:$0xff] %v6222_v18  ;;  %v4862_v18 = vld [vmem:[%s5307_s9 + $0xc1] sm:$0xff] }
 0x203   : > { %1281 = vrot.lane.b32.xlu2 %v5823_v50, %s5212_s15  ;;  %1279 = vrot.lane.b32.xlu1 %v5829_v55, %s5212_s15  ;;  %v9777_v50 = vld [vmem:[#allocation79_spill] sm:$0xff] }
 0x204   : > { %1277 = vrot.lane.b32.xlu0 %v9772_v21, %s5212_s15 }
 0x205   : > { %v6230_v63 = vpop.permute.xlu2 %1151  ;;  %v6232_v49 = vpop.permute.xlu1 %1131 }
 0x206   : > { %9773 = vst [vmem:[#allocation73_spill] sm:$0xff] %v6230_v63  ;;  %v6234_v22 = vpop.permute.xlu0 %1129 }
 0x207   : > { %9774 = vst [vmem:[#allocation75_spill] sm:$0xff] %v6232_v49  ;;  %v4849_v49 = vld [vmem:[%s5307_s9 + $0x1a0] sm:$0xff] }
 0x208   : > { %9775 = vst [vmem:[#allocation68_spill] sm:$0xff] %v6234_v22  ;;  %v4852_v22 = vld [vmem:[%s5307_s9 + $0x49] sm:$0xff] }
 0x20b   : > { %1287 = vrot.lane.b32.xlu2 %v5847_v56, %s5212_s15  ;;  %1285 = vrot.lane.b32.xlu1 %v9776_v54, %s5212_s15  ;;  %v9779_v56 = vld [vmem:[#allocation83_spill] sm:$0xff] }
 0x20c   : > { %1283 = vrot.lane.b32.xlu0 %v9777_v50, %s5212_s15 }
 0x20d   : > { %v6242_v55 = vpop.permute.xlu2 %1157  ;;  %v6244_v21 = vpop.permute.xlu1 %1137 }
 0x20e   : > { %9778 = vst [vmem:[#allocation74_spill] sm:$0xff] %v6242_v55  ;;  %v6246_v63 = vpop.permute.xlu0 %1135 }
 0x213   : > { %1293 = vrot.lane.b32.xlu2 %v4849_v49, %s5212_s15  ;;  %1291 = vrot.lane.b32.xlu1 %v4848_v13, %s5212_s15 }
 0x214   : > { %1289 = vrot.lane.b32.xlu0 %v9779_v56, %s5212_s15 }
 0x215   : > { %v6254_v54 = vpop.permute.xlu2 %1163  ;;  %v6256_v50 = vpop.permute.xlu1 %1143 }
 0x216   : > { %9780 = vst [vmem:[#allocation84_spill] sm:$0xff] %v6254_v54  ;;  %v6258_v55 = vpop.permute.xlu0 %1141  ;;  %v4855_v54 = vld [vmem:[%s5307_s9 + $0x69] sm:$0xff] }
 0x217   : > { %9781 = vst [vmem:[#allocation79_spill] sm:$0xff] %v6256_v50  ;;  %v4859_v50 = vld [vmem:[%s5307_s9 + $0x99] sm:$0xff] }
 0x218   : > { %9782 = vst [vmem:[#allocation83_spill] sm:$0xff] %v6258_v55  ;;  %v4871_v55 = vld [vmem:[%s5307_s9 + $0x129] sm:$0xff] }
 0x21b   : > { %1363 = vrot.lane.b32.xlu2 %v4852_v22, %s5213_s16  ;;  %1361 = vrot.lane.b32.xlu1 %v4851_v33, %s5213_s16 }
 0x21c   : > { %1359 = vrot.lane.b32.xlu0 %v4850_v62, %s5213_s16 }
 0x21d   : > { %v6266_v13 = vpop.permute.xlu2 %1233  ;;  %v6268_v49 = vpop.permute.xlu1 %1149 }
 0x21e   : > { %9783 = vst [vmem:[#allocation127_spill] sm:$0xff] %v6268_v49  ;;  %v6270_v56 = vpop.permute.xlu0 %1147  ;;  %v4858_v49 = vld [vmem:[%s5307_s9 + $0x91] sm:$0xff] }
 0x21f   : > { %9784 = vst [vmem:[#allocation128_spill] sm:$0xff] %v6270_v56  ;;  %v4857_v56 = vld [vmem:[%s5307_s9 + $0x81] sm:$0xff] }
 0x223   : > { %1369 = vrot.lane.b32.xlu2 %v4855_v54, %s5213_s16  ;;  %1367 = vrot.lane.b32.xlu1 %v4854_v46, %s5213_s16 }
 0x224   : > { %1365 = vrot.lane.b32.xlu0 %v4853_v31, %s5213_s16 }
 0x225   : > { %v6278_v22 = vpop.permute.xlu2 %1239  ;;  %v6280_v62 = vpop.permute.xlu1 %1155 }
 0x226   : > { %9785 = vst [vmem:[#allocation129_spill] sm:$0xff] %v6280_v62  ;;  %v6282_v33 = vpop.permute.xlu0 %1153  ;;  %v4861_v62 = vld [vmem:[%s5307_s9 + $0xb1] sm:$0xff] }
 0x227   : > { %9786 = vst [vmem:[#allocation130_spill] sm:$0xff] %v6282_v33  ;;  %v4860_v33 = vld [vmem:[%s5307_s9 + $0xa9] sm:$0xff] }
 0x22b   : > { %1375 = vrot.lane.b32.xlu2 %v4858_v49, %s5213_s16  ;;  %1373 = vrot.lane.b32.xlu1 %v4857_v56, %s5213_s16 }
 0x22c   : > { %1371 = vrot.lane.b32.xlu0 %v4856_v23, %s5213_s16 }
 0x22d   : > { %v6290_v46 = vpop.permute.xlu2 %1245  ;;  %v6292_v31 = vpop.permute.xlu1 %1161 }
 0x22e   : > { %9787 = vst [vmem:[#allocation131_spill] sm:$0xff] %v6292_v31  ;;  %v6294_v54 = vpop.permute.xlu0 %1159  ;;  %v4864_v31 = vld [vmem:[%s5307_s9 + $0xd9] sm:$0xff] }
 0x22f   : > { %9788 = vst [vmem:[#allocation132_spill] sm:$0xff] %v6294_v54  ;;  %v4863_v54 = vld [vmem:[%s5307_s9 + $0xc9] sm:$0xff] }
 0x233   : > { %1381 = vrot.lane.b32.xlu2 %v4861_v62, %s5213_s16  ;;  %1379 = vrot.lane.b32.xlu1 %v4860_v33, %s5213_s16 }
 0x234   : > { %1377 = vrot.lane.b32.xlu0 %v4859_v50, %s5213_s16 }
 0x235   : > { %v6302_v49 = vpop.permute.xlu2 %1251  ;;  %v6304_v23 = vpop.permute.xlu1 %1231 }
 0x236   : > { %9789 = vst [vmem:[#allocation133_spill] sm:$0xff] %v6302_v49  ;;  %v6306_v56 = vpop.permute.xlu0 %1165  ;;  %v4867_v49 = vld [vmem:[%s5307_s9 + $0xf9] sm:$0xff] }
 0x237   : > { %9790 = vst [vmem:[#allocation134_spill] sm:$0xff] %v6306_v56  ;;  %v4866_v56 = vld [vmem:[%s5307_s9 + $0xf1] sm:$0xff] }
 0x23b   : > { %1387 = vrot.lane.b32.xlu2 %v4864_v31, %s5213_s16  ;;  %1385 = vrot.lane.b32.xlu1 %v4863_v54, %s5213_s16 }
 0x23c   : > { %1383 = vrot.lane.b32.xlu0 %v4862_v18, %s5213_s16 }
 0x23d   : > { %v6314_v62 = vpop.permute.xlu2 %1257  ;;  %v6316_v50 = vpop.permute.xlu1 %1237 }
 0x23e   : > { %9791 = vst [vmem:[#allocation135_spill] sm:$0xff] %v6314_v62  ;;  %v6318_v33 = vpop.permute.xlu0 %1235  ;;  %v4870_v62 = vld [vmem:[%s5307_s9 + $0x121] sm:$0xff] }
 0x243   : > { %1393 = vrot.lane.b32.xlu2 %v4867_v49, %s5213_s16  ;;  %1391 = vrot.lane.b32.xlu1 %v4866_v56, %s5213_s16 }
 0x244   : > { %1389 = vrot.lane.b32.xlu0 %v4865_v5, %s5213_s16 }
 0x245   : > { %v6326_v31 = vpop.permute.xlu2 %1263  ;;  %v6328_v18 = vpop.permute.xlu1 %1243 }
 0x246   : > { %v6330_v54 = vpop.permute.xlu0 %1241 }
 0x24b   : > { %1399 = vrot.lane.b32.xlu2 %v4870_v62, %s5213_s16  ;;  %1397 = vrot.lane.b32.xlu1 %v4869_v2, %s5213_s16 }
 0x24c   : > { %1395 = vrot.lane.b32.xlu0 %v4868_v32, %s5213_s16 }
 0x24d   : > { %v6338_v49 = vpop.permute.xlu2 %1269  ;;  %v6340_v5 = vpop.permute.xlu1 %1249 }
 0x24e   : > { %9792 = vst [vmem:[#allocation136_spill] sm:$0xff] %v6338_v49  ;;  %v6342_v56 = vpop.permute.xlu0 %1247  ;;  %v4876_v49 = vld [vmem:[%s5307_s9 + $0x169] sm:$0xff] }
 0x24f   : > { %9793 = vst [vmem:[#allocation137_spill] sm:$0xff] %v6340_v5  ;;  %v4875_v5 = vld [vmem:[%s5307_s9 + $0x159] sm:$0xff] }
 0x250   : > { %9794 = vst [vmem:[#allocation138_spill] sm:$0xff] %v6342_v56  ;;  %v4901_v56 = vld [vmem:[%s5307_s9 + $0x112] sm:$0xff] }
 0x253   : > { %1405 = vrot.lane.b32.xlu2 %v4873_v10, %s5213_s16  ;;  %1403 = vrot.lane.b32.xlu1 %v4872_v60, %s5213_s16 }
 0x254   : > { %1401 = vrot.lane.b32.xlu0 %v4871_v55, %s5213_s16 }
 0x255   : > { %v6350_v2 = vpop.permute.xlu2 %1275  ;;  %v6352_v62 = vpop.permute.xlu1 %1255 }
 0x256   : > { %9795 = vst [vmem:[#allocation139_spill] sm:$0xff] %v6350_v2  ;;  %v6354_v32 = vpop.permute.xlu0 %1253  ;;  %v4884_v2 = vld [vmem:[%s5307_s9 + $0x4a] sm:$0xff] }
 0x257   : > { %9796 = vst [vmem:[#allocation140_spill] sm:$0xff] %v6352_v62  ;;  %v4877_v62 = vld [vmem:[%s5307_s9 + $0x171] sm:$0xff] }
 0x258   : > { %9797 = vst [vmem:[#allocation141_spill] sm:$0xff] %v6354_v32  ;;  %v4883_v32 = vld [vmem:[%s5307_s9 + $0x3a] sm:$0xff] }
 0x25b   : > { %1411 = vrot.lane.b32.xlu2 %v4876_v49, %s5213_s16  ;;  %1409 = vrot.lane.b32.xlu1 %v4875_v5, %s5213_s16 }
 0x25c   : > { %1407 = vrot.lane.b32.xlu0 %v4874_v26, %s5213_s16 }
 0x25d   : > { %v6362_v60 = vpop.permute.xlu2 %1281  ;;  %v6364_v10 = vpop.permute.xlu1 %1261 }
 0x25e   : > { %9798 = vst [vmem:[#allocation142_spill] sm:$0xff] %v6362_v60  ;;  %v6366_v55 = vpop.permute.xlu0 %1259  ;;  %v4881_v60 = vld [vmem:[%s5307_s9 + $0x1a1] sm:$0xff] }
 0x25f   : > { %9799 = vst [vmem:[#allocation143_spill] sm:$0xff] %v6364_v10  ;;  %v4882_v10 = vld [vmem:[%s5307_s9 + $0x32] sm:$0xff] }
 0x260   : > { %9800 = vst [vmem:[#allocation144_spill] sm:$0xff] %v6366_v55  ;;  %v4880_v55 = vld [vmem:[%s5307_s9 + $0x199] sm:$0xff] }
 0x263   : > { %1417 = vrot.lane.b32.xlu2 %v5985_v6, %s5213_s16  ;;  %1415 = vrot.lane.b32.xlu1 %v5988_v36, %s5213_s16 }
 0x264   : > { %1413 = vrot.lane.b32.xlu0 %v4877_v62, %s5213_s16 }
 0x265   : > { %v6374_v49 = vpop.permute.xlu2 %1287  ;;  %v6376_v26 = vpop.permute.xlu1 %1267 }
 0x266   : > { %9801 = vst [vmem:[#allocation145_spill] sm:$0xff] %v6374_v49  ;;  %v6378_v5 = vpop.permute.xlu0 %1265  ;;  %v4885_v49 = vld [vmem:[%s5307_s9 + $0x52] sm:$0xff] }
 0x267   : > { %9802 = vst [vmem:[#allocation146_spill] sm:$0xff] %v6376_v26 }
 0x26b   : > { %1487 = vrot.lane.b32.xlu2 %v4882_v10, %s5214_s17  ;;  %1421 = vrot.lane.b32.xlu1 %v4881_v60, %s5213_s16 }
 0x26c   : > { %1419 = vrot.lane.b32.xlu0 %v4880_v55, %s5213_s16 }
 0x26d   : > { %v6386_v36 = vpop.permute.xlu2 %1293  ;;  %v6388_v6 = vpop.permute.xlu1 %1273 }
 0x26e   : > { %9803 = vst [vmem:[#allocation147_spill] sm:$0xff] %v6386_v36  ;;  %v6390_v62 = vpop.permute.xlu0 %1271  ;;  %v4888_v36 = vld [vmem:[%s5307_s9 + $0x7a] sm:$0xff] }
 0x26f   : > { %9804 = vst [vmem:[#allocation148_spill] sm:$0xff] %v6388_v6  ;;  %v4887_v6 = vld [vmem:[%s5307_s9 + $0x6a] sm:$0xff] }
 0x270   : > { %9805 = vst [vmem:[#allocation149_spill] sm:$0xff] %v6390_v62  ;;  %v4886_v62 = vld [vmem:[%s5307_s9 + $0x62] sm:$0xff] }
 0x273   : > { %1493 = vrot.lane.b32.xlu2 %v4885_v49, %s5214_s17  ;;  %1491 = vrot.lane.b32.xlu1 %v4884_v2, %s5214_s17 }
 0x274   : > { %1489 = vrot.lane.b32.xlu0 %v4883_v32, %s5214_s17 }
 0x275   : > { %v6398_v60 = vpop.permute.xlu2 %1363  ;;  %v6400_v10 = vpop.permute.xlu1 %1279 }
 0x276   : > { %9806 = vst [vmem:[#allocation150_spill] sm:$0xff] %v6400_v10  ;;  %v6402_v55 = vpop.permute.xlu0 %1277  ;;  %v4891_v10 = vld [vmem:[%s5307_s9 + $0x9a] sm:$0xff] }
 0x277   : > { %9807 = vst [vmem:[#allocation151_spill] sm:$0xff] %v6402_v55  ;;  %v4890_v55 = vld [vmem:[%s5307_s9 + $0x92] sm:$0xff] }
 0x27b   : > { %1499 = vrot.lane.b32.xlu2 %v4888_v36, %s5214_s17  ;;  %1497 = vrot.lane.b32.xlu1 %v4887_v6, %s5214_s17 }
 0x27c   : > { %1495 = vrot.lane.b32.xlu0 %v4886_v62, %s5214_s17 }
 0x27d   : > { %v6410_v2 = vpop.permute.xlu2 %1369  ;;  %v6412_v32 = vpop.permute.xlu1 %1285 }
 0x27e   : > { %9808 = vst [vmem:[#allocation152_spill] sm:$0xff] %v6412_v32  ;;  %v6414_v49 = vpop.permute.xlu0 %1283  ;;  %v4894_v32 = vld [vmem:[%s5307_s9 + $0xc2] sm:$0xff] }
 0x27f   : > { %9809 = vst [vmem:[#allocation153_spill] sm:$0xff] %v6414_v49  ;;  %v4893_v49 = vld [vmem:[%s5307_s9 + $0xb2] sm:$0xff] }
 0x283   : > { %1505 = vrot.lane.b32.xlu2 %v4891_v10, %s5214_s17  ;;  %1503 = vrot.lane.b32.xlu1 %v4890_v55, %s5214_s17 }
 0x284   : > { %1501 = vrot.lane.b32.xlu0 %v4889_v40, %s5214_s17 }
 0x285   : > { %v6422_v36 = vpop.permute.xlu2 %1375  ;;  %v6424_v6 = vpop.permute.xlu1 %1291 }
 0x286   : > { %9810 = vst [vmem:[#allocation154_spill] sm:$0xff] %v6422_v36  ;;  %v6426_v62 = vpop.permute.xlu0 %1289 }
 0x287   : > { %9811 = vst [vmem:[#allocation155_spill] sm:$0xff] %v6424_v6  ;;  %v4897_v6 = vld [vmem:[%s5307_s9 + $0xe2] sm:$0xff] }
 0x288   : > { %9812 = vst [vmem:[#allocation156_spill] sm:$0xff] %v6426_v62  ;;  %v4896_v62 = vld [vmem:[%s5307_s9 + $0xda] sm:$0xff] }
 0x28b   : > { %1511 = vrot.lane.b32.xlu2 %v4894_v32, %s5214_s17  ;;  %1509 = vrot.lane.b32.xlu1 %v4893_v49, %s5214_s17 }
 0x28c   : > { %1507 = vrot.lane.b32.xlu0 %v4892_v57, %s5214_s17 }
 0x28d   : > { %v6434_v10 = vpop.permute.xlu2 %1381  ;;  %v6436_v55 = vpop.permute.xlu1 %1361 }
 0x28e   : > { %9813 = vst [vmem:[#allocation157_spill] sm:$0xff] %v6434_v10  ;;  %v6438_v40 = vpop.permute.xlu0 %1359  ;;  %v1854_v10 = vld [vmem:[%s9557_s1 + $0x40] sm:$0xff] }
 0x28f   : > { %1963 = vmatpush.msra.mxu0 %v1854_v10  ;;  %5016 = vmatpush.msra.mxu2 %v1854_v10  ;;  %v1851_v10 = vld [vmem:[%s9557_s1 + $0x28] sm:$0xff] }
 0x291   : > { %1964 = vmatpush.msra.mxu0 %v1853_v19  ;;  %5017 = vmatpush.msra.mxu2 %v1853_v19  ;;  %v1850_v19 = vld [vmem:[%s9557_s1 + $0x20] sm:$0xff] }
 0x293   : > { %1517 = vrot.lane.b32.xlu2 %v4897_v6, %s5214_s17  ;;  %1515 = vrot.lane.b32.xlu1 %v4896_v62, %s5214_s17  ;;  %v4900_v6 = vld [vmem:[%s5307_s9 + $0x10a] sm:$0xff]  ;;  %v4899_v62 = vld [vmem:[%s5307_s9 + $0xfa] sm:$0xff] }
 0x294   : > { %1513 = vrot.lane.b32.xlu0 %v4895_v20, %s5214_s17  ;;  %v1852_v20 = vld [vmem:[%s9557_s1 + $0x30] sm:$0xff] }
 0x295   : > { %v6446_v32 = vpop.permute.xlu2 %1387  ;;  %v6448_v57 = vpop.permute.xlu1 %1367  ;;  %1965 = vmatpush.msra.mxu0 %v1852_v20  ;;  %5018 = vmatpush.msra.mxu2 %v1852_v20  ;;  %v1848_v20 = vld [vmem:[%s9557_s1 + $0x10] sm:$0xff] }
 0x296   : > { %9814 = vst [vmem:[#allocation158_spill] sm:$0xff] %v6446_v32  ;;  %v6450_v49 = vpop.permute.xlu0 %1365 }
 0x297   : > { %1966 = vmatpush.msra.mxu0 %v1851_v10  ;;  %5019 = vmatpush.msra.mxu2 %v1851_v10  ;;  %v1847_v10 = vld [vmem:[%s9557_s1 + $0x8] sm:$0xff] }
 0x299   : > { %1967 = vmatpush.msra.mxu0 %v1850_v19  ;;  %5020 = vmatpush.msra.mxu2 %v1850_v19  ;;  %v1846_v19 = vld [vmem:[%s9557_s1] sm:$0xff] }
 0x29b   : > { %1523 = vrot.lane.b32.xlu2 %v4900_v6, %s5214_s17  ;;  %1521 = vrot.lane.b32.xlu1 %v4899_v62, %s5214_s17  ;;  %v4903_v6 = vld [vmem:[%s5307_s9 + $0x12a] sm:$0xff]  ;;  %v4902_v62 = vld [vmem:[%s5307_s9 + $0x122] sm:$0xff] }
 0x29c   : > { %1519 = vrot.lane.b32.xlu0 %v4898_v35, %s5214_s17  ;;  %v1849_v35 = vld [vmem:[%s9557_s1 + $0x18] sm:$0xff] }
 0x29d   : > { %v6470_v32 = vpop.permute.xlu2 %1393  ;;  %v6472_v36 = vpop.permute.xlu1 %1373  ;;  %1968 = vmatpush.msra.mxu0 %v1849_v35  ;;  %5021 = vmatpush.msra.mxu2 %v1849_v35 }
 0x29e   : > { %v6474_v26 = vpop.permute.xlu0 %1371 }
 0x29f   : > { %1969 = vmatpush.msra.mxu0 %v1848_v20  ;;  %5022 = vmatpush.msra.mxu2 %v1848_v20  ;;  %v4909_v20 = vld [vmem:[%s5307_s9 + $0x172] sm:$0xff] }
 0x2a1   : > { %1970 = vmatpush.msra.mxu0 %v1847_v10  ;;  %5023 = vmatpush.msra.mxu2 %v1847_v10 }
 0x2a3   : > { %1529 = vrot.lane.b32.xlu2 %v4903_v6, %s5214_s17  ;;  %1527 = vrot.lane.b32.xlu1 %v4902_v62, %s5214_s17  ;;  %v4905_v6 = vld [vmem:[%s5307_s9 + $0x142] sm:$0xff]  ;;  %v4904_v62 = vld [vmem:[%s5307_s9 + $0x13a] sm:$0xff] }
 0x2a4   : > { %1525 = vrot.lane.b32.xlu0 %v4901_v56, %s5214_s17  ;;  %v4906_v56 = vld [vmem:[%s5307_s9 + $0x152] sm:$0xff]  ;;  %1971 = vmatpush.msra.mxu0 %v1846_v19 }
 0x2a5   : > { %v6494_v44 = vpop.permute.xlu2 %1399  ;;  %v6496_v27 = vpop.permute.xlu1 %1379  ;;  %5024 = vmatpush.msra.mxu2 %v1846_v19 }
 0x2a6   : > { %9815 = vst [vmem:[#allocation159_spill] sm:$0xff] %v6494_v44  ;;  %v6498_v43 = vpop.permute.xlu0 %1377 }
 0x2a7   : > { %9816 = vst [vmem:[#allocation160_spill] sm:$0xff] %v6496_v27 }
 0x2a8   : > { %9817 = vst [vmem:[#allocation161_spill] sm:$0xff] %v6498_v43  ;;  %v4908_v43 = vld [vmem:[%s5307_s9 + $0x16a] sm:$0xff] }
 0x2ab   : > { %1535 = vrot.lane.b32.xlu2 %v4906_v56, %s5214_s17  ;;  %1533 = vrot.lane.b32.xlu1 %v4905_v6, %s5214_s17  ;;  %v4912_v6 = vld [vmem:[%s5307_s9 + $0x19a] sm:$0xff] }
 0x2ac   : > { %1531 = vrot.lane.b32.xlu0 %v4904_v62, %s5214_s17  ;;  %v269_v62 = vld [vmem:[%s5307_s9] sm:$0xff] }
 0x2ad   : > { %v6509_v35 = vpop.permute.xlu2 %1405  ;;  %v6511_v27 = vpop.permute.xlu1 %1385 }
 0x2ae   : > { %9818 = vst [vmem:[#allocation162_spill] sm:$0xff] %v6509_v35  ;;  %v6513_v44 = vpop.permute.xlu0 %1383 }
 0x2af   : > { %9819 = vst [vmem:[#allocation163_spill] sm:$0xff] %v6511_v27  ;;  %v9824_v27 = vld [vmem:[#allocation35_spill] sm:$0xff] }
 0x2b3   : > { %1541 = vrot.lane.b32.xlu2 %v4909_v20, %s5214_s17  ;;  %1539 = vrot.lane.b32.xlu1 %v4908_v43, %s5214_s17 }
 0x2b4   : > { %1537 = vrot.lane.b32.xlu0 %v4907_v42, %s5214_s17 }
 0x2b5   : > { %v6521_v10 = vpop.permute.xlu2 %1411  ;;  %v6523_v56 = vpop.permute.xlu1 %1391 }
 0x2b6   : > { %9820 = vst [vmem:[#allocation164_spill] sm:$0xff] %v6521_v10  ;;  %v6525_v19 = vpop.permute.xlu0 %1389  ;;  %v9823_v10 = vld [vmem:[#allocation11_spill] sm:$0xff] }
 0x2b7   : > { %9821 = vst [vmem:[#allocation165_spill] sm:$0xff] %v6525_v19  ;;  %v1583_v19 = vsel %vm223_vm0, %v269_v62, %v9823_v10 }
 0x2bb   : > { %1547 = vrot.lane.b32.xlu2 %v4912_v6, %s5214_s17  ;;  %1545 = vrot.lane.b32.xlu1 %v6128_v37, %s5214_s17  ;;  %v1616_v6 = vsel %vm1615_vm1, %v1583_v19, %v9824_v27 }
 0x2bc   : > { %1543 = vrot.lane.b32.xlu0 %v6111_v3, %s5214_s17  ;;  %v1649_v37 = vsel %vm1648_vm2, %v1616_v6, %v5908_v11  ;;  %v4913_v3 = vld [vmem:[%s5307_s9 + $0x1a2] sm:$0xff] }
 0x2bd   : > { %v6534_v42 = vpop.permute.xlu2 %1417  ;;  %v6536_v43 = vpop.permute.xlu1 %1397  ;;  %v270_v6 = vld [vmem:[%s5307_s9 + $0x8] sm:$0xff] }
 0x2be   : > { %9822 = vst [vmem:[#allocation166_spill] sm:$0xff] %v6534_v42  ;;  %v6538_v20 = vpop.permute.xlu0 %1395  ;;  %v1682_v42 = vsel %vm1681_vm4, %v1649_v37, %v6048_v41 }
 0x2bf   : > { %v1715_v35 = vsel %vm1714_vm3, %v1682_v42, %v6134_v39 }
 0x2c0   : > { %v1748_v10 = vsel %vm1747_vm5, %v1715_v35, %v6304_v23 }
 0x2c1   : > { %v1781_v11 = vsel %vm1780_vm7, %v1748_v10, %v6438_v40 }
 0x2c4   : > { %1549 = vrot.lane.b32.xlu0 %v4913_v3, %s5214_s17  ;;  %v9830_v3 = vld [vmem:[#allocation14_spill] sm:$0xff] }
 0x2c5   : > { %v1488_v27 = vpop.permute.xlu2 %1487  ;;  %v6556_v19 = vpop.permute.xlu1 %1403  ;;  %v1584_v10 = vsel %vm223_vm0, %v270_v6, %v9830_v3 }
 0x2c6   : > { %v6558_v41 = vpop.permute.xlu0 %1401  ;;  %v1814_v39 = vsel %vm1813_vm6, %v1781_v11, %v1488_v27  ;;  %v9831_v11 = vld [vmem:[#allocation56_spill] sm:$0xff] }
 0x2c7   : > { %4914 = vmatmul.msk.f32.vlgmr.msra.gmra.mxu0 %vm1859_vm8, %v1814_v39  ;;  %v1617_v27 = vsel %vm1615_vm1, %v1584_v10, %v9831_v11  ;;  %v5093_v10 = vld [vmem:[%s5307_s9 + $0x18] sm:$0xff]  ;;  %v9832_v11 = vld [vmem:[#allocation10_spill] sm:$0xff] }
 0x2c8   : > { %v1650_v39 = vsel %vm1648_vm2, %v1617_v27, %v5870_v30  ;;  %v1585_v30 = vsel %vm223_vm0, %v5093_v10, %v9832_v11 }
 0x2cd   : > { %v6562_v62 = vpop.permute.xlu1 %1409 }
 0x2ce   : > { %9825 = vst [vmem:[#allocation11_spill] sm:$0xff] %v6562_v62  ;;  %v6564_v42 = vpop.permute.xlu0 %1407  ;;  %v1683_v62 = vsel %vm1681_vm4, %v1650_v39, %v6046_v47  ;;  %v9833_v47 = vld [vmem:[#allocation55_spill] sm:$0xff] }
 0x2d5   : > { %v6566_v23 = vpop.permute.xlu1 %1415 }
 0x2d6   : > { %9826 = vst [vmem:[#allocation35_spill] sm:$0xff] %v6566_v23  ;;  %v6568_v35 = vpop.permute.xlu0 %1413  ;;  %v1716_v23 = vsel %vm1714_vm3, %v1683_v62, %v6186_v8  ;;  %v1618_v8 = vsel %vm1615_vm1, %v1585_v30, %v9833_v47  ;;  %v1494_v62 = vpop.permute.xlu2 %1493 }
 0x2d7   : > { %9827 = vst [vmem:[#allocation167_spill] sm:$0xff] %v6568_v35 }
 0x2dd   : > { %v6571_v40 = vpop.permute.xlu1 %1421 }
 0x2de   : > { %9828 = vst [vmem:[#allocation168_spill] sm:$0xff] %v6571_v40  ;;  %v6573_v37 = vpop.permute.xlu0 %1419  ;;  %v1749_v40 = vsel %vm1747_vm5, %v1716_v23, %v6266_v13  ;;  %v1651_v13 = vsel %vm1648_vm2, %v1618_v8, %v5922_v9  ;;  %v9834_v9 = vld [vmem:[#allocation13_spill] sm:$0xff]  ;;  %v1500_v30 = vpop.permute.xlu2 %1499 }
 0x2df   : > { %9829 = vst [vmem:[#allocation169_spill] sm:$0xff] %v6573_v37  ;;  %v1782_v37 = vsel %vm1780_vm7, %v1749_v40, %v6436_v55  ;;  %v1684_v55 = vsel %vm1681_vm4, %v1651_v13, %v6008_v34  ;;  %v9835_v34 = vld [vmem:[#allocation39_spill] sm:$0xff] }
 0x2e0   : > { %v1717_v23 = vsel %vm1714_vm3, %v1684_v55, %v6184_v52  ;;  %v5095_v55 = vld [vmem:[%s5307_s9 + $0x30] sm:$0xff] }
 0x2e1   : > { %v1750_v40 = vsel %vm1747_vm5, %v1717_v23, %v6318_v33  ;;  %v9836_v23 = vld [vmem:[#allocation6_spill] sm:$0xff] }
 0x2e2   : > { %v1783_v27 = vsel %vm1780_vm7, %v1750_v40, %v6398_v60 }
 0x2e5   : > { %v1492_v35 = vpop.permute.xlu1 %1491 }
 0x2e6   : > { %v1490_v6 = vpop.permute.xlu0 %1489 }
 0x2e7   : > { %v1815_v3 = vsel %vm1813_vm6, %v1782_v37, %v1490_v6  ;;  %v1816_v6 = vsel %vm1813_vm6, %v1783_v27, %v1492_v35 }
 0x2e8   : > { %4915 = vmatmul.msk.f32.gmra.mxu0 %vm1859_vm8, %v1815_v3  ;;  %v5094_v3 = vld [vmem:[%s5307_s9 + $0x20] sm:$0xff] }
 0x2e9   : > { %v1586_v10 = vsel %vm223_vm0, %v5094_v3, %v9834_v9  ;;  %v6644_v3 = vpop.permute.xlu2 %1505 }
 0x2ea   : > { %v1619_v52 = vsel %vm1615_vm1, %v1586_v10, %v9835_v34  ;;  %v5096_v10 = vld [vmem:[%s5307_s9 + $0x38] sm:$0xff] }
 0x2eb   : > { %v1652_v33 = vsel %vm1648_vm2, %v1619_v52, %v5920_v14  ;;  %v9838_v34 = vld [vmem:[#allocation7_spill] sm:$0xff] }
 0x2ec   : > { %v1685_v11 = vsel %vm1681_vm4, %v1652_v33, %v6060_v45  ;;  %v1587_v45 = vsel %vm223_vm0, %v5095_v55, %v9836_v23  ;;  %v9840_v55 = vld [vmem:[#allocation17_spill] sm:$0xff]  ;;  %v5098_v23 = vld [vmem:[%s5307_s9 + $0xc0] sm:$0xff] }
 0x2ed   : > { %v1498_v37 = vpop.permute.xlu1 %1497  ;;  %v1718_v60 = vsel %vm1714_vm3, %v1685_v11, %v6146_v4  ;;  %v9837_v4 = vld [vmem:[#allocation61_spill] sm:$0xff] }
 0x2ee   : > { %v1496_v39 = vpop.permute.xlu0 %1495  ;;  %v1751_v35 = vsel %vm1747_vm5, %v1718_v60, %v6316_v50  ;;  %v1620_v40 = vsel %vm1615_vm1, %v1587_v45, %v9837_v4  ;;  %v9841_v45 = vld [vmem:[#allocation26_spill] sm:$0xff] }
 0x2ef   : > { %v1784_v47 = vsel %vm1780_vm7, %v1751_v35, %v6450_v49  ;;  %v1653_v50 = vsel %vm1648_vm2, %v1620_v40, %v5882_v0 }
 0x2f0   : > { %4916 = vmatmul.msk.f32.gmra.mxu0 %vm1859_vm8, %v1816_v6  ;;  %v1817_v14 = vsel %vm1813_vm6, %v1784_v47, %v1494_v62  ;;  %v1686_v49 = vsel %vm1681_vm4, %v1653_v50, %v6058_v53  ;;  %v1588_v53 = vsel %vm223_vm0, %v5096_v10, %v9838_v34 }
 0x2f1   : > { %v1719_v27 = vsel %vm1714_vm3, %v1686_v49, %v6198_v1  ;;  %v9839_v1 = vld [vmem:[#allocation60_spill] sm:$0xff]  ;;  %v6676_v4 = vpop.permute.xlu2 %1511 }
 0x2f2   : > { %v1752_v62 = vsel %vm1747_vm5, %v1719_v27, %v6278_v22  ;;  %v1621_v22 = vsel %vm1615_vm1, %v1588_v53, %v9839_v1  ;;  %v5099_v53 = vld [vmem:[%s5307_s9 + $0xc8] sm:$0xff]  ;;  %v9844_v1 = vld [vmem:[#allocation15_spill] sm:$0xff] }
 0x2f3   : > { %v1785_v6 = vsel %vm1780_vm7, %v1752_v62, %v6448_v57  ;;  %v1654_v57 = vsel %vm1648_vm2, %v1621_v22, %v5934_v12  ;;  %v5100_v22 = vld [vmem:[%s5307_s9 + $0x50] sm:$0xff] }
 0x2f4   : > { %v1818_v0 = vsel %vm1813_vm6, %v1785_v6, %v1496_v39  ;;  %v1687_v33 = vsel %vm1681_vm4, %v1654_v57, %v6020_v38  ;;  %v1599_v38 = vsel %vm223_vm0, %v5098_v23, %v9841_v45  ;;  %v5101_v45 = vld [vmem:[%s5307_s9 + $0x60] sm:$0xff] }
 0x2f5   : > { %v6623_v8 = vpop.permute.xlu1 %1503  ;;  %v1720_v39 = vsel %vm1714_vm3, %v1687_v33, %v6196_v61  ;;  %v9842_v61 = vld [vmem:[#allocation44_spill] sm:$0xff] }
 0x2f6   : > { %v6625_v13 = vpop.permute.xlu0 %1501  ;;  %v1753_v11 = vsel %vm1747_vm5, %v1720_v39, %v6330_v54 }
 0x2f7   : > { %v1786_v60 = vsel %vm1780_vm7, %v1753_v11, %v6410_v2  ;;  %v9843_v2 = vld [vmem:[#allocation82_spill] sm:$0xff] }
 0x2f8   : > { %4917 = vmatmul.msk.f32.gmra.mxu0 %vm1859_vm8, %v1817_v14  ;;  %v1819_v47 = vsel %vm1813_vm6, %v1786_v60, %v1498_v37  ;;  %v5097_v14 = vld [vmem:[%s5307_s9 + $0x48] sm:$0xff]  ;;  %v1632_v40 = vsel %vm1615_vm1, %v1599_v38, %v9843_v2 }
 0x2f9   : > { %v1589_v12 = vsel %vm223_vm0, %v5097_v14, %v9840_v55  ;;  %v1665_v37 = vsel %vm1648_vm2, %v1632_v40, %v5930_v16  ;;  %v6723_v11 = vpop.permute.xlu2 %1517 }
 0x2fa   : > { %v1622_v54 = vsel %vm1615_vm1, %v1589_v12, %v9842_v61  ;;  %v1698_v62 = vsel %vm1681_vm4, %v1665_v37, %v6106_v48  ;;  %v5102_v61 = vld [vmem:[%s5307_s9 + $0xd8] sm:$0xff]  ;;  %v9852_v37 = vld [vmem:[#allocation113_spill] sm:$0xff] }
 0x2fb   : > { %v1655_v50 = vsel %vm1648_vm2, %v1622_v54, %v5932_v17 }
 0x2fc   : > { %v1688_v27 = vsel %vm1681_vm4, %v1655_v50, %v6072_v51 }
 0x2fd   : > { %v6652_v52 = vpop.permute.xlu1 %1509  ;;  %v1721_v6 = vsel %vm1714_vm3, %v1688_v27, %v6158_v25  ;;  %v9853_v27 = vld [vmem:[#allocation28_spill] sm:$0xff] }
 0x2fe   : > { %v6646_v9 = vpop.permute.xlu0 %1507  ;;  %v1754_v17 = vsel %vm1747_vm5, %v1721_v6, %v6328_v18  ;;  %v9846_v18 = vld [vmem:[#allocation66_spill] sm:$0xff]  ;;  %v9854_v6 = vld [vmem:[#allocation63_spill] sm:$0xff] }
 0x2ff   : > { %v1787_v10 = vsel %vm1780_vm7, %v1754_v17, %v6474_v26 }
 0x300   : > { %4918 = vmatmul.msk.f32.gmra.mxu0 %vm1859_vm8, %v1818_v0  ;;  %v1731_v0 = vsel %vm1714_vm3, %v1698_v62, %v6246_v63  ;;  %v1820_v48 = vsel %vm1813_vm6, %v1787_v10, %v1500_v30  ;;  %v1600_v63 = vsel %vm223_vm0, %v5099_v53, %v9844_v1 }
 0x301   : > { %v1764_v16 = vsel %vm1747_vm5, %v1731_v0, %v6326_v31  ;;  %v9845_v31 = vld [vmem:[#allocation16_spill] sm:$0xff]  ;;  %v1524_v10 = vpop.permute.xlu2 %1523 }
 0x302   : > { %v1797_v51 = vsel %vm1780_vm7, %v1764_v16, %v6523_v56  ;;  %v1590_v57 = vsel %vm223_vm0, %v5100_v22, %v9845_v31  ;;  %v9847_v56 = vld [vmem:[#allocation81_spill] sm:$0xff]  ;;  %v9859_v31 = vld [vmem:[#allocation20_spill] sm:$0xff] }
 0x303   : > { %v1623_v26 = vsel %vm1615_vm1, %v1590_v57, %v9846_v18  ;;  %v1633_v30 = vsel %vm1615_vm1, %v1600_v63, %v9847_v56  ;;  %v9855_v16 = vld [vmem:[#allocation57_spill] sm:$0xff]  ;;  %v5104_v18 = vld [vmem:[%s5307_s9 + $0xe0] sm:$0xff] }
 0x304   : > { %v1656_v33 = vsel %vm1648_vm2, %v1623_v26, %v5894_v7  ;;  %v1666_v39 = vsel %vm1648_vm2, %v1633_v30, %v5982_v24  ;;  %v5103_v22 = vld [vmem:[%s5307_s9 + $0x68] sm:$0xff]  ;;  %v9860_v26 = vld [vmem:[#allocation32_spill] sm:$0xff] }
 0x305   : > { %v6687_v49 = vpop.permute.xlu1 %1515  ;;  %v1699_v60 = vsel %vm1681_vm4, %v1666_v39, %v6068_v58  ;;  %v1592_v57 = vsel %vm223_vm0, %v5103_v22, %v9859_v31  ;;  %v1602_v56 = vsel %vm223_vm0, %v5104_v18, %v9860_v26  ;;  %v9861_v30 = vld [vmem:[#allocation49_spill] sm:$0xff] }
 0x306   : > { %v6667_v35 = vpop.permute.xlu0 %1513  ;;  %v1732_v55 = vsel %vm1714_vm3, %v1699_v60, %v6244_v21  ;;  %v9848_v21 = vld [vmem:[#allocation8_spill] sm:$0xff]  ;;  %v9863_v39 = vld [vmem:[#allocation97_spill] sm:$0xff] }
 0x307   : > { %v1765_v24 = vsel %vm1747_vm5, %v1732_v55, %v6378_v5  ;;  %v1591_v38 = vsel %vm223_vm0, %v5101_v45, %v9848_v21  ;;  %v9850_v5 = vld [vmem:[#allocation64_spill] sm:$0xff]  ;;  %v9883_v26 = vld [vmem:[#allocation149_spill] sm:$0xff] }
 0x308   : > { %4919 = vmatmul.msk.f32.gmra.mxu0 %vm1859_vm8, %v1819_v47  ;;  %v1689_v47 = vsel %vm1681_vm4, %v1656_v33, %v6070_v59  ;;  %v1798_v23 = vsel %vm1780_vm7, %v1765_v24, %v6470_v32  ;;  %v9851_v32 = vld [vmem:[#allocation65_spill] sm:$0xff]  ;;  %v9862_v33 = vld [vmem:[#allocation87_spill] sm:$0xff]  ;;  %v9865_v55 = vld [vmem:[#allocation120_spill] sm:$0xff] }
 0x309   : > { %v1722_v14 = vsel %vm1714_vm3, %v1689_v47, %v6210_v28  ;;  %v9864_v47 = vld [vmem:[#allocation98_spill] sm:$0xff]  ;;  %v9869_v21 = vld [vmem:[#allocation136_spill] sm:$0xff] }
 0x30a   : > { %v1755_v7 = vsel %vm1747_vm5, %v1722_v14, %v6290_v46  ;;  %v9849_v46 = vld [vmem:[#allocation33_spill] sm:$0xff] }
 0x30b   : > { %v1788_v58 = vsel %vm1780_vm7, %v1755_v7, %v6472_v36  ;;  %v1601_v54 = vsel %vm223_vm0, %v5102_v61, %v9849_v46  ;;  %v9866_v7 = vld [vmem:[#allocation34_spill] sm:$0xff]  ;;  %v9870_v61 = vld [vmem:[#allocation137_spill] sm:$0xff] }
 0x30c   : > { %v1821_v59 = vsel %vm1813_vm6, %v1788_v58, %v6625_v13  ;;  %v1634_v36 = vsel %vm1615_vm1, %v1601_v54, %v9850_v5  ;;  %v1624_v13 = vsel %vm1615_vm1, %v1591_v38, %v9851_v32  ;;  %v9871_v54 = vld [vmem:[#allocation161_spill] sm:$0xff] }
 0x30d   : > { %v1522_v12 = vpop.permute.xlu1 %1521  ;;  %v1657_v2 = vsel %vm1648_vm2, %v1624_v13, %v5946_v15  ;;  %v1667_v40 = vsel %vm1648_vm2, %v1634_v36, %v5980_v29  ;;  %v9857_v15 = vld [vmem:[#allocation146_spill] sm:$0xff] }
 0x30e   : > { %v1520_v34 = vpop.permute.xlu0 %1519  ;;  %v1831_v28 = vsel %vm1813_vm6, %v1798_v23, %v1522_v12  ;;  %v1690_v50 = vsel %vm1681_vm4, %v1657_v2, %v9852_v37  ;;  %v1700_v62 = vsel %vm1681_vm4, %v1667_v40, %v9853_v27  ;;  %v9858_v29 = vld [vmem:[#allocation154_spill] sm:$0xff]  ;;  %v9867_v23 = vld [vmem:[#allocation53_spill] sm:$0xff]  ;;  %v9873_v27 = vld [vmem:[#allocation19_spill] sm:$0xff] }
 0x30f   : > { %v1830_v25 = vsel %vm1813_vm6, %v1797_v51, %v1520_v34  ;;  %v1733_v0 = vsel %vm1714_vm3, %v1700_v62, %v9854_v6  ;;  %v1723_v17 = vsel %vm1714_vm3, %v1690_v50, %v9855_v16  ;;  %v9856_v51 = vld [vmem:[#allocation138_spill] sm:$0xff]  ;;  %v5106_v50 = vld [vmem:[%s5307_s9 + $0x78] sm:$0xff]  ;;  %v9874_v6 = vld [vmem:[#allocation72_spill] sm:$0xff] }
 0x310   : > { %4920 = vmatmul.msk.f32.gmra.mxu0 %vm1859_vm8, %v1820_v48  ;;  %4930 = vmatmul.msk.f32.vlgmr.msra.gmra.mxu2 %vm1859_vm8, %v1830_v25  ;;  %v1756_v34 = vsel %vm1747_vm5, %v1723_v17, %v9856_v51  ;;  %v1766_v48 = vsel %vm1747_vm5, %v1733_v0, %v9857_v15  ;;  %v5105_v2 = vld [vmem:[%s5307_s9 + $0xf0] sm:$0xff]  ;;  %v1593_v62 = vsel %vm223_vm0, %v5106_v50, %v9873_v27  ;;  %v9897_v27 = vld [vmem:[#allocation148_spill] sm:$0xff] }
 0x311   : > { %v1789_v25 = vsel %vm1780_vm7, %v1756_v34, %v9858_v29  ;;  %v1799_v53 = vsel %vm1780_vm7, %v1766_v48, %v6538_v20  ;;  %v1625_v20 = vsel %vm1615_vm1, %v1592_v57, %v9861_v30  ;;  %v9872_v40 = vld [vmem:[#allocation18_spill] sm:$0xff]  ;;  %v5215_v34 = vmov 0.0   ;;  %v9879_v29 = vld [vmem:[#allocation119_spill] sm:$0xff]  ;;  %v9882_v57 = vld [vmem:[#allocation133_spill] sm:$0xff] }
 0x312   : > { %v1822_v1 = vsel %vm1813_vm6, %v1789_v25, %v6623_v8  ;;  %v1832_v63 = vsel %vm1813_vm6, %v1799_v53, %v1524_v10  ;;  %v1635_v8 = vsel %vm1615_vm1, %v1602_v56, %v9862_v33  ;;  %v1658_v14 = vsel %vm1648_vm2, %v1625_v20, %v9864_v47  ;;  %v9875_v0 = vld [vmem:[#allocation86_spill] sm:$0xff]  ;;  %v9877_v10 = vld [vmem:[#allocation108_spill] sm:$0xff]  ;;  %224 = vst.msk [vmem:[#allocation2] sm:$0xff] %vm223_vm0, %v5215_v34  ;;  %v9884_v30 = vld [vmem:[#allocation159_spill] sm:$0xff] }
 0x313   : > { %v1668_v60 = vsel %vm1648_vm2, %v1635_v8, %v9863_v39  ;;  %v1691_v12 = vsel %vm1681_vm4, %v1658_v14, %v9865_v55  ;;  %v1603_v37 = vsel %vm223_vm0, %v5105_v2, %v9872_v40  ;;  %v9876_v16 = vld [vmem:[#allocation94_spill] sm:$0xff]  ;;  %225 = vst.msk [vmem:[#allocation2 + $0x8] sm:$0xff] %vm223_vm0, %v5215_v34  ;;  %v9885_v33 = vld [vmem:[#allocation160_spill] sm:$0xff]  ;;  %v9886_v14 = vld [vmem:[#allocation9_spill] sm:$0xff]  ;;  %v1530_v40 = vpop.permute.xlu2 %1529 }
 0x314   : > { %v1701_v24 = vsel %vm1681_vm4, %v1668_v60, %v9866_v7  ;;  %v1724_v58 = vsel %vm1714_vm3, %v1691_v12, %v9867_v23  ;;  %v9878_v15 = vld [vmem:[#allocation118_spill] sm:$0xff]  ;;  %229 = vst.msk [vmem:[#allocation2 + $0x198] sm:$0xff] %vm223_vm0, %v5215_v34  ;;  %v5107_v47 = vld [vmem:[%s5307_s9 + $0x80] sm:$0xff]  ;;  %v5108_v12 = vld [vmem:[%s5307_s9 + $0xf8] sm:$0xff] }
 0x315   : > { %v1757_v46 = vsel %vm1747_vm5, %v1724_v58, %v9870_v61  ;;  %v9880_v53 = vld [vmem:[#allocation62_spill] sm:$0xff]  ;;  %v1528_v31 = vpop.permute.xlu1 %1527  ;;  %230 = vst.msk [vmem:[#allocation2 + $0x1a0] sm:$0xff] %vm223_vm0, %v5215_v34  ;;  %v1594_v55 = vsel %vm223_vm0, %v5107_v47, %v9886_v14  ;;  %v9887_v7 = vld [vmem:[#allocation37_spill] sm:$0xff]  ;;  %v9889_v58 = vld [vmem:[#allocation71_spill] sm:$0xff] }
 0x316   : > { %v1526_v45 = vpop.permute.xlu0 %1525  ;;  %v1790_v5 = vsel %vm1780_vm7, %v1757_v46, %v9871_v54  ;;  %234 = vst.msk [vmem:[#allocation2 + $0x18] sm:$0x1] %vm232_vm9, %v5215_v34  ;;  %v9892_v61 = vld [vmem:[#allocation116_spill] sm:$0xff]  ;;  %v9893_v54 = vld [vmem:[#allocation125_spill] sm:$0xff] }
 0x317   : > { %v1823_v32 = vsel %vm1813_vm6, %v1790_v5, %v6644_v3  ;;  %v1636_v3 = vsel %vm1615_vm1, %v1603_v37, %v9875_v0  ;;  %233 = vst.msk [vmem:[#allocation2] sm:$0x1] %vm232_vm9, %v5215_v34  ;;  %v9896_v37 = vld [vmem:[#allocation141_spill] sm:$0xff]  ;;  %v9910_v14 = vld [vmem:[#allocation140_spill] sm:$0xff] }
 0x318   : > { %4921 = vmatmul.msk.f32.gmra.mxu0 %vm1859_vm8, %v1821_v59  ;;  %4931 = vmatmul.msk.f32.gmra.mxu2 %vm1859_vm8, %v1831_v28  ;;  %v9868_v59 = vld [vmem:[#allocation83_spill] sm:$0xff]  ;;  %v1669_v51 = vsel %vm1648_vm2, %v1636_v3, %v9877_v10  ;;  %235 = vst.msk [vmem:[#allocation2 + $0x30] sm:$0x1] %vm232_vm9, %v5215_v34 }
 0x319   : > { %v1734_v28 = vsel %vm1714_vm3, %v1701_v24, %v9868_v59  ;;  %v1702_v48 = vsel %vm1681_vm4, %v1669_v51, %v9878_v15  ;;  %v1604_v24 = vsel %vm223_vm0, %v5108_v12, %v9887_v7  ;;  %v1627_v59 = vsel %vm1615_vm1, %v1594_v55, %v9889_v58  ;;  %236 = vst.msk [vmem:[#allocation2 + $0x48] sm:$0x1] %vm232_vm9, %v5215_v34  ;;  %v9899_v10 = vld [vmem:[#allocation23_spill] sm:$0xff]  ;;  %v5110_v15 = vld [vmem:[%s5307_s9 + $0x108] sm:$0xff] }
 0x31a   : > { %v1767_v38 = vsel %vm1747_vm5, %v1734_v28, %v9869_v21  ;;  %v9890_v28 = vld [vmem:[#allocation101_spill] sm:$0xff]  ;;  %v9891_v21 = vld [vmem:[#allocation107_spill] sm:$0xff]  ;;  %237 = vst.msk [vmem:[#allocation2 + $0x60] sm:$0x1] %vm232_vm9, %v5215_v34 }
 0x31b   : > { %v1800_v36 = vsel %vm1780_vm7, %v1767_v38, %v6536_v43  ;;  %v1626_v43 = vsel %vm1615_vm1, %v1593_v62, %v9874_v6  ;;  %238 = vst.msk [vmem:[#allocation2 + $0x78] sm:$0x1] %vm232_vm9, %v5215_v34  ;;  %v9898_v6 = vld [vmem:[#allocation157_spill] sm:$0xff] }
 0x31c   : > { %v1833_v13 = vsel %vm1813_vm6, %v1800_v36, %v1526_v45  ;;  %v1659_v17 = vsel %vm1648_vm2, %v1626_v43, %v9876_v16  ;;  %v1660_v45 = vsel %vm1648_vm2, %v1627_v59, %v9890_v28  ;;  %v9894_v36 = vld [vmem:[#allocation67_spill] sm:$0xff]  ;;  %239 = vst.msk [vmem:[#allocation2 + $0x90] sm:$0x1] %vm232_vm9, %v5215_v34  ;;  %v9911_v58 = vld [vmem:[#allocation21_spill] sm:$0xff] }
 0x31d   : > { %v1692_v25 = vsel %vm1681_vm4, %v1659_v17, %v9879_v29  ;;  %v1693_v46 = vsel %vm1681_vm4, %v1660_v45, %v9892_v61  ;;  %240 = vst.msk [vmem:[#allocation2 + $0xa8] sm:$0x1] %vm232_vm9, %v5215_v34  ;;  %v5109_v17 = vld [vmem:[%s5307_s9 + $0x90] sm:$0xff]  ;;  %v5112_v28 = vld [vmem:[%s5307_s9 + $0x98] sm:$0xff]  ;;  %v6980_v61 = vld [vmem:[%s9558_s2] ss:$0 sm:$0xff] }
 0x31e   : > { %241 = vst.msk [vmem:[#allocation2 + $0xc0] sm:$0x1] %vm232_vm9, %v5215_v34  ;;  %v1595_v51 = vsel %vm223_vm0, %v5109_v17, %v9899_v10 }
 0x31f   : > { %242 = vst.msk [vmem:[#allocation2 + $0xd8] sm:$0x1] %vm232_vm9, %v5215_v34 }
 0x320   : > { %4922 = vmatmul.msk.f32.gmra.mxu0 %vm1859_vm8, %v1822_v1  ;;  %4932 = vmatmul.msk.f32.gmra.mxu2 %vm1859_vm8, %v1832_v63  ;;  %v1725_v1 = vsel %vm1714_vm3, %v1692_v25, %v9880_v53  ;;  %v9881_v63 = vld [vmem:[#allocation79_spill] sm:$0xff]  ;;  %243 = vst.msk [vmem:[#allocation2 + $0xf0] sm:$0x1] %vm232_vm9, %v5215_v34  ;;  %v9902_v25 = vld [vmem:[#allocation89_spill] sm:$0xff] }
 0x321   : > { %v1735_v22 = vsel %vm1714_vm3, %v1702_v48, %v9881_v63  ;;  %v1758_v18 = vsel %vm1747_vm5, %v1725_v1, %v9882_v57  ;;  %v9900_v48 = vld [vmem:[#allocation36_spill] sm:$0xff]  ;;  %244 = vst.msk [vmem:[#allocation2 + $0x108] sm:$0x1] %vm232_vm9, %v5215_v34  ;;  %v9903_v1 = vld [vmem:[#allocation99_spill] sm:$0xff] }
 0x322   : > { %v1768_v56 = vsel %vm1747_vm5, %v1735_v22, %v9883_v26  ;;  %v1791_v8 = vsel %vm1780_vm7, %v1758_v18, %v9885_v33  ;;  %v1605_v29 = vsel %vm223_vm0, %v5110_v15, %v9900_v48  ;;  %v9904_v22 = vld [vmem:[#allocation100_spill] sm:$0xff]  ;;  %245 = vst.msk [vmem:[#allocation2 + $0x120] sm:$0x1] %vm232_vm9, %v5215_v34  ;;  %v9905_v57 = vld [vmem:[#allocation123_spill] sm:$0xff] }
 0x323   : > { %v1801_v20 = vsel %vm1780_vm7, %v1768_v56, %v9884_v30  ;;  %v1824_v39 = vsel %vm1813_vm6, %v1791_v8, %v6646_v9  ;;  %v9888_v9 = vld [vmem:[#allocation70_spill] sm:$0xff]  ;;  %v1638_v53 = vsel %vm1615_vm1, %v1605_v29, %v9902_v25  ;;  %v9906_v26 = vld [vmem:[#allocation124_spill] sm:$0xff]  ;;  %246 = vst.msk [vmem:[#allocation2 + $0x138] sm:$0x1] %vm232_vm9, %v5215_v34  ;;  %v9924_v48 = vld [vmem:[#allocation163_spill] sm:$0xff] }
 0x324   : > { %v1834_v60 = vsel %vm1813_vm6, %v1801_v20, %v1528_v31  ;;  %v1637_v23 = vsel %vm1615_vm1, %v1604_v24, %v9888_v9  ;;  %v1671_v63 = vsel %vm1648_vm2, %v1638_v53, %v9903_v1  ;;  %v9907_v30 = vld [vmem:[#allocation58_spill] sm:$0xff]  ;;  %v9908_v33 = vld [vmem:[#allocation128_spill] sm:$0xff]  ;;  %247 = vst.msk [vmem:[#allocation2 + $0x150] sm:$0x1] %vm232_vm9, %v5215_v34  ;;  %v5113_v53 = vld [vmem:[%s5307_s9 + $0xa8] sm:$0xff] }
 0x325   : > { %v1670_v38 = vsel %vm1648_vm2, %v1637_v23, %v9891_v21  ;;  %v1704_v56 = vsel %vm1681_vm4, %v1671_v63, %v9906_v26  ;;  %248 = vst.msk [vmem:[#allocation2 + $0x168] sm:$0x1] %vm232_vm9, %v5215_v34  ;;  %v5111_v23 = vld [vmem:[%s5307_s9 + $0x110] sm:$0xff]  ;;  %v9914_v21 = vld [vmem:[#allocation88_spill] sm:$0xff]  ;;  %v9928_v26 = vld [vmem:[#allocation77_spill] sm:$0xff] }
 0x326   : > { %v1703_v5 = vsel %vm1681_vm4, %v1670_v38, %v9893_v54  ;;  %v1737_v8 = vsel %vm1714_vm3, %v1704_v56, %v9908_v33  ;;  %249 = vst.msk [vmem:[#allocation2 + $0x180] sm:$0x1] %vm232_vm9, %v5215_v34  ;;  %v1606_v59 = vsel %vm223_vm0, %v5111_v23, %v9911_v58  ;;  %v9925_v1 = vld [vmem:[#allocation12_spill] sm:$0xff]  ;;  %v1536_v23 = vpop.permute.xlu2 %1535 }
 0x327   : > { %250 = vst.msk [vmem:[#allocation2 + $0x198] sm:$0x1] %vm232_vm9, %v5215_v34  ;;  %v1639_v38 = vsel %vm1615_vm1, %v1606_v59, %v9914_v21  ;;  %v1597_v63 = vsel %vm223_vm0, %v5113_v53, %v9925_v1  ;;  %v9935_v58 = vld [vmem:[#allocation144_spill] sm:$0xff]  ;;  %v9950_v1 = vld [vmem:[#allocation165_spill] sm:$0xff] }
 0x328   : > { %4923 = vmatmul.msk.f32.gmra.mxu0 %vm1859_vm8, %v1823_v32  ;;  %4933 = vmatmul.msk.f32.gmra.mxu2 %vm1859_vm8, %v1833_v13  ;;  %v1736_v32 = vsel %vm1714_vm3, %v1703_v5, %v9894_v36  ;;  %v9895_v13 = vld [vmem:[#allocation69_spill] sm:$0xff]  ;;  %252 = vst.msk [vmem:[#allocation2 + $0x29] sm:$0x1] %vm232_vm9, %v5215_v34  ;;  %v9916_v5 = vld [vmem:[#allocation110_spill] sm:$0xff]  ;;  %v1630_v56 = vsel %vm1615_vm1, %v1597_v63, %v9928_v26 }
 0x329   : > { %v1726_v2 = vsel %vm1714_vm3, %v1693_v46, %v9895_v13  ;;  %v1769_v62 = vsel %vm1747_vm5, %v1736_v32, %v9897_v27  ;;  %253 = vst.msk [vmem:[#allocation2 + $0x41] sm:$0x1] %vm232_vm9, %v5215_v34  ;;  %v9915_v46 = vld [vmem:[#allocation96_spill] sm:$0xff]  ;;  %v1672_v36 = vsel %vm1648_vm2, %v1639_v38, %v9916_v5  ;;  %v9917_v32 = vld [vmem:[#allocation121_spill] sm:$0xff]  ;;  %v9920_v27 = vld [vmem:[#allocation127_spill] sm:$0xff] }
 0x32a   : > { %v1759_v50 = vsel %vm1747_vm5, %v1726_v2, %v9896_v37  ;;  %v1802_v0 = vsel %vm1780_vm7, %v1769_v62, %v6558_v41  ;;  %v9901_v41 = vld [vmem:[#allocation54_spill] sm:$0xff]  ;;  %254 = vst.msk [vmem:[#allocation2 + $0x59] sm:$0x1] %vm232_vm9, %v5215_v34  ;;  %v1705_v13 = vsel %vm1681_vm4, %v1672_v36, %v9917_v32  ;;  %v9919_v37 = vld [vmem:[#allocation68_spill] sm:$0xff]  ;;  %v5116_v36 = vld [vmem:[%s5307_s9 + $0x128] sm:$0xff] }
 0x32b   : > { %v1792_v43 = vsel %vm1780_vm7, %v1759_v50, %v9898_v6  ;;  %v1835_v16 = vsel %vm1813_vm6, %v1802_v0, %v1530_v40  ;;  %v9918_v2 = vld [vmem:[#allocation122_spill] sm:$0xff]  ;;  %255 = vst.msk [vmem:[#allocation2 + $0x71] sm:$0x1] %vm232_vm9, %v5215_v34  ;;  %v1738_v62 = vsel %vm1714_vm3, %v1705_v13, %v9920_v27  ;;  %v1534_v6 = vpop.permute.xlu1 %1533  ;;  %v9921_v0 = vld [vmem:[#allocation135_spill] sm:$0xff]  ;;  %v9939_v32 = vld [vmem:[#allocation40_spill] sm:$0xff] }
 0x32c   : > { %v1825_v3 = vsel %vm1813_vm6, %v1792_v43, %v6652_v52  ;;  %v1628_v52 = vsel %vm1615_vm1, %v1595_v51, %v9901_v41  ;;  %256 = vst.msk [vmem:[#allocation2 + $0x89] sm:$0x1] %vm232_vm9, %v5215_v34  ;;  %v9923_v51 = vld [vmem:[#allocation162_spill] sm:$0xff]  ;;  %v1608_v13 = vsel %vm223_vm0, %v5116_v36, %v9939_v32  ;;  %v9965_v32 = vld [vmem:[#allocation167_spill] sm:$0xff] }
 0x32d   : > { %v1661_v31 = vsel %vm1648_vm2, %v1628_v52, %v9904_v22  ;;  %257 = vst.msk [vmem:[#allocation2 + $0xa1] sm:$0x1] %vm232_vm9, %v5215_v34  ;;  %v5114_v22 = vld [vmem:[%s5307_s9 + $0x120] sm:$0xff]  ;;  %v9942_v27 = vld [vmem:[#allocation102_spill] sm:$0xff] }
 0x32e   : > { %v1694_v18 = vsel %vm1681_vm4, %v1661_v31, %v9905_v57  ;;  %258 = vst.msk [vmem:[#allocation2 + $0xb9] sm:$0x1] %vm232_vm9, %v5215_v34  ;;  %v9926_v31 = vld [vmem:[#allocation41_spill] sm:$0xff] }
 0x32f   : > { %v1727_v20 = vsel %vm1714_vm3, %v1694_v18, %v9907_v30  ;;  %259 = vst.msk [vmem:[#allocation2 + $0xd1] sm:$0x1] %vm232_vm9, %v5215_v34  ;;  %v1607_v57 = vsel %vm223_vm0, %v5114_v22, %v9926_v31  ;;  %v2166_v30 = vld [vmem:[#allocation2 + $0x1] sm:$0xff]  ;;  %v9951_v22 = vld [vmem:[#allocation11_spill] sm:$0xff] }
 0x330   : > { %4924 = vmatmul.msk.f32.gmra.mxu0 %vm1859_vm8, %v1824_v39  ;;  %4934 = vmatmul.msk.f32.gmra.mxu2 %vm1859_vm8, %v1834_v60  ;;  %v1532_v39 = vpop.permute.xlu0 %1531  ;;  %v9909_v60 = vld [vmem:[#allocation139_spill] sm:$0xff]  ;;  %v1760_v55 = vsel %vm1747_vm5, %v1727_v20, %v9910_v14  ;;  %260 = vst.msk [vmem:[#allocation2 + $0xe9] sm:$0x1] %vm232_vm9, %v5215_v34  ;;  %v9929_v20 = vld [vmem:[#allocation104_spill] sm:$0xff]  ;;  %v9932_v14 = vld [vmem:[#allocation38_spill] sm:$0xff] }
 0x331   : > { %v1770_v47 = vsel %vm1747_vm5, %v1737_v8, %v9909_v60  ;;  %v1793_v12 = vsel %vm1780_vm7, %v1760_v55, %v6513_v44  ;;  %v9912_v44 = vld [vmem:[#allocation22_spill] sm:$0xff]  ;;  %v1663_v33 = vsel %vm1648_vm2, %v1630_v56, %v9929_v20  ;;  %v9930_v8 = vld [vmem:[#allocation109_spill] sm:$0xff]  ;;  %2455 = vrot.lane.b32.xlu1 %v2166_v30, %s5207_s10  ;;  %227 = vst.msk [vmem:[#allocation2 + $0x10] sm:$0x3] %vm226_vm10, %v5215_v34  ;;  %v9954_v20 = vld [vmem:[#allocation112_spill] sm:$0xff] }
 0x332   : > { %v1803_v7 = vsel %vm1780_vm7, %v1770_v47, %v6556_v19  ;;  %v1826_v24 = vsel %vm1813_vm6, %v1793_v12, %v6676_v4  ;;  %v1596_v45 = vsel %vm223_vm0, %v5112_v28, %v9912_v44  ;;  %v9913_v19 = vld [vmem:[#allocation78_spill] sm:$0xff]  ;;  %v9931_v60 = vld [vmem:[#allocation117_spill] sm:$0xff]  ;;  %231 = vst.msk [vmem:[#allocation2 + $0x1a8] sm:$0x3] %vm226_vm10, %v5215_v34  ;;  %vm4056_vm10 = vcmask 1047559  }
 0x333   : > { %v1836_v9 = vsel %vm1813_vm6, %v1803_v7, %v1532_v39  ;;  %v1629_v4 = vsel %vm1615_vm1, %v1596_v45, %v9913_v19  ;;  %v1696_v47 = vsel %vm1681_vm4, %v1663_v33, %v9931_v60  ;;  %v9933_v12 = vld [vmem:[#allocation73_spill] sm:$0xff]  ;;  %251 = vst.msk [vmem:[#allocation2 + $0x11] sm:$0x1] %vm232_vm9, %v5215_v34  ;;  %v9936_v28 = vld [vmem:[#allocation150_spill] sm:$0xff] }
 0x334   : > { %v1662_v54 = vsel %vm1648_vm2, %v1629_v4, %v9915_v46  ;;  %261 = vst.msk [vmem:[#allocation2 + $0x101] sm:$0x1] %vm232_vm9, %v5215_v34  ;;  %v9937_v45 = vld [vmem:[#allocation158_spill] sm:$0xff] }
 0x335   : > { %v1695_v40 = vsel %vm1681_vm4, %v1662_v54, %v9918_v2  ;;  %262 = vst.msk [vmem:[#allocation2 + $0x119] sm:$0x1] %vm232_vm9, %v5215_v34  ;;  %v5115_v46 = vld [vmem:[%s5307_s9 + $0xb0] sm:$0xff]  ;;  %v9938_v54 = vld [vmem:[#allocation27_spill] sm:$0xff] }
 0x336   : > { %v1728_v50 = vsel %vm1714_vm3, %v1695_v40, %v9919_v37  ;;  %263 = vst.msk [vmem:[#allocation2 + $0x131] sm:$0x1] %vm232_vm9, %v5215_v34  ;;  %v1598_v5 = vsel %vm223_vm0, %v5115_v46, %v9938_v54  ;;  %v9941_v40 = vld [vmem:[#allocation91_spill] sm:$0xff]  ;;  %v9953_v56 = vld [vmem:[#allocation90_spill] sm:$0xff]  ;;  %v1542_v46 = vpop.permute.xlu2 %1541  ;;  %v9964_v54 = vld [vmem:[#allocation152_spill] sm:$0xff] }
 0x337   : > { %264 = vst.msk [vmem:[#allocation2 + $0x149] sm:$0x1] %vm232_vm9, %v5215_v34  ;;  %v1641_v37 = vsel %vm1615_vm1, %v1608_v13, %v9941_v40  ;;  %v9966_v40 = vld [vmem:[#allocation45_spill] sm:$0xff] }
 0x338   : > { %4925 = vmatmul.msk.f32.gmra.mxu0 %vm1859_vm8, %v1825_v3  ;;  %4935 = vmatmul.msk.f32.gmra.mxu2 %vm1859_vm8, %v1835_v16  ;;  %v1761_v3 = vsel %vm1747_vm5, %v1728_v50, %v9921_v0  ;;  %v9922_v16 = vld [vmem:[#allocation151_spill] sm:$0xff]  ;;  %v2167_v50 = vld [vmem:[#allocation2 + $0x9] sm:$0xff]  ;;  %265 = vst.msk [vmem:[#allocation2 + $0x161] sm:$0x1] %vm232_vm9, %v5215_v34 }
 0x339   : > { %v1771_v17 = vsel %vm1747_vm5, %v1738_v62, %v9922_v16  ;;  %v1794_v29 = vsel %vm1780_vm7, %v1761_v3, %v9924_v48  ;;  %v1674_v62 = vsel %vm1648_vm2, %v1641_v37, %v9942_v27  ;;  %2457 = vrot.lane.b32.xlu2 %v2167_v50, %s5207_s10  ;;  %266 = vst.msk [vmem:[#allocation2 + $0x179] sm:$0x1] %vm232_vm9, %v5215_v34  ;;  %v9944_v0 = vld [vmem:[#allocation30_spill] sm:$0xff]  ;;  %v9945_v16 = vld [vmem:[#allocation43_spill] sm:$0xff]  ;;  %v9967_v27 = vld [vmem:[#allocation93_spill] sm:$0xff] }
 0x33a   : > { %v1804_v15 = vsel %vm1780_vm7, %v1771_v17, %v9923_v51  ;;  %v1827_v52 = vsel %vm1813_vm6, %v1794_v29, %v6667_v35  ;;  %v9927_v35 = vld [vmem:[#allocation76_spill] sm:$0xff]  ;;  %v1707_v17 = vsel %vm1681_vm4, %v1674_v62, %v9945_v16  ;;  %267 = vst.msk [vmem:[#allocation2 + $0x191] sm:$0x1] %vm232_vm9, %v5215_v34  ;;  %v1538_v29 = vpop.permute.xlu0 %1537 }
 0x33b   : > { %v1837_v25 = vsel %vm1813_vm6, %v1804_v15, %v1534_v6  ;;  %v1640_v18 = vsel %vm1615_vm1, %v1607_v57, %v9927_v35  ;;  %v9943_v6 = vld [vmem:[#allocation103_spill] sm:$0xff]  ;;  %v9947_v15 = vld [vmem:[#allocation130_spill] sm:$0xff]  ;;  %268 = vst.msk [vmem:[#allocation2 + $0x1a9] sm:$0x1] %vm232_vm9, %v5215_v34  ;;  %v9952_v34 = vld [vmem:[#allocation25_spill] sm:$0xff]  ;;  %vm4053_vm9 = vcmask 1046534  }
 0x33c   : > { %v1673_v39 = vsel %vm1648_vm2, %v1640_v18, %v9930_v8  ;;  %v1740_v48 = vsel %vm1714_vm3, %v1707_v17, %v9947_v15  ;;  %v5117_v18 = vld [vmem:[%s5307_s9 + $0x138] sm:$0xff]  ;;  %v9955_v8 = vld [vmem:[#allocation29_spill] sm:$0xff]  ;;  %v9970_v16 = vld [vmem:[#allocation132_spill] sm:$0xff] }
 0x33d   : > { %v1706_v55 = vsel %vm1681_vm4, %v1673_v39, %v9932_v14  ;;  %v1609_v26 = vsel %vm223_vm0, %v5117_v18, %v9952_v34  ;;  %v9957_v14 = vld [vmem:[#allocation153_spill] sm:$0xff]  ;;  %v9975_v18 = vld [vmem:[#allocation115_spill] sm:$0xff] }
 0x33e   : > { %v1739_v7 = vsel %vm1714_vm3, %v1706_v55, %v9933_v12  ;;  %v1642_v30 = vsel %vm1615_vm1, %v1609_v26, %v9953_v56  ;;  %v9958_v12 = vld [vmem:[#allocation164_spill] sm:$0xff] }
 0x33f   : > { %v1772_v44 = vsel %vm1747_vm5, %v1739_v7, %v9936_v28  ;;  %v1675_v33 = vsel %vm1648_vm2, %v1642_v30, %v9954_v20  ;;  %v9976_v26 = vld [vmem:[#allocation24_spill] sm:$0xff]  ;;  %v9977_v30 = vld [vmem:[#allocation131_spill] sm:$0xff] }
 0x340   : > { %4926 = vmatmul.msk.f32.gmra.mxu0 %vm1859_vm8, %v1826_v24  ;;  %4936 = vmatmul.msk.f32.gmra.mxu2 %vm1859_vm8, %v1836_v9  ;;  %v9934_v24 = vld [vmem:[#allocation75_spill] sm:$0xff]  ;;  %v1805_v4 = vsel %vm1780_vm7, %v1772_v44, %v6564_v42  ;;  %v1708_v39 = vsel %vm1681_vm4, %v1675_v33, %v9955_v8  ;;  %v9978_v8 = vld [vmem:[#allocation156_spill] sm:$0xff] }
 0x341   : > { %v1729_v9 = vsel %vm1714_vm3, %v1696_v47, %v9934_v24  ;;  %v1838_v38 = vsel %vm1813_vm6, %v1805_v4, %v1536_v23  ;;  %v1540_v47 = vpop.permute.xlu1 %1539  ;;  %v9959_v23 = vld [vmem:[#allocation46_spill] sm:$0xff]  ;;  %v9961_v44 = vld [vmem:[#allocation111_spill] sm:$0xff] }
 0x342   : > { %v1762_v59 = vsel %vm1747_vm5, %v1729_v9, %v9935_v58  ;;  %v5118_v9 = vld [vmem:[%s5307_s9 + $0x140] sm:$0xff] }
 0x343   : > { %v1795_v19 = vsel %vm1780_vm7, %v1762_v59, %v9937_v45  ;;  %v1610_v58 = vsel %vm223_vm0, %v5118_v9, %v9959_v23  ;;  %v9960_v59 = vld [vmem:[#allocation80_spill] sm:$0xff]  ;;  %v9981_v23 = vld [vmem:[#allocation85_spill] sm:$0xff] }
 0x344   : > { %v1973_v43 = vpop.f32.mrf.mxu0  ;;  %v1828_v21 = vsel %vm1813_vm6, %v1795_v19, %v6687_v49  ;;  %v9940_v49 = vld [vmem:[#allocation59_spill] sm:$0xff]  ;;  %v1643_v28 = vsel %vm1615_vm1, %v1610_v58, %v9960_v59  ;;  %v9962_v19 = vld [vmem:[#allocation42_spill] sm:$0xff] }
 0x345   : > { %v1974_v10 = vadd.f32 %v6980_v61, %v1973_v43  ;;  %v1631_v2 = vsel %vm1615_vm1, %v1598_v5, %v9940_v49  ;;  %v1676_v45 = vsel %vm1648_vm2, %v1643_v28, %v9961_v44  ;;  %v9982_v28 = vld [vmem:[#allocation114_spill] sm:$0xff] }
 0x346   : > { %v1664_v43 = vsel %vm1648_vm2, %v1631_v2, %v9943_v6  ;;  %v1709_v4 = vsel %vm1681_vm4, %v1676_v45, %v9962_v19  ;;  %v5119_v2 = vld [vmem:[%s5307_s9 + $0x150] sm:$0xff]  ;;  %v9968_v6 = vld [vmem:[#allocation105_spill] sm:$0xff] }
 0x347   : > { %v2069_v41 = vmax.f32 %v1974_v10, 0.0  ;;  %v1697_v3 = vsel %vm1681_vm4, %v1664_v43, %v9944_v0  ;;  %v9946_v10 = vld [vmem:[#allocation52_spill] sm:$0xff]  ;;  %v1611_v37 = vsel %vm223_vm0, %v5119_v2, %v9966_v40  ;;  %v9983_v45 = vld [vmem:[#allocation126_spill] sm:$0xff] }
 0x348   : > { %4927 = vmatmul.msk.f32.gmra.mxu0 %vm1859_vm8, %v1827_v52  ;;  %4937 = vmatmul.msk.f32.gmra.mxu2 %vm1859_vm8, %v1837_v25  ;;  %v1730_v51 = vsel %vm1714_vm3, %v1697_v3, %v9946_v10  ;;  %v9949_v25 = vld [vmem:[#allocation143_spill] sm:$0xff]  ;;  %v1644_v62 = vsel %vm1615_vm1, %v1611_v37, %v9967_v27  ;;  %v9969_v0 = vld [vmem:[#allocation48_spill] sm:$0xff]  ;;  %v1544_v10 = vpop.permute.xlu0 %1543  ;;  %v9987_v2 = vld [vmem:[#allocation50_spill] sm:$0xff] }
 0x349   : > { %2102 = vst.msk [vmem:[#allocation2 + $0x19] sm:$0xff] %vm223_vm0, %v2069_v41  ;;  %v9948_v41 = vld [vmem:[#allocation142_spill] sm:$0xff]  ;;  %v1763_v53 = vsel %vm1747_vm5, %v1730_v51, %v9949_v25  ;;  %v1677_v43 = vsel %vm1648_vm2, %v1644_v62, %v9968_v6  ;;  %v9971_v51 = vld [vmem:[#allocation145_spill] sm:$0xff]  ;;  %v1546_v33 = vpop.permute.xlu1 %1545 }
 0x34a   : > { %v1773_v52 = vsel %vm1747_vm5, %v1740_v48, %v9948_v41  ;;  %v1796_v63 = vsel %vm1780_vm7, %v1763_v53, %v9950_v1  ;;  %v1710_v3 = vsel %vm1681_vm4, %v1677_v43, %v9969_v0  ;;  %v5120_v53 = vld [vmem:[%s5307_s9 + $0x158] sm:$0xff]  ;;  %v9989_v6 = vld [vmem:[#allocation106_spill] sm:$0xff] }
 0x34b   : > { %v1806_v31 = vsel %vm1780_vm7, %v1773_v52, %v9951_v22  ;;  %v1829_v57 = vsel %vm1813_vm6, %v1796_v63, %v6723_v11  ;;  %v9956_v11 = vld [vmem:[#allocation129_spill] sm:$0xff]  ;;  %v1743_v17 = vsel %vm1714_vm3, %v1710_v3, %v9970_v16  ;;  %v9973_v1 = vld [vmem:[#allocation31_spill] sm:$0xff]  ;;  %v9991_v16 = vld [vmem:[#allocation134_spill] sm:$0xff] }
 0x34c   : > { %v1839_v35 = vsel %vm1813_vm6, %v1806_v31, %v1538_v29  ;;  %v1741_v60 = vsel %vm1714_vm3, %v1708_v39, %v9956_v11  ;;  %v1776_v15 = vsel %vm1747_vm5, %v1743_v17, %v9971_v51  ;;  %v9972_v29 = vld [vmem:[#allocation35_spill] sm:$0xff]  ;;  %v1612_v63 = vsel %vm223_vm0, %v5120_v53, %v9973_v1  ;;  %v9974_v31 = vld [vmem:[#allocation92_spill] sm:$0xff] }
 0x34d   : > { %v1774_v55 = vsel %vm1747_vm5, %v1741_v60, %v9957_v14  ;;  %v1809_v41 = vsel %vm1780_vm7, %v1776_v15, %v9972_v29  ;;  %v9979_v60 = vld [vmem:[#allocation166_spill] sm:$0xff]  ;;  %v9990_v0 = vld [vmem:[#allocation47_spill] sm:$0xff]  ;;  %v9993_v29 = vld [vmem:[#allocation168_spill] sm:$0xff] }
 0x34e   : > { %v1807_v7 = vsel %vm1780_vm7, %v1774_v55, %v9958_v12  ;;  %v1842_v25 = vsel %vm1813_vm6, %v1809_v41, %v1544_v10  ;;  %v5121_v12 = vld [vmem:[%s5307_s9 + $0x168] sm:$0xff]  ;;  %v9992_v51 = vld [vmem:[#allocation147_spill] sm:$0xff] }
 0x34f   : > { %v1840_v24 = vsel %vm1813_vm6, %v1807_v7, %v1540_v47  ;;  %v9980_v7 = vld [vmem:[#allocation51_spill] sm:$0xff] }
 0x350   : > { %4928 = vmatmul.msk.f32.gmra.mxu0 %vm1859_vm8, %v1828_v21  ;;  %4938 = vmatmul.msk.f32.gmra.mxu2 %vm1859_vm8, %v1838_v38  ;;  %v2168_v42 = vld [vmem:[#allocation2 + $0x19] sm:$0xff]  ;;  %v9963_v21 = vld [vmem:[#allocation74_spill] sm:$0xff]  ;;  %v1550_v10 = vpop.permute.xlu0 %1549 }
 0x351   : > { %2459 = vrot.lane.b32.xlu0 %v2168_v42, %s5207_s10  ;;  %v1742_v38 = vsel %vm1714_vm3, %v1709_v4, %v9963_v21  ;;  %v9984_v4 = vld [vmem:[#allocation84_spill] sm:$0xff] }
 0x352   : > { %v1775_v5 = vsel %vm1747_vm5, %v1742_v38, %v9964_v54  ;;  %v1548_v38 = vpop.permute.xlu2 %1547 }
 0x353   : > { %v1808_v13 = vsel %vm1780_vm7, %v1775_v5, %v9965_v32 }
 0x354   : > { %v1841_v49 = vsel %vm1813_vm6, %v1808_v13, %v1542_v46  ;;  %v9985_v46 = vld [vmem:[#allocation155_spill] sm:$0xff] }
 0x358   : > { %4929 = vmatmul.msk.f32.gmra.mxu0 %vm1859_vm8, %v1829_v57  ;;  %4939 = vmatmul.msk.f32.gmra.mxu2 %vm1859_vm8, %v1839_v35  ;;  %v1645_v57 = vsel %vm1615_vm1, %v1612_v63, %v9974_v31 }
 0x359   : > { %v1678_v34 = vsel %vm1648_vm2, %v1645_v57, %v9975_v18 }
 0x35a   : > { %v1711_v56 = vsel %vm1681_vm4, %v1678_v34, %v9976_v26 }
 0x35b   : > { %v1744_v20 = vsel %vm1714_vm3, %v1711_v56, %v9977_v30 }
 0x35c   : > { %v1777_v39 = vsel %vm1747_vm5, %v1744_v20, %v9978_v8 }
 0x35d   : > { %v1810_v47 = vsel %vm1780_vm7, %v1777_v39, %v9979_v60 }
 0x35e   : > { %v1843_v55 = vsel %vm1813_vm6, %v1810_v47, %v1546_v33 }
 0x360   : > { %4940 = vmatmul.msk.f32.gmra.mxu2 %vm1859_vm8, %v1840_v24  ;;  %v1613_v24 = vsel %vm223_vm0, %v5121_v12, %v9980_v7 }
 0x361   : > { %v1646_v58 = vsel %vm1615_vm1, %v1613_v24, %v9981_v23 }
 0x362   : > { %v1679_v44 = vsel %vm1648_vm2, %v1646_v58, %v9982_v28 }
 0x363   : > { %v1712_v19 = vsel %vm1681_vm4, %v1679_v44, %v9983_v45 }
 0x364   : > { %v1745_v21 = vsel %vm1714_vm3, %v1712_v19, %v9984_v4 }
 0x365   : > { %v1976_v36 = vpop.f32.mrf.mxu0  ;;  %v1778_v54 = vsel %vm1747_vm5, %v1745_v21, %v9985_v46 }
 0x366   : > { %v1977_v42 = vadd.f32 %v6980_v61, %v1976_v36  ;;  %v9986_v36 = vld [vmem:[#allocation169_spill] sm:$0xff] }
 0x367   : > { %v1811_v32 = vsel %vm1780_vm7, %v1778_v54, %v9986_v36 }
 0x368   : > { %v2070_v50 = vmax.f32 %v1977_v42, 0.0  ;;  %4941 = vmatmul.msk.f32.gmra.mxu2 %vm1859_vm8, %v1841_v49  ;;  %v1844_v42 = vsel %vm1813_vm6, %v1811_v32, %v1548_v38  ;;  %v5122_v49 = vld [vmem:[%s5307_s9 + $0x170] sm:$0xff] }
 0x369   : > { %v1614_v40 = vsel %vm223_vm0, %v5122_v49, %v9987_v2 }
 0x36a   : > { %2103 = vst.msk [vmem:[#allocation2 + $0x21] sm:$0xff] %vm223_vm0, %v2070_v50  ;;  %v9988_v50 = vld [vmem:[#allocation95_spill] sm:$0xff] }
 0x36b   : > { %v1647_v27 = vsel %vm1615_vm1, %v1614_v40, %v9988_v50 }
 0x36c   : > { %v1680_v43 = vsel %vm1648_vm2, %v1647_v27, %v9989_v6 }
 0x36d   : > { %v1979_v48 = vpop.f32.mrf.mxu0  ;;  %v1713_v3 = vsel %vm1681_vm4, %v1680_v43, %v9990_v0 }
 0x36e   : > { %v1980_v52 = vadd.f32 %v6980_v61, %v1979_v48  ;;  %v1746_v17 = vsel %vm1714_vm3, %v1713_v3, %v9991_v16 }
 0x36f   : > { %v1779_v15 = vsel %vm1747_vm5, %v1746_v17, %v9992_v51 }
 0x370   : > { %v2071_v22 = vmax.f32 %v1980_v52, 0.0  ;;  %4942 = vmatmul.msk.f32.gmra.mxu2 %vm1859_vm8, %v1842_v25  ;;  %v1812_v41 = vsel %vm1780_vm7, %v1779_v15, %v9993_v29 }
 0x371   : > { %v7177_v35 = vld [vmem:[#allocation2 + $0x21] sm:$0xff]  ;;  %v1845_v25 = vsel %vm1813_vm6, %v1812_v41, %v1550_v10 }
 0x372   : > { %2104 = vst.msk [vmem:[#allocation2 + $0x31] sm:$0xff] %vm223_vm0, %v2071_v22  ;;  %2461 = vrot.lane.b32.xlu1 %v7177_v35, %s5207_s10 }
 0x375   : > { %v1982_v11 = vpop.f32.mrf.mxu0 }
 0x376   : > { %v1983_v14 = vadd.f32 %v6980_v61, %v1982_v11 }
 0x378   : > { %v2072_v9 = vmax.f32 %v1983_v14, 0.0  ;;  %4943 = vmatmul.msk.f32.gmra.mxu2 %vm1859_vm8, %v1843_v55 }
 0x379   : > { %v7200_v59 = vld [vmem:[#allocation2 + $0x31] sm:$0xff] }
 0x37a   : > { %2105 = vst.msk [vmem:[#allocation2 + $0x39] sm:$0xff] %vm223_vm0, %v2072_v9  ;;  %2463 = vrot.lane.b32.xlu2 %v7200_v59, %s5207_s10 }
 0x37d   : > { %v1985_v5 = vpop.f32.mrf.mxu0 }
 0x37e   : > { %v1986_v13 = vadd.f32 %v6980_v61, %v1985_v5 }
 0x380   : > { %v2073_v37 = vmax.f32 %v1986_v13, 0.0  ;;  %4944 = vmatmul.msk.f32.gmra.mxu2 %vm1859_vm8, %v1844_v42 }
 0x381   : > { %v7223_v62 = vld [vmem:[#allocation2 + $0x39] sm:$0xff] }
 0x382   : > { %2106 = vst.msk [vmem:[#allocation2 + $0x49] sm:$0xff] %vm223_vm0, %v2073_v37  ;;  %2465 = vrot.lane.b32.xlu0 %v7223_v62, %s5207_s10 }
 0x385   : > { %v1988_v48 = vpop.f32.mrf.mxu0 }
 0x386   : > { %v1989_v52 = vadd.f32 %v6980_v61, %v1988_v48 }
 0x388   : > { %v2074_v53 = vmax.f32 %v1989_v52, 0.0  ;;  %4945 = vmatmul.msk.f32.gmra.mxu2 %vm1859_vm8, %v1845_v25 }
 0x389   : > { %v7241_v1 = vld [vmem:[#allocation2 + $0x49] sm:$0xff] }
 0x38a   : > { %2107 = vst.msk [vmem:[#allocation2 + $0x51] sm:$0xff] %vm223_vm0, %v2074_v53  ;;  %2467 = vrot.lane.b32.xlu1 %v7241_v1, %s5207_s10 }
 0x38d   : > { %v1991_v63 = vpop.f32.mrf.mxu0 }
 0x38e   : > { %v1992_v22 = vadd.f32 %v6980_v61, %v1991_v63 }
 0x390   : > { %v2075_v31 = vmax.f32 %v1992_v22, 0.0 }
 0x391   : > { %v7247_v57 = vld [vmem:[#allocation2 + $0x51] sm:$0xff] }
 0x392   : > { %2108 = vst.msk [vmem:[#allocation2 + $0x61] sm:$0xff] %vm223_vm0, %v2075_v31  ;;  %2469 = vrot.lane.b32.xlu2 %v7247_v57, %s5207_s10 }
 0x393   : > { %v2021_v18 = vpop.f32.mrf.mxu2 }
 0x394   : > { %v2022_v34 = vadd.f32 %v6980_v61, %v2021_v18 }
 0x395   : > { %v1994_v26 = vpop.f32.mrf.mxu0 }
 0x396   : > { %v2085_v56 = vmax.f32 %v2022_v34, 0.0  ;;  %v1995_v30 = vadd.f32 %v6980_v61, %v1994_v26 }
 0x398   : > { %2118 = vst.msk [vmem:[#allocation2 + $0xd9] sm:$0xff] %vm223_vm0, %v2085_v56  ;;  %v2076_v20 = vmax.f32 %v1995_v30, 0.0 }
 0x399   : > { %v7255_v33 = vld [vmem:[#allocation2 + $0x61] sm:$0xff] }
 0x39a   : > { %2109 = vst.msk [vmem:[#allocation2 + $0x69] sm:$0xff] %vm223_vm0, %v2076_v20  ;;  %2471 = vrot.lane.b32.xlu0 %v7255_v33, %s5207_s10 }
 0x39b   : > { %v2024_v8 = vpop.f32.mrf.mxu2 }
 0x39c   : > { %v2025_v39 = vadd.f32 %v6980_v61, %v2024_v8 }
 0x39d   : > { %v1997_v11 = vpop.f32.mrf.mxu0 }
 0x39e   : > { %v2086_v60 = vmax.f32 %v2025_v39, 0.0  ;;  %v1998_v47 = vadd.f32 %v6980_v61, %v1997_v11 }
 0x39f   : > { %v7321_v20 = vld [vmem:[#allocation2 + $0xd9] sm:$0xff] }
 0x3a0   : > { %2119 = vst.msk [vmem:[#allocation2 + $0xe1] sm:$0xff] %vm223_vm0, %v2086_v60  ;;  %v2077_v14 = vmax.f32 %v1998_v47, 0.0 }
 0x3a1   : > { %v7263_v55 = vld [vmem:[#allocation2 + $0x69] sm:$0xff] }
 0x3a2   : > { %2110 = vst.msk [vmem:[#allocation2 + $0x79] sm:$0xff] %vm223_vm0, %v2077_v14  ;;  %2473 = vrot.lane.b32.xlu1 %v7263_v55, %s5207_s10 }
 0x3a3   : > { %v2027_v12 = vpop.f32.mrf.mxu2 }
 0x3a4   : > { %v2028_v7 = vadd.f32 %v6980_v61, %v2027_v12 }
 0x3a5   : > { %v2000_v24 = vpop.f32.mrf.mxu0 }
 0x3a6   : > { %v2087_v9 = vmax.f32 %v2028_v7, 0.0  ;;  %v2001_v23 = vadd.f32 %v6980_v61, %v2000_v24 }
 0x3a7   : > { %v7330_v60 = vld [vmem:[#allocation2 + $0xe1] sm:$0xff] }
 0x3a8   : > { %2120 = vst.msk [vmem:[#allocation2 + $0xf1] sm:$0xff] %vm223_vm0, %v2087_v9  ;;  %v2078_v58 = vmax.f32 %v2001_v23, 0.0 }
 0x3a9   : > { %v7271_v28 = vld [vmem:[#allocation2 + $0x79] sm:$0xff] }
 0x3aa   : > { %2111 = vst.msk [vmem:[#allocation2 + $0x81] sm:$0xff] %vm223_vm0, %v2078_v58  ;;  %2475 = vrot.lane.b32.xlu2 %v7271_v28, %s5207_s10 }
 0x3ab   : > { %v2030_v44 = vpop.f32.mrf.mxu2 }
 0x3ac   : > { %v2031_v45 = vadd.f32 %v6980_v61, %v2030_v44 }
 0x3ad   : > { %v2003_v19 = vpop.f32.mrf.mxu0 }
 0x3ae   : > { %v2088_v4 = vmax.f32 %v2031_v45, 0.0  ;;  %v2004_v21 = vadd.f32 %v6980_v61, %v2003_v19 }
 0x3af   : > { %v7352_v58 = vld [vmem:[#allocation2 + $0xf1] sm:$0xff] }
 0x3b0   : > { %2121 = vst.msk [vmem:[#allocation2 + $0xf9] sm:$0xff] %vm223_vm0, %v2088_v4  ;;  %v2079_v38 = vmax.f32 %v2004_v21, 0.0 }
 0x3b1   : > { %v7279_v46 = vld [vmem:[#allocation2 + $0x81] sm:$0xff] }
 0x3b2   : > { %2112 = vst.msk [vmem:[#allocation2 + $0x91] sm:$0xff] %vm223_vm0, %v2079_v38  ;;  %2477 = vrot.lane.b32.xlu0 %v7279_v46, %s5207_s10 }
 0x3b3   : > { %v2033_v54 = vpop.f32.mrf.mxu2 }
 0x3b4   : > { %v2034_v5 = vadd.f32 %v6980_v61, %v2033_v54 }
 0x3b5   : > { %v2006_v36 = vpop.f32.mrf.mxu0 }
 0x3b6   : > { %v2089_v32 = vmax.f32 %v2034_v5, 0.0  ;;  %v2007_v13 = vadd.f32 %v6980_v61, %v2006_v36 }
 0x3b7   : > { %v7332_v47 = vld [vmem:[#allocation2 + $0xf9] sm:$0xff] }
 0x3b8   : > { %2122 = vst.msk [vmem:[#allocation2 + $0x109] sm:$0xff] %vm223_vm0, %v2089_v32  ;;  %v2080_v42 = vmax.f32 %v2007_v13, 0.0 }
 0x3b9   : > { %v7287_v49 = vld [vmem:[#allocation2 + $0x91] sm:$0xff] }
 0x3ba   : > { %2113 = vst.msk [vmem:[#allocation2 + $0x99] sm:$0xff] %vm223_vm0, %v2080_v42  ;;  %2479 = vrot.lane.b32.xlu1 %v7287_v49, %s5207_s10 }
 0x3bb   : > { %v2036_v2 = vpop.f32.mrf.mxu2 }
 0x3bc   : > { %v2037_v40 = vadd.f32 %v6980_v61, %v2036_v2 }
 0x3bd   : > { %v2009_v37 = vpop.f32.mrf.mxu0 }
 0x3be   : > { %v2090_v50 = vmax.f32 %v2037_v40, 0.0  ;;  %v2010_v27 = vadd.f32 %v6980_v61, %v2009_v37 }
 0x3bf   : > { %v7344_v9 = vld [vmem:[#allocation2 + $0x109] sm:$0xff] }
 0x3c0   : > { %2123 = vst.msk [vmem:[#allocation2 + $0x111] sm:$0xff] %vm223_vm0, %v2090_v50  ;;  %v2081_v6 = vmax.f32 %v2010_v27, 0.0 }
 0x3c1   : > { %v7295_v43 = vld [vmem:[#allocation2 + $0x99] sm:$0xff] }
 0x3c2   : > { %2114 = vst.msk [vmem:[#allocation2 + $0xa9] sm:$0xff] %vm223_vm0, %v2081_v6  ;;  %2481 = vrot.lane.b32.xlu2 %v7295_v43, %s5207_s10 }
 0x3c3   : > { %v2039_v0 = vpop.f32.mrf.mxu2 }
 0x3c4   : > { %v2040_v3 = vadd.f32 %v6980_v61, %v2039_v0  ;;  %v2199_v0 = vld [vmem:[#allocation2 + $0xa] sm:$0xff] }
 0x3c5   : > { %v2012_v16 = vpop.f32.mrf.mxu0 }
 0x3c6   : > { %v2091_v17 = vmax.f32 %v2040_v3, 0.0  ;;  %v2013_v10 = vadd.f32 %v6980_v61, %v2012_v16 }
 0x3c7   : > { %v7366_v38 = vld [vmem:[#allocation2 + $0x111] sm:$0xff] }
 0x3c8   : > { %2124 = vst.msk [vmem:[#allocation2 + $0x121] sm:$0xff] %vm223_vm0, %v2091_v17  ;;  %v2082_v51 = vmax.f32 %v2013_v10, 0.0  ;;  %v2198_v17 = vld [vmem:[#allocation2 + $0x2] sm:$0xff]  ;;  %v7397_v10 = vpop.permute.xlu2 %2457 }
 0x3c9   : > { %v7303_v15 = vld [vmem:[#allocation2 + $0xa9] sm:$0xff]  ;;  %9994 = vst [vmem:[#allocation14_spill] sm:$0xff] %v7397_v10 }
 0x3ca   : > { %2115 = vst.msk [vmem:[#allocation2 + $0xb1] sm:$0xff] %vm223_vm0, %v2082_v51  ;;  %2483 = vrot.lane.b32.xlu0 %v7303_v15, %s5207_s10 }
 0x3cb   : > { %v2042_v48 = vpop.f32.mrf.mxu2 }
 0x3cc   : > { %v2043_v29 = vadd.f32 %v6980_v61, %v2042_v48 }
 0x3cd   : > { %v2015_v41 = vpop.f32.mrf.mxu0 }
 0x3ce   : > { %v2092_v52 = vmax.f32 %v2043_v29, 0.0  ;;  %v2016_v25 = vadd.f32 %v6980_v61, %v2015_v41  ;;  %v7401_v41 = vld [vmem:[#allocation2 + $0x32] sm:$0xff] }
 0x3cf   : > { %v7346_v23 = vld [vmem:[#allocation2 + $0x121] sm:$0xff] }
 0x3d0   : > { %2125 = vst.msk [vmem:[#allocation2 + $0x129] sm:$0xff] %vm223_vm0, %v2092_v52  ;;  %v2083_v53 = vmax.f32 %v2016_v25, 0.0  ;;  %v7403_v52 = vld [vmem:[#allocation2 + $0x1a] sm:$0xff]  ;;  %v7410_v25 = vld [vmem:[#allocation2 + $0x22] sm:$0xff] }
 0x3d1   : > { %v7311_v63 = vld [vmem:[#allocation2 + $0xb1] sm:$0xff] }
 0x3d2   : > { %2116 = vst.msk [vmem:[#allocation2 + $0xc1] sm:$0xff] %vm223_vm0, %v2083_v53  ;;  %2485 = vrot.lane.b32.xlu1 %v7311_v63, %s5207_s10 }
 0x3d3   : > { %v2045_v22 = vpop.f32.mrf.mxu2 }
 0x3d4   : > { %v2046_v31 = vadd.f32 %v6980_v61, %v2045_v22  ;;  %v7414_v53 = vpop.permute.xlu2 %2463  ;;  %v7418_v22 = vld [vmem:[#allocation2 + $0x3a] sm:$0xff] }
 0x3d5   : > { %v2018_v18 = vpop.f32.mrf.mxu0  ;;  %9995 = vst [vmem:[#allocation56_spill] sm:$0xff] %v7414_v53 }
 0x3d6   : > { %v2093_v34 = vmax.f32 %v2046_v31, 0.0  ;;  %v2019_v26 = vadd.f32 %v6980_v61, %v2018_v18  ;;  %v7424_v31 = vpop.permute.xlu1 %2455  ;;  %v7426_v18 = vld [vmem:[#allocation2 + $0x4a] sm:$0xff] }
 0x3d7   : > { %v7358_v4 = vld [vmem:[#allocation2 + $0x129] sm:$0xff]  ;;  %9996 = vst [vmem:[#allocation10_spill] sm:$0xff] %v7424_v31 }
 0x3d8   : > { %2126 = vst.msk [vmem:[#allocation2 + $0x139] sm:$0xff] %vm223_vm0, %v2093_v34  ;;  %v2084_v56 = vmax.f32 %v2019_v26, 0.0  ;;  %v7432_v26 = vld [vmem:[#allocation2 + $0x7a] sm:$0xff] }
 0x3d9   : > { %v7319_v30 = vld [vmem:[#allocation2 + $0xc1] sm:$0xff] }
 0x3da   : > { %2117 = vst.msk [vmem:[#allocation2 + $0xc9] sm:$0xff] %vm223_vm0, %v2084_v56  ;;  %2487 = vrot.lane.b32.xlu2 %v7319_v30, %s5207_s10  ;;  %2491 = vrot.lane.b32.xlu1 %v7321_v20, %s5207_s10  ;;  %v7434_v56 = vld [vmem:[#allocation2 + $0x62] sm:$0xff] }
 0x3db   : > { %v2048_v8 = vpop.f32.mrf.mxu2 }
 0x3dc   : > { %v2049_v39 = vadd.f32 %v6980_v61, %v2048_v8  ;;  %v7440_v8 = vld [vmem:[#allocation2 + $0x6a] sm:$0xff] }
 0x3de   : > { %v2094_v11 = vmax.f32 %v2049_v39, 0.0 }
 0x3df   : > { %v7376_v13 = vld [vmem:[#allocation2 + $0x139] sm:$0xff] }
 0x3e0   : > { %2127 = vst.msk [vmem:[#allocation2 + $0x141] sm:$0xff] %vm223_vm0, %v2094_v11 }
 0x3e1   : > { %v7334_v14 = vld [vmem:[#allocation2 + $0xc9] sm:$0xff] }
 0x3e2   : > { %2493 = vrot.lane.b32.xlu2 %v7330_v60, %s5207_s10  ;;  %2497 = vrot.lane.b32.xlu1 %v7332_v47, %s5207_s10 }
 0x3e3   : > { %2489 = vrot.lane.b32.xlu0 %v7334_v14, %s5207_s10  ;;  %v2051_v12 = vpop.f32.mrf.mxu2 }
 0x3e4   : > { %v2052_v7 = vadd.f32 %v6980_v61, %v2051_v12  ;;  %v7444_v39 = vpop.permute.xlu1 %2461  ;;  %v7448_v12 = vld [vmem:[#allocation2 + $0x9a] sm:$0xff] }
 0x3e5   : > { %9998 = vst [vmem:[#allocation13_spill] sm:$0xff] %v7444_v39 }
 0x3e6   : > { %v2095_v24 = vmax.f32 %v2052_v7, 0.0  ;;  %v7450_v7 = vld [vmem:[#allocation2 + $0x82] sm:$0xff] }
 0x3e7   : > { %v7360_v21 = vld [vmem:[#allocation2 + $0x141] sm:$0xff] }
 0x3e8   : > { %2128 = vst.msk [vmem:[#allocation2 + $0x151] sm:$0xff] %vm223_vm0, %v2095_v24  ;;  %v7456_v24 = vld [vmem:[#allocation2 + $0x92] sm:$0xff]  ;;  %v7538_v53 = vld [vmem:[#allocation2 + $0x13a] sm:$0xff] }
 0x3e9   : > { %10015 = vst [vmem:[#allocation65_spill] sm:$0xff] %v7538_v53 }
 0x3ea   : > { %2499 = vrot.lane.b32.xlu2 %v7344_v9, %s5207_s10  ;;  %2503 = vrot.lane.b32.xlu1 %v7346_v23, %s5207_s10 }
 0x3eb   : > { %2495 = vrot.lane.b32.xlu0 %v7352_v58, %s5207_s10  ;;  %v2054_v44 = vpop.f32.mrf.mxu2 }
 0x3ec   : > { %v2055_v45 = vadd.f32 %v6980_v61, %v2054_v44  ;;  %v7430_v34 = vpop.permute.xlu2 %2469 }
 0x3ed   : > { %9997 = vst [vmem:[#allocation55_spill] sm:$0xff] %v7430_v34  ;;  %v7522_v34 = vld [vmem:[#allocation2 + $0x112] sm:$0xff] }
 0x3ee   : > { %v2096_v19 = vmax.f32 %v2055_v45, 0.0 }
 0x3ef   : > { %v7372_v32 = vld [vmem:[#allocation2 + $0x151] sm:$0xff] }
 0x3f0   : > { %2129 = vst.msk [vmem:[#allocation2 + $0x159] sm:$0xff] %vm223_vm0, %v2096_v19  ;;  %v7464_v19 = vpop.permute.xlu0 %2459 }
 0x3f1   : > { %10002 = vst [vmem:[#allocation7_spill] sm:$0xff] %v7464_v19 }
 0x3f2   : > { %2505 = vrot.lane.b32.xlu2 %v7358_v4, %s5207_s10  ;;  %2509 = vrot.lane.b32.xlu1 %v7360_v21, %s5207_s10 }
 0x3f3   : > { %2501 = vrot.lane.b32.xlu0 %v7366_v38, %s5207_s10  ;;  %v2057_v54 = vpop.f32.mrf.mxu2 }
 0x3f4   : > { %v2058_v5 = vadd.f32 %v6980_v61, %v2057_v54  ;;  %v7466_v54 = vld [vmem:[#allocation2 + $0xc2] sm:$0xff] }
 0x3f6   : > { %v2097_v36 = vmax.f32 %v2058_v5, 0.0  ;;  %v7468_v5 = vld [vmem:[#allocation2 + $0xaa] sm:$0xff] }
 0x3f7   : > { %v7386_v50 = vld [vmem:[#allocation2 + $0x159] sm:$0xff] }
 0x3f8   : > { %2130 = vst.msk [vmem:[#allocation2 + $0x169] sm:$0xff] %vm223_vm0, %v2097_v36  ;;  %v7474_v36 = vld [vmem:[#allocation2 + $0xb2] sm:$0xff]  ;;  %v7556_v31 = vld [vmem:[#allocation2 + $0x15a] sm:$0xff] }
 0x3f9   : > { %10020 = vst [vmem:[#allocation138_spill] sm:$0xff] %v7556_v31 }
 0x3fa   : > { %2511 = vrot.lane.b32.xlu2 %v7372_v32, %s5207_s10 }
 0x3fb   : > { %2507 = vrot.lane.b32.xlu0 %v7376_v13, %s5207_s10  ;;  %v2060_v42 = vpop.f32.mrf.mxu2 }
 0x3fc   : > { %v2061_v2 = vadd.f32 %v6980_v61, %v2060_v42  ;;  %v7460_v44 = vpop.permute.xlu1 %2467 }
 0x3fd   : > { %10000 = vst [vmem:[#allocation6_spill] sm:$0xff] %v7460_v44  ;;  %v7528_v44 = vld [vmem:[#allocation2 + $0x122] sm:$0xff] }
 0x3fe   : > { %v2098_v40 = vmax.f32 %v2061_v2, 0.0 }
 0x3ff   : > { %v7381_v37 = vld [vmem:[#allocation2 + $0x169] sm:$0xff] }
 0x400   : > { %2131 = vst.msk [vmem:[#allocation2 + $0x171] sm:$0xff] %vm223_vm0, %v2098_v40  ;;  %2515 = vrot.lane.b32.xlu1 %v7381_v37, %s5207_s10  ;;  %v7482_v40 = vpop.permute.xlu0 %2465 }
 0x401   : > { %10005 = vst [vmem:[#allocation26_spill] sm:$0xff] %v7482_v40 }
 0x403   : > { %2513 = vrot.lane.b32.xlu0 %v7386_v50, %s5207_s10  ;;  %v2063_v27 = vpop.f32.mrf.mxu2 }
 0x404   : > { %v2064_v6 = vadd.f32 %v6980_v61, %v2063_v27  ;;  %v7446_v11 = vpop.permute.xlu2 %2475  ;;  %v7484_v27 = vld [vmem:[#allocation2 + $0xe2] sm:$0xff] }
 0x405   : > { %9999 = vst [vmem:[#allocation39_spill] sm:$0xff] %v7446_v11 }
 0x406   : > { %v2099_v3 = vmax.f32 %v2064_v6, 0.0  ;;  %v7486_v6 = vld [vmem:[#allocation2 + $0xca] sm:$0xff] }
 0x407   : > { %v7391_v16 = vld [vmem:[#allocation2 + $0x171] sm:$0xff] }
 0x408   : > { %2132 = vst.msk [vmem:[#allocation2 + $0x181] sm:$0xff] %vm223_vm0, %v2099_v3  ;;  %2517 = vrot.lane.b32.xlu2 %v7391_v16, %s5207_s10  ;;  %2585 = vrot.lane.b32.xlu1 %v2199_v0, %s5208_s11  ;;  %v7492_v0 = vld [vmem:[#allocation2 + $0xda] sm:$0xff]  ;;  %v7554_v10 = vld [vmem:[#allocation2 + $0x172] sm:$0xff] }
 0x409   : > { %10019 = vst [vmem:[#allocation57_spill] sm:$0xff] %v7554_v10 }
 0x40b   : > { %2583 = vrot.lane.b32.xlu0 %v2198_v17, %s5208_s11  ;;  %v2066_v51 = vpop.f32.mrf.mxu2 }
 0x40c   : > { %v2067_v48 = vadd.f32 %v6980_v61, %v2066_v51  ;;  %v7416_v61 = vld [vmem:[#allocation2 + $0x52] sm:$0xff]  ;;  %v7500_v51 = vpop.permute.xlu0 %2471 }
 0x40d   : > { %10008 = vst [vmem:[#allocation15_spill] sm:$0xff] %v7500_v51  ;;  %v7520_v51 = vld [vmem:[#allocation2 + $0x12a] sm:$0xff] }
 0x40e   : > { %v2100_v29 = vmax.f32 %v2067_v48, 0.0  ;;  %v7502_v48 = vld [vmem:[#allocation2 + $0x10a] sm:$0xff] }
 0x410   : > { %2133 = vst.msk [vmem:[#allocation2 + $0x189] sm:$0xff] %vm223_vm0, %v2100_v29  ;;  %2591 = vrot.lane.b32.xlu1 %v7401_v41, %s5208_s11  ;;  %2587 = vrot.lane.b32.xlu2 %v7403_v52, %s5208_s11  ;;  %v7504_v29 = vld [vmem:[#allocation2 + $0xf2] sm:$0xff] }
 0x413   : > { %2589 = vrot.lane.b32.xlu0 %v7410_v25, %s5208_s11 }
 0x414   : > { %v7478_v42 = vpop.permute.xlu1 %2473 }
 0x415   : > { %10003 = vst [vmem:[#allocation60_spill] sm:$0xff] %v7478_v42 }
 0x418   : > { %2597 = vrot.lane.b32.xlu1 %v7416_v61, %s5208_s11  ;;  %2593 = vrot.lane.b32.xlu2 %v7418_v22, %s5208_s11 }
 0x41b   : > { %2595 = vrot.lane.b32.xlu0 %v7426_v18, %s5208_s11 }
 0x41c   : > { %v7462_v45 = vpop.permute.xlu2 %2481 }
 0x41d   : > { %10001 = vst [vmem:[#allocation61_spill] sm:$0xff] %v7462_v45  ;;  %v7510_v45 = vld [vmem:[#allocation2 + $0xfa] sm:$0xff] }
 0x420   : > { %2603 = vrot.lane.b32.xlu1 %v7432_v26, %s5208_s11  ;;  %2599 = vrot.lane.b32.xlu2 %v7434_v56, %s5208_s11 }
 0x423   : > { %2601 = vrot.lane.b32.xlu0 %v7440_v8, %s5208_s11 }
 0x424   : > { %v7516_v11 = vpop.permute.xlu0 %2477 }
 0x425   : > { %10010 = vst [vmem:[#allocation66_spill] sm:$0xff] %v7516_v11 }
 0x428   : > { %2609 = vrot.lane.b32.xlu1 %v7448_v12, %s5208_s11  ;;  %2605 = vrot.lane.b32.xlu2 %v7450_v7, %s5208_s11 }
 0x42b   : > { %2607 = vrot.lane.b32.xlu0 %v7456_v24, %s5208_s11 }
 0x42c   : > { %v7496_v3 = vpop.permute.xlu1 %2479 }
 0x42d   : > { %10006 = vst [vmem:[#allocation44_spill] sm:$0xff] %v7496_v3 }
 0x430   : > { %2615 = vrot.lane.b32.xlu1 %v7466_v54, %s5208_s11  ;;  %2611 = vrot.lane.b32.xlu2 %v7468_v5, %s5208_s11 }
 0x433   : > { %2613 = vrot.lane.b32.xlu0 %v7474_v36, %s5208_s11 }
 0x434   : > { %v7480_v2 = vpop.permute.xlu2 %2487 }
 0x435   : > { %10004 = vst [vmem:[#allocation17_spill] sm:$0xff] %v7480_v2  ;;  %v7564_v2 = vld [vmem:[#allocation2 + $0x16a] sm:$0xff] }
 0x436   : > { %10022 = vst [vmem:[#allocation154_spill] sm:$0xff] %v7564_v2 }
 0x438   : > { %2621 = vrot.lane.b32.xlu1 %v7484_v27, %s5208_s11  ;;  %2617 = vrot.lane.b32.xlu2 %v7486_v6, %s5208_s11 }
 0x43b   : > { %2619 = vrot.lane.b32.xlu0 %v7492_v0, %s5208_s11 }
 0x43c   : > { %v7498_v17 = vpop.permute.xlu2 %2493  ;;  %v7534_v11 = vpop.permute.xlu0 %2483 }
 0x43d   : > { %10007 = vst [vmem:[#allocation82_spill] sm:$0xff] %v7498_v17  ;;  %v7546_v17 = vld [vmem:[#allocation2 + $0x142] sm:$0xff] }
 0x43e   : > { %10013 = vst [vmem:[#allocation33_spill] sm:$0xff] %v7534_v11 }
 0x440   : > { %2627 = vrot.lane.b32.xlu1 %v7502_v48, %s5208_s11  ;;  %2623 = vrot.lane.b32.xlu2 %v7504_v29, %s5208_s11 }
 0x443   : > { %2625 = vrot.lane.b32.xlu0 %v7510_v45, %s5208_s11 }
 0x444   : > { %v7514_v3 = vpop.permute.xlu1 %2485  ;;  %v7518_v42 = vpop.permute.xlu2 %2499 }
 0x445   : > { %10009 = vst [vmem:[#allocation16_spill] sm:$0xff] %v7514_v3  ;;  %v2138_v3 = vld [vmem:[#allocation2 + $0x30] sm:$0xff] }
 0x446   : > { %10011 = vst [vmem:[#allocation81_spill] sm:$0xff] %v7518_v42  ;;  %v7536_v42 = vld [vmem:[#allocation2 + $0x152] sm:$0xff] }
 0x447   : > { %10014 = vst [vmem:[#allocation64_spill] sm:$0xff] %v7536_v42 }
 0x448   : > { %2633 = vrot.lane.b32.xlu1 %v7520_v51, %s5208_s11  ;;  %2629 = vrot.lane.b32.xlu2 %v7522_v34, %s5208_s11 }
 0x44b   : > { %2631 = vrot.lane.b32.xlu0 %v7528_v44, %s5208_s11 }
 0x44c   : > { %v7532_v40 = vpop.permute.xlu1 %2491  ;;  %v7540_v39 = vpop.permute.xlu2 %2505 }
 0x44d   : > { %10012 = vst [vmem:[#allocation8_spill] sm:$0xff] %v7532_v40 }
 0x44e   : > { %10016 = vst [vmem:[#allocation113_spill] sm:$0xff] %v7540_v39 }
 0x450   : > { %2639 = vrot.lane.b32.xlu1 %v7536_v42, %s5208_s11  ;;  %2635 = vrot.lane.b32.xlu2 %v7538_v53, %s5208_s11  ;;  %v2141_v42 = vld [vmem:[#allocation2 + $0x50] sm:$0xff]  ;;  %v2142_v53 = vld [vmem:[#allocation2 + $0x60] sm:$0xff] }
 0x453   : > { %2637 = vrot.lane.b32.xlu0 %v7546_v17, %s5208_s11 }
 0x454   : > { %v7552_v11 = vpop.permute.xlu1 %2497  ;;  %v7562_v39 = vpop.permute.xlu2 %2511 }
 0x455   : > { %v7550_v19 = vpop.permute.xlu0 %2489  ;;  %10018 = vst [vmem:[#allocation63_spill] sm:$0xff] %v7552_v11  ;;  %v7570_v11 = vld [vmem:[#allocation2 + $0x18] sm:$0xff] }
 0x456   : > { %10017 = vst [vmem:[#allocation28_spill] sm:$0xff] %v7550_v19 }
 0x457   : > { %10021 = vst [vmem:[#allocation146_spill] sm:$0xff] %v7562_v39 }
 0x458   : > { %2645 = vrot.lane.b32.xlu1 %v7554_v10, %s5208_s11  ;;  %2641 = vrot.lane.b32.xlu2 %v7556_v31, %s5208_s11  ;;  %10024 = vst [vmem:[#allocation32_spill] sm:$0xff] %v7570_v11  ;;  %v2137_v10 = vld [vmem:[#allocation2 + $0x20] sm:$0xff] }
 0x45b   : > { %2643 = vrot.lane.b32.xlu0 %v7564_v2, %s5208_s11  ;;  %v2139_v2 = vld [vmem:[#allocation2 + $0x38] sm:$0xff] }
 0x45c   : > { %v7572_v19 = vpop.permute.xlu1 %2503 }
 0x45d   : > { %v7568_v40 = vpop.permute.xlu0 %2495  ;;  %10025 = vst [vmem:[#allocation49_spill] sm:$0xff] %v7572_v19 }
 0x45e   : > { %10023 = vst [vmem:[#allocation20_spill] sm:$0xff] %v7568_v40  ;;  %v2140_v40 = vld [vmem:[#allocation2 + $0x48] sm:$0xff] }
 0x460   : > { %2715 = vrot.lane.b32.xlu1 %v2138_v3, %s5209_s12  ;;  %2711 = vrot.lane.b32.xlu2 %v7570_v11, %s5209_s12 }
 0x462   : > { %v7577_v31 = vpop.permute.xlu2 %2517 }
 0x463   : > { %10026 = vst [vmem:[#allocation87_spill] sm:$0xff] %v7577_v31  ;;  %2713 = vrot.lane.b32.xlu0 %v2137_v10, %s5209_s12  ;;  %v2144_v31 = vld [vmem:[#allocation2 + $0x78] sm:$0xff]  ;;  %v7593_v10 = vld [vmem:[#allocation2 + $0x68] sm:$0xff] }
 0x464   : > { %v7584_v19 = vpop.permute.xlu1 %2509 }
 0x465   : > { %v7580_v39 = vpop.permute.xlu0 %2501  ;;  %10028 = vst [vmem:[#allocation98_spill] sm:$0xff] %v7584_v19  ;;  %v2148_v19 = vld [vmem:[#allocation2 + $0xa8] sm:$0xff] }
 0x466   : > { %10027 = vst [vmem:[#allocation97_spill] sm:$0xff] %v7580_v39 }
 0x468   : > { %2721 = vrot.lane.b32.xlu1 %v2141_v42, %s5209_s12  ;;  %2717 = vrot.lane.b32.xlu2 %v2139_v2, %s5209_s12 }
 0x46a   : > { %v7586_v3 = vpop.permute.xlu2 %2587 }
 0x46b   : > { %10029 = vst [vmem:[#allocation120_spill] sm:$0xff] %v7586_v3  ;;  %2719 = vrot.lane.b32.xlu0 %v2140_v40, %s5209_s12  ;;  %v2147_v40 = vld [vmem:[#allocation2 + $0x98] sm:$0xff]  ;;  %v7603_v3 = vld [vmem:[#allocation2 + $0x80] sm:$0xff] }
 0x46c   : > { %10034 = vst [vmem:[#allocation137_spill] sm:$0xff] %v7603_v3 }
 0x46d   : > { %v7589_v11 = vpop.permute.xlu0 %2507 }
 0x46e   : > { %10030 = vst [vmem:[#allocation34_spill] sm:$0xff] %v7589_v11 }
 0x470   : > { %2727 = vrot.lane.b32.xlu1 %v2144_v31, %s5209_s12  ;;  %2723 = vrot.lane.b32.xlu2 %v2142_v53, %s5209_s12  ;;  %v7608_v53 = vld [vmem:[#allocation2 + $0x90] sm:$0xff] }
 0x471   : > { %10035 = vst [vmem:[#allocation161_spill] sm:$0xff] %v7608_v53 }
 0x472   : > { %v7595_v42 = vpop.permute.xlu1 %2515  ;;  %v7597_v2 = vpop.permute.xlu2 %2593 }
 0x473   : > { %10031 = vst [vmem:[#allocation53_spill] sm:$0xff] %v7595_v42  ;;  %2725 = vrot.lane.b32.xlu0 %v7593_v10, %s5209_s12  ;;  %v7618_v42 = vld [vmem:[#allocation2 + $0xc0] sm:$0xff] }
 0x474   : > { %10032 = vst [vmem:[#allocation83_spill] sm:$0xff] %v7597_v2 }
 0x475   : > { %v7601_v39 = vpop.permute.xlu0 %2513  ;;  %10039 = vst [vmem:[#allocation86_spill] sm:$0xff] %v7618_v42 }
 0x476   : > { %10033 = vst [vmem:[#allocation136_spill] sm:$0xff] %v7601_v39 }
 0x478   : > { %2733 = vrot.lane.b32.xlu1 %v2147_v40, %s5209_s12  ;;  %2729 = vrot.lane.b32.xlu2 %v7603_v3, %s5209_s12  ;;  %v7623_v40 = vld [vmem:[#allocation2 + $0xb0] sm:$0xff]  ;;  %v7635_v3 = vld [vmem:[#allocation2 + $0xc8] sm:$0xff] }
 0x479   : > { %10040 = vst [vmem:[#allocation94_spill] sm:$0xff] %v7623_v40 }
 0x47a   : > { %v7610_v31 = vpop.permute.xlu1 %2585  ;;  %v7612_v11 = vpop.permute.xlu2 %2599  ;;  %10045 = vst [vmem:[#allocation79_spill] sm:$0xff] %v7635_v3 }
 0x47b   : > { %10036 = vst [vmem:[#allocation18_spill] sm:$0xff] %v7610_v31  ;;  %2731 = vrot.lane.b32.xlu0 %v7608_v53, %s5209_s12  ;;  %v2261_v53 = vld [vmem:[#allocation2 + $0x188] sm:$0xff] }
 0x47c   : > { %10037 = vst [vmem:[#allocation19_spill] sm:$0xff] %v7612_v11 }
 0x47d   : > { %v7616_v2 = vpop.permute.xlu0 %2583 }
 0x47e   : > { %10038 = vst [vmem:[#allocation72_spill] sm:$0xff] %v7616_v2  ;;  %v7633_v2 = vld [vmem:[#allocation2 + $0xe0] sm:$0xff] }
 0x47f   : > { %10044 = vst [vmem:[#allocation62_spill] sm:$0xff] %v7633_v2 }
 0x480   : > { %2739 = vrot.lane.b32.xlu1 %v7618_v42, %s5209_s12  ;;  %2735 = vrot.lane.b32.xlu2 %v2148_v19, %s5209_s12  ;;  %v7641_v19 = vld [vmem:[#allocation2 + $0xd8] sm:$0xff]  ;;  %v7651_v42 = vld [vmem:[#allocation2 + $0x108] sm:$0xff] }
 0x481   : > { %10046 = vst [vmem:[#allocation133_spill] sm:$0xff] %v7641_v19 }
 0x482   : > { %v7625_v39 = vpop.permute.xlu1 %2591  ;;  %v7627_v31 = vpop.permute.xlu2 %2605  ;;  %10050 = vst [vmem:[#allocation9_spill] sm:$0xff] %v7651_v42 }
 0x483   : > { %10041 = vst [vmem:[#allocation108_spill] sm:$0xff] %v7625_v39  ;;  %2737 = vrot.lane.b32.xlu0 %v7623_v40, %s5209_s12  ;;  %v7653_v40 = vld [vmem:[#allocation2 + $0xf0] sm:$0xff] }
 0x484   : > { %10042 = vst [vmem:[#allocation118_spill] sm:$0xff] %v7627_v31 }
 0x485   : > { %v7631_v11 = vpop.permute.xlu0 %2589  ;;  %10051 = vst [vmem:[#allocation37_spill] sm:$0xff] %v7653_v40 }
 0x486   : > { %10043 = vst [vmem:[#allocation119_spill] sm:$0xff] %v7631_v11 }
 0x488   : > { %2745 = vrot.lane.b32.xlu1 %v7633_v2, %s5209_s12  ;;  %2741 = vrot.lane.b32.xlu2 %v7635_v3, %s5209_s12  ;;  %v7659_v2 = vld [vmem:[#allocation2 + $0xf8] sm:$0xff]  ;;  %v7669_v3 = vld [vmem:[#allocation2 + $0x110] sm:$0xff] }
 0x489   : > { %10052 = vst [vmem:[#allocation70_spill] sm:$0xff] %v7659_v2 }
 0x48a   : > { %v7643_v39 = vpop.permute.xlu1 %2597  ;;  %v7645_v31 = vpop.permute.xlu2 %2611  ;;  %10056 = vst [vmem:[#allocation116_spill] sm:$0xff] %v7669_v3 }
 0x48b   : > { %10047 = vst [vmem:[#allocation149_spill] sm:$0xff] %v7643_v39  ;;  %2743 = vrot.lane.b32.xlu0 %v7641_v19, %s5209_s12  ;;  %v2159_v19 = vld [vmem:[#allocation2 + $0x128] sm:$0xff] }
 0x48c   : > { %10048 = vst [vmem:[#allocation159_spill] sm:$0xff] %v7645_v31 }
 0x48d   : > { %v7649_v11 = vpop.permute.xlu0 %2595 }
 0x48e   : > { %10049 = vst [vmem:[#allocation160_spill] sm:$0xff] %v7649_v11 }
 0x490   : > { %2751 = vrot.lane.b32.xlu1 %v7651_v42, %s5209_s12  ;;  %2747 = vrot.lane.b32.xlu2 %v7653_v40, %s5209_s12  ;;  %v7674_v42 = vld [vmem:[#allocation2 + $0x120] sm:$0xff] }
 0x491   : > { %10057 = vst [vmem:[#allocation125_spill] sm:$0xff] %v7674_v42 }
 0x492   : > { %v7661_v39 = vpop.permute.xlu1 %2603  ;;  %v7663_v31 = vpop.permute.xlu2 %2617 }
 0x493   : > { %10053 = vst [vmem:[#allocation71_spill] sm:$0xff] %v7661_v39  ;;  %2749 = vrot.lane.b32.xlu0 %v7659_v2, %s5209_s12  ;;  %v7684_v2 = vld [vmem:[#allocation2 + $0x138] sm:$0xff] }
 0x494   : > { %10054 = vst [vmem:[#allocation101_spill] sm:$0xff] %v7663_v31 }
 0x495   : > { %v7667_v11 = vpop.permute.xlu0 %2601  ;;  %10061 = vst [vmem:[#allocation148_spill] sm:$0xff] %v7684_v2 }
 0x496   : > { %10055 = vst [vmem:[#allocation107_spill] sm:$0xff] %v7667_v11  ;;  %v2162_v11 = vld [vmem:[#allocation2 + $0x150] sm:$0xff] }
 0x498   : > { %2757 = vrot.lane.b32.xlu1 %v2159_v19, %s5209_s12  ;;  %2753 = vrot.lane.b32.xlu2 %v7669_v3, %s5209_s12  ;;  %v7689_v19 = vld [vmem:[#allocation2 + $0x140] sm:$0xff] }
 0x499   : > { %10062 = vst [vmem:[#allocation157_spill] sm:$0xff] %v7689_v19 }
 0x49a   : > { %v7676_v40 = vpop.permute.xlu1 %2609  ;;  %v7678_v39 = vpop.permute.xlu2 %2623 }
 0x49b   : > { %10058 = vst [vmem:[#allocation67_spill] sm:$0xff] %v7676_v40  ;;  %2755 = vrot.lane.b32.xlu0 %v7674_v42, %s5209_s12  ;;  %v7699_v42 = vld [vmem:[#allocation2 + $0x158] sm:$0xff] }
 0x49c   : > { %10059 = vst [vmem:[#allocation69_spill] sm:$0xff] %v7678_v39 }
 0x49d   : > { %v7682_v31 = vpop.permute.xlu0 %2607  ;;  %10066 = vst [vmem:[#allocation89_spill] sm:$0xff] %v7699_v42 }
 0x49e   : > { %10060 = vst [vmem:[#allocation141_spill] sm:$0xff] %v7682_v31  ;;  %v2165_v31 = vld [vmem:[#allocation2 + $0x170] sm:$0xff] }
 0x4a0   : > { %2763 = vrot.lane.b32.xlu1 %v2162_v11, %s5209_s12  ;;  %2759 = vrot.lane.b32.xlu2 %v7684_v2, %s5209_s12  ;;  %v7704_v11 = vld [vmem:[#allocation2 + $0x168] sm:$0xff] }
 0x4a2   : > { %v7691_v3 = vpop.permute.xlu1 %2615  ;;  %v7693_v40 = vpop.permute.xlu2 %2629 }
 0x4a3   : > { %10063 = vst [vmem:[#allocation23_spill] sm:$0xff] %v7691_v3  ;;  %2761 = vrot.lane.b32.xlu0 %v7689_v19, %s5209_s12  ;;  %v2262_v19 = vld [vmem:[#allocation2 + $0x19] sm:$0xff] }
 0x4a4   : > { %10064 = vst [vmem:[#allocation36_spill] sm:$0xff] %v7693_v40 }
 0x4a5   : > { %v7697_v39 = vpop.permute.xlu0 %2613 }
 0x4a6   : > { %10065 = vst [vmem:[#allocation54_spill] sm:$0xff] %v7697_v39  ;;  %v2260_v39 = vld [vmem:[#allocation2 + $0x180] sm:$0xff] }
 0x4a8   : > { %2769 = vrot.lane.b32.xlu1 %v2165_v31, %s5209_s12  ;;  %2765 = vrot.lane.b32.xlu2 %v7699_v42, %s5209_s12 }
 0x4aa   : > { %v7706_v2 = vpop.permute.xlu1 %2621  ;;  %v7708_v3 = vpop.permute.xlu2 %2635 }
 0x4ab   : > { %10067 = vst [vmem:[#allocation99_spill] sm:$0xff] %v7706_v2  ;;  %2767 = vrot.lane.b32.xlu0 %v7704_v11, %s5209_s12 }
 0x4ac   : > { %10068 = vst [vmem:[#allocation100_spill] sm:$0xff] %v7708_v3 }
 0x4ad   : > { %v7712_v40 = vpop.permute.xlu0 %2619 }
 0x4b0   : > { %2839 = vrot.lane.b32.xlu1 %v2262_v19, %s5210_s13  ;;  %2771 = vrot.lane.b32.xlu2 %v2260_v39, %s5209_s12 }
 0x4b2   : > { %v7716_v31 = vpop.permute.xlu1 %2627  ;;  %v7718_v42 = vpop.permute.xlu2 %2641 }
 0x4b3   : > { %2773 = vrot.lane.b32.xlu0 %v2261_v53, %s5209_s12 }
 0x4b5   : > { %v7721_v2 = vpop.permute.xlu0 %2625 }
 0x4b8   : > { %2845 = vrot.lane.b32.xlu1 %v7223_v62, %s5210_s13  ;;  %2841 = vrot.lane.b32.xlu2 %v7177_v35, %s5210_s13 }
 0x4ba   : > { %v7727_v3 = vpop.permute.xlu1 %2633  ;;  %v7729_v19 = vpop.permute.xlu2 %2711 }
 0x4bb   : > { %10069 = vst [vmem:[#allocation123_spill] sm:$0xff] %v7727_v3  ;;  %2843 = vrot.lane.b32.xlu0 %v7200_v59, %s5210_s13 }
 0x4bd   : > { %v7733_v39 = vpop.permute.xlu0 %2631 }
 0x4be   : > { %10070 = vst [vmem:[#allocation124_spill] sm:$0xff] %v7733_v39  ;;  %v2376_v39 = vld [vmem:[#allocation2 + $0xf9] sm:$0xff] }
 0x4c0   : > { %2851 = vrot.lane.b32.xlu1 %v7255_v33, %s5210_s13  ;;  %2847 = vrot.lane.b32.xlu2 %v7241_v1, %s5210_s13 }
 0x4c2   : > { %v7739_v53 = vpop.permute.xlu1 %2639  ;;  %v7741_v62 = vpop.permute.xlu2 %2717 }
 0x4c3   : > { %10071 = vst [vmem:[#allocation58_spill] sm:$0xff] %v7739_v53  ;;  %2849 = vrot.lane.b32.xlu0 %v7247_v57, %s5210_s13  ;;  %v7967_v53 = vld [vmem:[#allocation2 + $0x18a] sm:$0xff] }
 0x4c5   : > { %v7745_v35 = vpop.permute.xlu0 %2637 }
 0x4c8   : > { %2857 = vrot.lane.b32.xlu1 %v7279_v46, %s5210_s13  ;;  %2853 = vrot.lane.b32.xlu2 %v7263_v55, %s5210_s13 }
 0x4ca   : > { %v7751_v59 = vpop.permute.xlu1 %2645  ;;  %v7753_v33 = vpop.permute.xlu2 %2723 }
 0x4cb   : > { %10072 = vst [vmem:[#allocation128_spill] sm:$0xff] %v7751_v59  ;;  %2855 = vrot.lane.b32.xlu0 %v7271_v28, %s5210_s13  ;;  %v7831_v59 = vld [vmem:[#allocation2 + $0x181] sm:$0xff] }
 0x4cc   : > { %10073 = vst [vmem:[#allocation139_spill] sm:$0xff] %v7753_v33  ;;  %v10120_v33 = vld [vmem:[#allocation101_spill] sm:$0xff] }
 0x4cd   : > { %v7757_v1 = vpop.permute.xlu0 %2643 }
 0x4d0   : > { %2863 = vrot.lane.b32.xlu1 %v7303_v15, %s5210_s13  ;;  %2859 = vrot.lane.b32.xlu2 %v7287_v49, %s5210_s13 }
 0x4d2   : > { %v7763_v57 = vpop.permute.xlu1 %2715  ;;  %v7765_v46 = vpop.permute.xlu2 %2729 }
 0x4d3   : > { %10074 = vst [vmem:[#allocation140_spill] sm:$0xff] %v7765_v46  ;;  %2861 = vrot.lane.b32.xlu0 %v7295_v43, %s5210_s13  ;;  %v2330_v46 = vld [vmem:[#allocation2 + $0x50] sm:$0xff] }
 0x4d5   : > { %v7769_v55 = vpop.permute.xlu0 %2713 }
 0x4d8   : > { %2869 = vrot.lane.b32.xlu1 %v7334_v14, %s5210_s13  ;;  %2865 = vrot.lane.b32.xlu2 %v7311_v63, %s5210_s13 }
 0x4da   : > { %v7775_v28 = vpop.permute.xlu1 %2721  ;;  %v7777_v15 = vpop.permute.xlu2 %2735 }
 0x4db   : > { %10075 = vst [vmem:[#allocation21_spill] sm:$0xff] %v7777_v15  ;;  %2867 = vrot.lane.b32.xlu0 %v7319_v30, %s5210_s13 }
 0x4dd   : > { %v7781_v49 = vpop.permute.xlu0 %2719 }
 0x4e0   : > { %2875 = vrot.lane.b32.xlu1 %v7352_v58, %s5210_s13  ;;  %2871 = vrot.lane.b32.xlu2 %v7321_v20, %s5210_s13 }
 0x4e2   : > { %v7787_v43 = vpop.permute.xlu1 %2727  ;;  %v7789_v14 = vpop.permute.xlu2 %2741 }
 0x4e3   : > { %10076 = vst [vmem:[#allocation22_spill] sm:$0xff] %v7787_v43  ;;  %2873 = vrot.lane.b32.xlu0 %v7330_v60, %s5210_s13 }
 0x4e5   : > { %v7793_v63 = vpop.permute.xlu0 %2725 }
 0x4e6   : > { %10077 = vst [vmem:[#allocation78_spill] sm:$0xff] %v7793_v63  ;;  %v2359_v63 = vld [vmem:[#allocation2 + $0x31] sm:$0xff] }
 0x4e8   : > { %2881 = vrot.lane.b32.xlu1 %v7366_v38, %s5210_s13  ;;  %2877 = vrot.lane.b32.xlu2 %v7332_v47, %s5210_s13 }
 0x4ea   : > { %v7799_v30 = vpop.permute.xlu1 %2733  ;;  %v7801_v58 = vpop.permute.xlu2 %2747 }
 0x4eb   : > { %10078 = vst [vmem:[#allocation88_spill] sm:$0xff] %v7799_v30  ;;  %2879 = vrot.lane.b32.xlu0 %v7344_v9, %s5210_s13 }
 0x4ed   : > { %v7805_v20 = vpop.permute.xlu0 %2731 }
 0x4ee   : > { %10079 = vst [vmem:[#allocation96_spill] sm:$0xff] %v7805_v20  ;;  %v2327_v20 = vld [vmem:[#allocation2 + $0x30] sm:$0xff] }
 0x4f0   : > { %2887 = vrot.lane.b32.xlu1 %v7376_v13, %s5210_s13  ;;  %2883 = vrot.lane.b32.xlu2 %v7346_v23, %s5210_s13 }
 0x4f2   : > { %v7811_v60 = vpop.permute.xlu1 %2739  ;;  %v7813_v38 = vpop.permute.xlu2 %2753 }
 0x4f3   : > { %10080 = vst [vmem:[#allocation110_spill] sm:$0xff] %v7811_v60  ;;  %2885 = vrot.lane.b32.xlu0 %v7358_v4, %s5210_s13 }
 0x4f5   : > { %v7817_v47 = vpop.permute.xlu0 %2737 }
 0x4f6   : > { %10081 = vst [vmem:[#allocation121_spill] sm:$0xff] %v7817_v47 }
 0x4f8   : > { %2893 = vrot.lane.b32.xlu1 %v7386_v50, %s5210_s13  ;;  %2889 = vrot.lane.b32.xlu2 %v7360_v21, %s5210_s13 }
 0x4fa   : > { %v7823_v9 = vpop.permute.xlu1 %2745  ;;  %v7825_v13 = vpop.permute.xlu2 %2759 }
 0x4fb   : > { %10082 = vst [vmem:[#allocation122_spill] sm:$0xff] %v7825_v13  ;;  %2891 = vrot.lane.b32.xlu0 %v7372_v32, %s5210_s13  ;;  %v7845_v32 = vld [vmem:[#allocation2 + $0x189] sm:$0xff] }
 0x4fd   : > { %v7829_v23 = vpop.permute.xlu0 %2743 }
 0x500   : > { %2899 = vrot.lane.b32.xlu1 %v7831_v59, %s5210_s13  ;;  %2895 = vrot.lane.b32.xlu2 %v7381_v37, %s5210_s13 }
 0x502   : > { %v7837_v4 = vpop.permute.xlu1 %2751  ;;  %v7839_v21 = vpop.permute.xlu2 %2765 }
 0x503   : > { %2897 = vrot.lane.b32.xlu0 %v7391_v16, %s5210_s13 }
 0x505   : > { %v7843_v50 = vpop.permute.xlu0 %2749 }
 0x508   : > { %2969 = vrot.lane.b32.xlu1 %v7410_v25, %s5211_s14  ;;  %2901 = vrot.lane.b32.xlu2 %v7845_v32, %s5210_s13 }
 0x50a   : > { %v7851_v60 = vpop.permute.xlu1 %2757  ;;  %v7853_v37 = vpop.permute.xlu2 %2771 }
 0x50b   : > { %10083 = vst [vmem:[#allocation68_spill] sm:$0xff] %v7851_v60  ;;  %2967 = vrot.lane.b32.xlu0 %v7403_v52, %s5211_s14 }
 0x50d   : > { %v7857_v47 = vpop.permute.xlu0 %2755 }
 0x510   : > { %2975 = vrot.lane.b32.xlu1 %v7426_v18, %s5211_s14  ;;  %2971 = vrot.lane.b32.xlu2 %v7401_v41, %s5211_s14 }
 0x512   : > { %v7863_v16 = vpop.permute.xlu1 %2763  ;;  %v7865_v25 = vpop.permute.xlu2 %2841 }
 0x513   : > { %10084 = vst [vmem:[#allocation127_spill] sm:$0xff] %v7863_v16  ;;  %2973 = vrot.lane.b32.xlu0 %v7418_v22, %s5211_s14 }
 0x515   : > { %v7869_v15 = vpop.permute.xlu0 %2761 }
 0x516   : > { %10085 = vst [vmem:[#allocation135_spill] sm:$0xff] %v7869_v15 }
 0x518   : > { %2981 = vrot.lane.b32.xlu1 %v7440_v8, %s5211_s14  ;;  %2977 = vrot.lane.b32.xlu2 %v7416_v61, %s5211_s14 }
 0x51a   : > { %v7875_v52 = vpop.permute.xlu1 %2769  ;;  %v7877_v18 = vpop.permute.xlu2 %2847 }
 0x51b   : > { %2979 = vrot.lane.b32.xlu0 %v7434_v56, %s5211_s14 }
 0x51d   : > { %v7881_v41 = vpop.permute.xlu0 %2767 }
 0x51e   : > { %10086 = vst [vmem:[#allocation151_spill] sm:$0xff] %v7881_v41  ;;  %v10099_v41 = vld [vmem:[#allocation154_spill] sm:$0xff] }
 0x520   : > { %2987 = vrot.lane.b32.xlu1 %v7456_v24, %s5211_s14  ;;  %2983 = vrot.lane.b32.xlu2 %v7432_v26, %s5211_s14 }
 0x522   : > { %v7887_v22 = vpop.permute.xlu1 %2839  ;;  %v7889_v8 = vpop.permute.xlu2 %2853 }
 0x523   : > { %10087 = vst [vmem:[#allocation162_spill] sm:$0xff] %v7889_v8  ;;  %2985 = vrot.lane.b32.xlu0 %v7450_v7, %s5211_s14  ;;  %v2391_v8 = vld [vmem:[#allocation2 + $0x32] sm:$0xff] }
 0x525   : > { %v7893_v61 = vpop.permute.xlu0 %2773 }
 0x526   : > { %10088 = vst [vmem:[#allocation163_spill] sm:$0xff] %v7893_v61 }
 0x528   : > { %2993 = vrot.lane.b32.xlu1 %v7474_v36, %s5211_s14  ;;  %2989 = vrot.lane.b32.xlu2 %v7448_v12, %s5211_s14 }
 0x52a   : > { %v7899_v56 = vpop.permute.xlu1 %2845  ;;  %v7901_v24 = vpop.permute.xlu2 %2859 }
 0x52b   : > { %10089 = vst [vmem:[#allocation12_spill] sm:$0xff] %v7901_v24  ;;  %2991 = vrot.lane.b32.xlu0 %v7468_v5, %s5211_s14  ;;  %v2329_v24 = vld [vmem:[#allocation2 + $0x48] sm:$0xff] }
 0x52d   : > { %v7905_v26 = vpop.permute.xlu0 %2843 }
 0x530   : > { %2999 = vrot.lane.b32.xlu1 %v7492_v0, %s5211_s14  ;;  %2995 = vrot.lane.b32.xlu2 %v7466_v54, %s5211_s14 }
 0x532   : > { %v7911_v7 = vpop.permute.xlu1 %2851  ;;  %v7913_v36 = vpop.permute.xlu2 %2865 }
 0x533   : > { %10090 = vst [vmem:[#allocation41_spill] sm:$0xff] %v7911_v7  ;;  %2997 = vrot.lane.b32.xlu0 %v7486_v6, %s5211_s14  ;;  %v2377_v7 = vld [vmem:[#allocation2 + $0x109] sm:$0xff] }
 0x534   : > { %10091 = vst [vmem:[#allocation76_spill] sm:$0xff] %v7913_v36 }
 0x535   : > { %v7917_v12 = vpop.permute.xlu0 %2849 }
 0x538   : > { %3005 = vrot.lane.b32.xlu1 %v7510_v45, %s5211_s14  ;;  %3001 = vrot.lane.b32.xlu2 %v7484_v27, %s5211_s14 }
 0x53a   : > { %v7923_v5 = vpop.permute.xlu1 %2857  ;;  %v7925_v0 = vpop.permute.xlu2 %2871 }
 0x53b   : > { %10092 = vst [vmem:[#allocation77_spill] sm:$0xff] %v7923_v5  ;;  %3003 = vrot.lane.b32.xlu0 %v7504_v29, %s5211_s14  ;;  %v2328_v5 = vld [vmem:[#allocation2 + $0x38] sm:$0xff] }
 0x53d   : > { %v7929_v54 = vpop.permute.xlu0 %2855 }
 0x53e   : > { %10093 = vst [vmem:[#allocation104_spill] sm:$0xff] %v7929_v54 }
 0x540   : > { %3011 = vrot.lane.b32.xlu1 %v7528_v44, %s5211_s14  ;;  %3007 = vrot.lane.b32.xlu2 %v7502_v48, %s5211_s14  ;;  %v10097_v48 = vld [vmem:[#allocation65_spill] sm:$0xff] }
 0x542   : > { %v7935_v6 = vpop.permute.xlu1 %2863  ;;  %v7937_v61 = vpop.permute.xlu2 %2877 }
 0x543   : > { %10094 = vst [vmem:[#allocation109_spill] sm:$0xff] %v7935_v6  ;;  %3009 = vrot.lane.b32.xlu0 %v7522_v34, %s5211_s14  ;;  %v10100_v34 = vld [vmem:[#allocation64_spill] sm:$0xff] }
 0x545   : > { %v7941_v27 = vpop.permute.xlu0 %2861 }
 0x546   : > { %10095 = vst [vmem:[#allocation117_spill] sm:$0xff] %v7941_v27 }
 0x548   : > { %3017 = vrot.lane.b32.xlu1 %v7546_v17, %s5211_s14  ;;  %3013 = vrot.lane.b32.xlu2 %v7520_v51, %s5211_s14  ;;  %v10102_v51 = vld [vmem:[#allocation138_spill] sm:$0xff] }
 0x54a   : > { %v7947_v36 = vpop.permute.xlu1 %2869  ;;  %v7949_v44 = vpop.permute.xlu2 %2883 }
 0x54b   : > { %10096 = vst [vmem:[#allocation38_spill] sm:$0xff] %v7949_v44  ;;  %3015 = vrot.lane.b32.xlu0 %v10097_v48, %s5211_s14  ;;  %v10103_v48 = vld [vmem:[#allocation57_spill] sm:$0xff] }
 0x54d   : > { %v7953_v6 = vpop.permute.xlu0 %2867 }
 0x54e   : > { %10098 = vst [vmem:[#allocation73_spill] sm:$0xff] %v7953_v6  ;;  %v7977_v6 = vld [vmem:[#allocation2 + $0x182] sm:$0xff] }
 0x550   : > { %3023 = vrot.lane.b32.xlu1 %v10099_v41, %s5211_s14  ;;  %3019 = vrot.lane.b32.xlu2 %v10100_v34, %s5211_s14 }
 0x552   : > { %v7959_v27 = vpop.permute.xlu1 %2875  ;;  %v7961_v17 = vpop.permute.xlu2 %2889 }
 0x553   : > { %10101 = vst [vmem:[#allocation75_spill] sm:$0xff] %v7961_v17  ;;  %3021 = vrot.lane.b32.xlu0 %v10102_v51, %s5211_s14 }
 0x555   : > { %v7965_v30 = vpop.permute.xlu0 %2873 }
 0x558   : > { %3029 = vrot.lane.b32.xlu1 %v7967_v53, %s5211_s14  ;;  %3025 = vrot.lane.b32.xlu2 %v10103_v48, %s5211_s14 }
 0x55a   : > { %v7973_v41 = vpop.permute.xlu1 %2881  ;;  %v7975_v34 = vpop.permute.xlu2 %2895 }
 0x55b   : > { %10104 = vst [vmem:[#allocation144_spill] sm:$0xff] %v7975_v34  ;;  %3027 = vrot.lane.b32.xlu0 %v7977_v6, %s5211_s14 }
 0x55d   : > { %v7981_v51 = vpop.permute.xlu0 %2879 }
 0x560   : > { %3099 = vrot.lane.b32.xlu1 %v2329_v24, %s5212_s15  ;;  %3095 = vrot.lane.b32.xlu2 %v2327_v20, %s5212_s15  ;;  %v2331_v20 = vld [vmem:[#allocation2 + $0x60] sm:$0xff] }
 0x562   : > { %v7985_v16 = vpop.permute.xlu1 %2887  ;;  %v7987_v48 = vpop.permute.xlu2 %2901 }
 0x563   : > { %10105 = vst [vmem:[#allocation150_spill] sm:$0xff] %v7985_v16  ;;  %3097 = vrot.lane.b32.xlu0 %v2328_v5, %s5212_s15  ;;  %v10109_v5 = vld [vmem:[#allocation161_spill] sm:$0xff]  ;;  %v10114_v16 = vld [vmem:[#allocation70_spill] sm:$0xff] }
 0x564   : > { %10106 = vst [vmem:[#allocation158_spill] sm:$0xff] %v7987_v48  ;;  %v2333_v48 = vld [vmem:[#allocation2 + $0x78] sm:$0xff] }
 0x565   : > { %v7990_v34 = vpop.permute.xlu0 %2885 }
 0x566   : > { %10107 = vst [vmem:[#allocation27_spill] sm:$0xff] %v7990_v34  ;;  %v10119_v34 = vld [vmem:[#allocation79_spill] sm:$0xff] }
 0x568   : > { %3105 = vrot.lane.b32.xlu1 %v7593_v10, %s5212_s15  ;;  %3101 = vrot.lane.b32.xlu2 %v2330_v46, %s5212_s15  ;;  %v10110_v46 = vld [vmem:[#allocation137_spill] sm:$0xff] }
 0x56a   : > { %v7995_v17 = vpop.permute.xlu1 %2893  ;;  %v7997_v24 = vpop.permute.xlu2 %2971 }
 0x56b   : > { %3103 = vrot.lane.b32.xlu0 %v2331_v20, %s5212_s15  ;;  %v10111_v20 = vld [vmem:[#allocation37_spill] sm:$0xff] }
 0x56d   : > { %v8000_v15 = vpop.permute.xlu0 %2891 }
 0x56e   : > { %10108 = vst [vmem:[#allocation40_spill] sm:$0xff] %v8000_v15 }
 0x570   : > { %3111 = vrot.lane.b32.xlu1 %v10109_v5, %s5212_s15  ;;  %3107 = vrot.lane.b32.xlu2 %v2333_v48, %s5212_s15  ;;  %v2375_v48 = vld [vmem:[#allocation2 + $0xf1] sm:$0xff] }
 0x572   : > { %v8005_v3 = vpop.permute.xlu1 %2899  ;;  %v8007_v10 = vpop.permute.xlu2 %2977 }
 0x573   : > { %3109 = vrot.lane.b32.xlu0 %v10110_v46, %s5212_s15 }
 0x575   : > { %v8011_v54 = vpop.permute.xlu0 %2897 }
 0x578   : > { %3383 = vrot.lane.b32.xlu1 %v7504_v29, %s5214_s17  ;;  %3127 = vrot.lane.b32.xlu2 %v10111_v20, %s5212_s15 }
 0x57a   : > { %v8017_v15 = vpop.permute.xlu1 %2969  ;;  %v8019_v5 = vpop.permute.xlu2 %2983 }
 0x57b   : > { %10112 = vst [vmem:[#allocation59_spill] sm:$0xff] %v8019_v5  ;;  %3255 = vrot.lane.b32.xlu0 %v2375_v48, %s5213_s16  ;;  %v2360_v5 = vld [vmem:[#allocation2 + $0x39] sm:$0xff] }
 0x57d   : > { %v8022_v43 = vpop.permute.xlu0 %2967 }
 0x580   : > { %3351 = vrot.lane.b32.xlu1 %v2391_v8, %s5214_s17  ;;  %3223 = vrot.lane.b32.xlu2 %v2359_v63, %s5213_s16 }
 0x582   : > { %v8026_v46 = vpop.permute.xlu1 %2975  ;;  %v8028_v29 = vpop.permute.xlu2 %2989 }
 0x583   : > { %10113 = vst [vmem:[#allocation91_spill] sm:$0xff] %v8028_v29  ;;  %3129 = vrot.lane.b32.xlu0 %v10114_v16, %s5212_s15  ;;  %v10118_v29 = vld [vmem:[#allocation28_spill] sm:$0xff] }
 0x584   : > { %v3464_v60 = vsel %vm223_vm0, %v10119_v34, %v10118_v29 }
 0x585   : > { %v8032_v13 = vpop.permute.xlu0 %2973  ;;  %v3496_v44 = vsel %vm1615_vm1, %v3464_v60, %v10120_v33  ;;  %v2409_v60 = vld [vmem:[#allocation2 + $0x10a] sm:$0xff] }
 0x588   : > { %3225 = vrot.lane.b32.xlu1 %v2360_v5, %s5213_s16  ;;  %3257 = vrot.lane.b32.xlu2 %v2376_v39, %s5213_s16  ;;  %v10121_v39 = vld [vmem:[#allocation9_spill] sm:$0xff]  ;;  %v3528_v5 = vsel %vm1648_vm2, %v3496_v44, %v7823_v9 }
 0x589   : > { %v2361_v44 = vld [vmem:[#allocation2 + $0x49] sm:$0xff] }
 0x58a   : > { %v8036_v48 = vpop.permute.xlu1 %2981  ;;  %v8038_v8 = vpop.permute.xlu2 %2995 }
 0x58b   : > { %10115 = vst [vmem:[#allocation102_spill] sm:$0xff] %v8036_v48  ;;  %3385 = vrot.lane.b32.xlu0 %v7510_v45, %s5214_s17  ;;  %v3560_v45 = vsel %vm1681_vm4, %v3528_v5, %v7965_v30  ;;  %v10128_v5 = vld [vmem:[#allocation94_spill] sm:$0xff] }
 0x58c   : > { %10116 = vst [vmem:[#allocation103_spill] sm:$0xff] %v8038_v8 }
 0x58d   : > { %v8042_v63 = vpop.permute.xlu0 %2979 }
 0x58e   : > { %10117 = vst [vmem:[#allocation30_spill] sm:$0xff] %v8042_v63  ;;  %v2392_v63 = vld [vmem:[#allocation2 + $0x3a] sm:$0xff] }
 0x590   : > { %3259 = vrot.lane.b32.xlu1 %v2377_v7, %s5213_s16  ;;  %3131 = vrot.lane.b32.xlu2 %v10121_v39, %s5212_s15  ;;  %v10124_v7 = vld [vmem:[#allocation116_spill] sm:$0xff]  ;;  %v2393_v39 = vld [vmem:[#allocation2 + $0x4a] sm:$0xff] }
 0x592   : > { %v8056_v8 = vpop.permute.xlu1 %2987  ;;  %v3002_v48 = vpop.permute.xlu2 %3001 }
 0x593   : > { %10122 = vst [vmem:[#allocation43_spill] sm:$0xff] %v8056_v8  ;;  %v8059_v34 = vsel %vm1714_vm3, %v3560_v45, %v3002_v48  ;;  %3353 = vrot.lane.b32.xlu0 %v2392_v63, %s5214_s17  ;;  %v2410_v48 = vld [vmem:[#allocation2 + $0x112] sm:$0xff]  ;;  %v10127_v63 = vld [vmem:[#allocation16_spill] sm:$0xff] }
 0x594   : > { %v3462_v45 = vsel %vm223_vm0, %v10128_v5, %v10127_v63  ;;  %v10130_v8 = vld [vmem:[#allocation54_spill] sm:$0xff] }
 0x595   : > { %v8062_v33 = vpop.permute.xlu0 %2985  ;;  %v2394_v63 = vld [vmem:[#allocation2 + $0x52] sm:$0xff] }
 0x596   : > { %10123 = vst [vmem:[#allocation52_spill] sm:$0xff] %v8062_v33  ;;  %v2362_v5 = vld [vmem:[#allocation2 + $0x51] sm:$0xff] }
 0x598   : > { %3133 = vrot.lane.b32.xlu1 %v10124_v7, %s5212_s15  ;;  %3387 = vrot.lane.b32.xlu2 %v2409_v60, %s5214_s17 }
 0x59a   : > { %v8067_v9 = vpop.permute.xlu1 %2993  ;;  %v8069_v30 = vpop.permute.xlu2 %3007 }
 0x59b   : > { %10125 = vst [vmem:[#allocation130_spill] sm:$0xff] %v8067_v9  ;;  %3227 = vrot.lane.b32.xlu0 %v2361_v44, %s5213_s16  ;;  %v2378_v9 = vld [vmem:[#allocation2 + $0x111] sm:$0xff]  ;;  %v3494_v44 = vsel %vm1615_vm1, %v3462_v45, %v10130_v8  ;;  %v10133_v8 = vld [vmem:[#allocation133_spill] sm:$0xff] }
 0x59d   : > { %v8072_v29 = vpop.permute.xlu0 %2991 }
 0x59e   : > { %10126 = vst [vmem:[#allocation142_spill] sm:$0xff] %v8072_v29  ;;  %v3526_v29 = vsel %vm1648_vm2, %v3494_v44, %v7789_v14 }
 0x5a0   : > { %3389 = vrot.lane.b32.xlu1 %v2410_v48, %s5214_s17  ;;  %3355 = vrot.lane.b32.xlu2 %v2393_v39, %s5214_s17  ;;  %v3558_v48 = vsel %vm1681_vm4, %v3526_v29, %v7947_v36  ;;  %v10135_v29 = vld [vmem:[#allocation125_spill] sm:$0xff] }
 0x5a2   : > { %v8079_v60 = vpop.permute.xlu1 %2999  ;;  %v8081_v7 = vpop.permute.xlu2 %3013 }
 0x5a3   : > { %10129 = vst [vmem:[#allocation143_spill] sm:$0xff] %v8081_v7  ;;  %3261 = vrot.lane.b32.xlu0 %v2378_v9, %s5213_s16  ;;  %v10132_v7 = vld [vmem:[#allocation8_spill] sm:$0xff] }
 0x5a4   : > { %v3465_v9 = vsel %vm223_vm0, %v10133_v8, %v10132_v7  ;;  %v10136_v7 = vld [vmem:[#allocation136_spill] sm:$0xff] }
 0x5a5   : > { %v2998_v39 = vpop.permute.xlu0 %2997  ;;  %v3497_v36 = vsel %vm1615_vm1, %v3465_v9, %v7712_v40 }
 0x5a6   : > { %v8091_v33 = vsel %vm1714_vm3, %v3558_v48, %v2998_v39  ;;  %v3529_v44 = vsel %vm1648_vm2, %v3497_v36, %v7801_v58 }
 0x5a7   : > { %10131 = vst [vmem:[#allocation165_spill] sm:$0xff] %v8091_v33  ;;  %v3561_v48 = vsel %vm1681_vm4, %v3529_v44, %v7959_v27  ;;  %v2363_v33 = vld [vmem:[#allocation2 + $0x61] sm:$0xff] }
 0x5a8   : > { %3357 = vrot.lane.b32.xlu1 %v2394_v63, %s5214_s17  ;;  %3229 = vrot.lane.b32.xlu2 %v2362_v5, %s5213_s16  ;;  %v10137_v5 = vld [vmem:[#allocation89_spill] sm:$0xff] }
 0x5a9   : > { %v3476_v8 = vsel %vm223_vm0, %v10137_v5, %v10136_v7  ;;  %v3711_v7 = vld [vmem:[%s9559_s3 + $0x40] sm:$0xff]  ;;  %v3710_v5 = vld [vmem:[%s9559_s3 + $0x38] sm:$0xff] }
 0x5aa   : > { %v8098_v45 = vpop.permute.xlu1 %3005  ;;  %v8100_v14 = vpop.permute.xlu2 %3019  ;;  %v3508_v40 = vsel %vm1615_vm1, %v3476_v8, %v7718_v42  ;;  %v2412_v8 = vld [vmem:[#allocation2 + $0x12a] sm:$0xff]  ;;  %5025 = vmatpush.msra.mxu3 %v3711_v7  ;;  %3819 = vmatpush.msra.mxu1 %v3711_v7 }
 0x5ab   : > { %10134 = vst [vmem:[#allocation11_spill] sm:$0xff] %v8100_v14  ;;  %3135 = vrot.lane.b32.xlu0 %v10135_v29, %s5212_s15  ;;  %v2379_v14 = vld [vmem:[#allocation2 + $0x121] sm:$0xff]  ;;  %v3540_v58 = vsel %vm1648_vm2, %v3508_v40, %v7875_v52 }
 0x5ac   : > { %v3572_v27 = vsel %vm1681_vm4, %v3540_v58, %v8011_v54  ;;  %v2411_v29 = vld [vmem:[#allocation2 + $0x122] sm:$0xff]  ;;  %v3709_v58 = vld [vmem:[%s9559_s3 + $0x30] sm:$0xff]  ;;  %5026 = vmatpush.msra.mxu3 %v3710_v5  ;;  %3820 = vmatpush.msra.mxu1 %v3710_v5 }
 0x5ad   : > { %v3004_v39 = vpop.permute.xlu0 %3003  ;;  %v10142_v40 = vld [vmem:[#allocation148_spill] sm:$0xff] }
 0x5ae   : > { %v8111_v63 = vsel %vm1714_vm3, %v3561_v48, %v3004_v39  ;;  %v2348_v48 = vld [vmem:[#allocation2 + $0x128] sm:$0xff]  ;;  %5027 = vmatpush.msra.mxu3 %v3709_v58  ;;  %3821 = vmatpush.msra.mxu1 %v3709_v58 }
 0x5af   : > { %v10147_v58 = vld [vmem:[#allocation53_spill] sm:$0xff] }
 0x5b0   : > { %3231 = vrot.lane.b32.xlu1 %v2363_v33, %s5213_s16  ;;  %3263 = vrot.lane.b32.xlu2 %v2379_v14, %s5213_s16  ;;  %v2380_v33 = vld [vmem:[#allocation2 + $0x129] sm:$0xff] }
 0x5b1   : > { %v2395_v14 = vld [vmem:[#allocation2 + $0x62] sm:$0xff] }
 0x5b2   : > { %v8124_v9 = vpop.permute.xlu1 %3011  ;;  %v3026_v36 = vpop.permute.xlu2 %3025 }
 0x5b3   : > { %10138 = vst [vmem:[#allocation25_spill] sm:$0xff] %v8124_v9  ;;  %v8127_v44 = vsel %vm1714_vm3, %v3572_v27, %v3026_v36  ;;  %3391 = vrot.lane.b32.xlu0 %v2411_v29, %s5214_s17  ;;  %v10143_v27 = vld [vmem:[#allocation98_spill] sm:$0xff]  ;;  %v10144_v36 = vld [vmem:[#allocation157_spill] sm:$0xff] }
 0x5b4   : > { %10139 = vst [vmem:[#allocation90_spill] sm:$0xff] %v8127_v44  ;;  %v3474_v29 = vsel %vm223_vm0, %v10144_v36, %v10143_v27  ;;  %v2415_v44 = vld [vmem:[#allocation2 + $0x152] sm:$0xff] }
 0x5b5   : > { %v8130_v42 = vpop.permute.xlu0 %3009  ;;  %v3506_v7 = vsel %vm1615_vm1, %v3474_v29, %v7745_v35  ;;  %v3707_v35 = vld [vmem:[%s9559_s3 + $0x20] sm:$0xff]  ;;  %v3706_v29 = vld [vmem:[%s9559_s3 + $0x18] sm:$0xff] }
 0x5b6   : > { %v3538_v5 = vsel %vm1648_vm2, %v3506_v7, %v7839_v21  ;;  %v2396_v21 = vld [vmem:[#allocation2 + $0x6a] sm:$0xff]  ;;  %v3477_v7 = vsel %vm223_vm0, %v7704_v11, %v10147_v58 }
 0x5b8   : > { %3265 = vrot.lane.b32.xlu1 %v2380_v33, %s5213_s16  ;;  %3137 = vrot.lane.b32.xlu2 %v2348_v48, %s5212_s15 }
 0x5ba   : > { %v8134_v52 = vpop.permute.xlu1 %3017  ;;  %v8136_v54 = vpop.permute.xlu2 %3095 }
 0x5bb   : > { %10140 = vst [vmem:[#allocation112_spill] sm:$0xff] %v8134_v52  ;;  %3359 = vrot.lane.b32.xlu0 %v2395_v14, %s5214_s17  ;;  %v2364_v14 = vld [vmem:[#allocation2 + $0x69] sm:$0xff] }
 0x5bd   : > { %v8139_v39 = vpop.permute.xlu0 %3015 }
 0x5be   : > { %10141 = vst [vmem:[#allocation29_spill] sm:$0xff] %v8139_v39 }
 0x5c0   : > { %3139 = vrot.lane.b32.xlu1 %v10142_v40, %s5212_s15  ;;  %3393 = vrot.lane.b32.xlu2 %v2412_v8, %s5214_s17  ;;  %v3708_v8 = vld [vmem:[%s9559_s3 + $0x28] sm:$0xff]  ;;  %v3570_v40 = vsel %vm1681_vm4, %v3538_v5, %v7995_v17  ;;  %v3705_v17 = vld [vmem:[%s9559_s3 + $0x10] sm:$0xff] }
 0x5c1   : > { %5028 = vmatpush.msra.mxu3 %v3708_v8  ;;  %3822 = vmatpush.msra.mxu1 %v3708_v8 }
 0x5c2   : > { %v8156_v33 = vpop.permute.xlu1 %3023  ;;  %v8158_v48 = vpop.permute.xlu2 %3101 }
 0x5c3   : > { %10145 = vst [vmem:[#allocation129_spill] sm:$0xff] %v8156_v33  ;;  %3233 = vrot.lane.b32.xlu0 %v2364_v14, %s5213_s16  ;;  %v2413_v14 = vld [vmem:[#allocation2 + $0x13a] sm:$0xff]  ;;  %5029 = vmatpush.msra.mxu3 %v3707_v35  ;;  %v10153_v33 = vld [vmem:[#allocation17_spill] sm:$0xff] }
 0x5c4   : > { %3823 = vmatpush.msra.mxu1 %v3707_v35 }
 0x5c5   : > { %v3022_v27 = vpop.permute.xlu0 %3021  ;;  %5030 = vmatpush.msra.mxu3 %v3706_v29 }
 0x5c6   : > { %v8171_v36 = vsel %vm1714_vm3, %v3570_v40, %v3022_v27  ;;  %v2381_v40 = vld [vmem:[#allocation2 + $0x139] sm:$0xff]  ;;  %v3509_v27 = vsel %vm1615_vm1, %v3477_v7, %v7757_v1  ;;  %3824 = vmatpush.msra.mxu1 %v3706_v29 }
 0x5c7   : > { %10146 = vst [vmem:[#allocation153_spill] sm:$0xff] %v8171_v36  ;;  %5031 = vmatpush.msra.mxu3 %v3705_v17  ;;  %v3541_v35 = vsel %vm1648_vm2, %v3509_v27, %v7853_v37  ;;  %v3703_v1 = vld [vmem:[%s9559_s3] sm:$0xff] }
 0x5c8   : > { %3395 = vrot.lane.b32.xlu1 %v2413_v14, %s5214_s17  ;;  %3361 = vrot.lane.b32.xlu2 %v2396_v21, %s5214_s17  ;;  %v3704_v14 = vld [vmem:[%s9559_s3 + $0x8] sm:$0xff]  ;;  %v3573_v11 = vsel %vm1681_vm4, %v3541_v35, %v8005_v3  ;;  %v2397_v7 = vld [vmem:[#allocation2 + $0x7a] sm:$0xff] }
 0x5c9   : > { %5032 = vmatpush.msra.mxu3 %v3704_v14  ;;  %3825 = vmatpush.msra.mxu1 %v3705_v17  ;;  %v2350_v29 = vld [vmem:[#allocation2 + $0x140] sm:$0xff] }
 0x5ca   : > { %v8187_v5 = vpop.permute.xlu1 %3029  ;;  %v8189_v8 = vpop.permute.xlu2 %3107  ;;  %v2366_v35 = vld [vmem:[#allocation2 + $0x81] sm:$0xff] }
 0x5cb   : > { %10148 = vst [vmem:[#allocation164_spill] sm:$0xff] %v8187_v5  ;;  %3267 = vrot.lane.b32.xlu0 %v2381_v40, %s5213_s16  ;;  %v2365_v40 = vld [vmem:[#allocation2 + $0x79] sm:$0xff]  ;;  %5033 = vmatpush.msra.mxu3 %v3703_v1  ;;  %v2351_v5 = vld [vmem:[#allocation2 + $0x150] sm:$0xff] }
 0x5cc   : > { %10149 = vst [vmem:[#allocation46_spill] sm:$0xff] %v8189_v8  ;;  %3826 = vmatpush.msra.mxu1 %v3704_v14 }
 0x5cd   : > { %v3028_v21 = vpop.permute.xlu0 %3027 }
 0x5ce   : > { %v8202_v58 = vsel %vm1714_vm3, %v3573_v11, %v3028_v21  ;;  %3827 = vmatpush.msra.mxu1 %v3703_v1  ;;  %v2382_v11 = vld [vmem:[#allocation2 + $0x141] sm:$0xff] }
 0x5cf   : > { %10150 = vst [vmem:[#allocation80_spill] sm:$0xff] %v8202_v58  ;;  %v2352_v58 = vld [vmem:[#allocation2 + $0x158] sm:$0xff] }
 0x5d0   : > { %3363 = vrot.lane.b32.xlu1 %v2397_v7, %s5214_s17  ;;  %3235 = vrot.lane.b32.xlu2 %v2365_v40, %s5213_s16  ;;  %v2414_v7 = vld [vmem:[#allocation2 + $0x142] sm:$0xff]  ;;  %v2383_v40 = vld [vmem:[#allocation2 + $0x151] sm:$0xff] }
 0x5d2   : > { %v8209_v37 = vpop.permute.xlu1 %3099  ;;  %v3128_v3 = vpop.permute.xlu2 %3127 }
 0x5d3   : > { %3141 = vrot.lane.b32.xlu0 %v2350_v29, %s5212_s15 }
 0x5d5   : > { %v8212_v27 = vpop.permute.xlu0 %3097 }
 0x5d8   : > { %3237 = vrot.lane.b32.xlu1 %v2366_v35, %s5213_s16  ;;  %3269 = vrot.lane.b32.xlu2 %v2382_v11, %s5213_s16  ;;  %v2398_v35 = vld [vmem:[#allocation2 + $0x82] sm:$0xff] }
 0x5da   : > { %v8216_v17 = vpop.permute.xlu1 %3105  ;;  %v3224_v21 = vpop.permute.xlu2 %3223 }
 0x5db   : > { %3397 = vrot.lane.b32.xlu0 %v2414_v7, %s5214_s17  ;;  %v10154_v7 = vld [vmem:[#allocation86_spill] sm:$0xff] }
 0x5dc   : > { %v3463_v36 = vsel %vm223_vm0, %v10154_v7, %v10153_v33  ;;  %v10156_v33 = vld [vmem:[#allocation10_spill] sm:$0xff]  ;;  %v10157_v7 = vld [vmem:[#allocation72_spill] sm:$0xff] }
 0x5dd   : > { %v8219_v14 = vpop.permute.xlu0 %3103 }
 0x5e0   : > { %3271 = vrot.lane.b32.xlu1 %v2383_v40, %s5213_s16  ;;  %3143 = vrot.lane.b32.xlu2 %v2351_v5, %s5212_s15  ;;  %v2134_v40 = vld [vmem:[#allocation2] sm:$0xff]  ;;  %v10155_v5 = vld [vmem:[#allocation23_spill] sm:$0xff] }
 0x5e1   : > { %v3495_v52 = vsel %vm1615_vm1, %v3463_v36, %v10155_v5 }
 0x5e2   : > { %v8223_v1 = vpop.permute.xlu1 %3111  ;;  %v3258_v29 = vpop.permute.xlu2 %3257 }
 0x5e3   : > { %10151 = vst [vmem:[#allocation111_spill] sm:$0xff] %v8223_v1  ;;  %3365 = vrot.lane.b32.xlu0 %v2398_v35, %s5214_s17  ;;  %v3527_v1 = vsel %vm1648_vm2, %v3495_v52, %v7829_v23 }
 0x5e4   : > { %v3559_v8 = vsel %vm1681_vm4, %v3527_v1, %v7925_v0 }
 0x5e5   : > { %v8226_v11 = vpop.permute.xlu0 %3109 }
 0x5e6   : > { %10152 = vst [vmem:[#allocation42_spill] sm:$0xff] %v8226_v11  ;;  %v2367_v11 = vld [vmem:[#allocation2 + $0x91] sm:$0xff] }
 0x5e8   : > { %3145 = vrot.lane.b32.xlu1 %v2352_v58, %s5212_s15  ;;  %3399 = vrot.lane.b32.xlu2 %v2415_v44, %s5214_s17  ;;  %v3447_v58 = vsel %vm223_vm0, %v2134_v40, %v10156_v33  ;;  %v3591_v44 = vsel %vm1714_vm3, %v3559_v8, %v8079_v60  ;;  %v2399_v8 = vld [vmem:[#allocation2 + $0x92] sm:$0xff] }
 0x5e9   : > { %v3479_v36 = vsel %vm1615_vm1, %v3447_v58, %v10157_v7  ;;  %v3623_v5 = vsel %vm1747_vm5, %v3591_v44, %v3128_v3  ;;  %v2384_v33 = vld [vmem:[#allocation2 + $0x159] sm:$0xff] }
 0x5ea   : > { %v3384_v35 = vpop.permute.xlu1 %3383  ;;  %v3132_v39 = vpop.permute.xlu2 %3131  ;;  %v3511_v52 = vsel %vm1648_vm2, %v3479_v36, %v7729_v19  ;;  %v2336_v58 = vld [vmem:[#allocation2 + $0x98] sm:$0xff]  ;;  %v2135_v36 = vld [vmem:[#allocation2 + $0x8] sm:$0xff] }
 0x5eb   : > { %3239 = vrot.lane.b32.xlu0 %v2367_v11, %s5213_s16  ;;  %v3543_v0 = vsel %vm1681_vm4, %v3511_v52, %v7887_v22  ;;  %v2416_v11 = vld [vmem:[#allocation2 + $0x15a] sm:$0xff] }
 0x5ec   : > { %v3575_v60 = vsel %vm1714_vm3, %v3543_v0, %v8022_v43  ;;  %v2368_v7 = vld [vmem:[#allocation2 + $0x99] sm:$0xff]  ;;  %v10158_v0 = vld [vmem:[#allocation14_spill] sm:$0xff] }
 0x5ed   : > { %v3256_v23 = vpop.permute.xlu0 %3255  ;;  %v3607_v3 = vsel %vm1747_vm5, %v3575_v60, %v8136_v54  ;;  %v10159_v60 = vld [vmem:[#allocation18_spill] sm:$0xff] }
 0x5ee   : > { %v3655_v9 = vsel %vm1780_vm7, %v3623_v5, %v3256_v23  ;;  %v3639_v19 = vsel %vm1780_vm7, %v3607_v3, %v3224_v21 }
 0x5ef   : > { %v3687_v1 = vsel %vm1813_vm6, %v3655_v9, %v3384_v35  ;;  %v2353_v35 = vld [vmem:[#allocation2 + $0x168] sm:$0xff] }
 0x5f0   : > { %4962 = vmatmul.msk.f32.vlgmr.msra.gmra.mxu3 %vm1859_vm8, %v3687_v1  ;;  %3401 = vrot.lane.b32.xlu1 %v2416_v11, %s5214_s17  ;;  %v3448_v1 = vsel %vm223_vm0, %v2135_v36, %v10158_v0  ;;  %v2417_v11 = vld [vmem:[#allocation2 + $0x16a] sm:$0xff] }
 0x5f1   : > { %3367 = vrot.lane.b32.xlu2 %v2399_v8, %s5214_s17  ;;  %v2400_v8 = vld [vmem:[#allocation2 + $0x9a] sm:$0xff]  ;;  %v2369_v0 = vld [vmem:[#allocation2 + $0xa9] sm:$0xff] }
 0x5f2   : > { %v3352_v40 = vpop.permute.xlu1 %3351  ;;  %v3388_v22 = vpop.permute.xlu2 %3387 }
 0x5f3   : > { %3273 = vrot.lane.b32.xlu0 %v2384_v33, %s5213_s16  ;;  %v3671_v9 = vsel %vm1813_vm6, %v3639_v19, %v3352_v40  ;;  %v3625_v19 = vsel %vm1747_vm5, %v8111_v63, %v3132_v39  ;;  %v2354_v39 = vld [vmem:[#allocation2 + $0x170] sm:$0xff] }
 0x5f4   : > { %4946 = vmatmul.msk.f32.vlgmr.msra.gmra.mxu1 %vm1859_vm8, %v3671_v9  ;;  %v2385_v9 = vld [vmem:[#allocation2 + $0x169] sm:$0xff] }
 0x5f5   : > { %v3130_v43 = vpop.permute.xlu0 %3129 }
 0x5f6   : > { %v3624_v54 = vsel %vm1747_vm5, %v8059_v34, %v3130_v43  ;;  %v3480_v34 = vsel %vm1615_vm1, %v3448_v1, %v10159_v60 }
 0x5f7   : > { %v3656_v23 = vsel %vm1780_vm7, %v3624_v54, %v3258_v29  ;;  %v3512_v3 = vsel %vm1648_vm2, %v3480_v34, %v7769_v55 }
 0x5f8   : > { %3147 = vrot.lane.b32.xlu1 %v2353_v35, %s5212_s15  ;;  %v3544_v29 = vsel %vm1681_vm4, %v3512_v3, %v7865_v25 }
 0x5f9   : > { %3113 = vrot.lane.b32.xlu2 %v2336_v58, %s5212_s15  ;;  %v3576_v43 = vsel %vm1714_vm3, %v3544_v29, %v8017_v15  ;;  %v10160_v15 = vld [vmem:[#allocation7_spill] sm:$0xff]  ;;  %v10163_v29 = vld [vmem:[#allocation82_spill] sm:$0xff] }
 0x5fa   : > { %v3226_v21 = vpop.permute.xlu1 %3225  ;;  %v3356_v44 = vpop.permute.xlu2 %3355  ;;  %v3608_v55 = vsel %vm1747_vm5, %v3576_v43, %v8212_v27  ;;  %v10162_v27 = vld [vmem:[#allocation120_spill] sm:$0xff] }
 0x5fb   : > { %3241 = vrot.lane.b32.xlu0 %v2368_v7, %s5213_s16  ;;  %v3640_v25 = vsel %vm1780_vm7, %v3608_v55, %v3226_v21  ;;  %v10161_v7 = vld [vmem:[#allocation32_spill] sm:$0xff] }
 0x5fc   : > { %v3449_v36 = vsel %vm223_vm0, %v10161_v7, %v10160_v15 }
 0x5fd   : > { %v3386_v5 = vpop.permute.xlu0 %3385 }
 0x5fe   : > { %v3688_v52 = vsel %vm1813_vm6, %v3656_v23, %v3386_v5  ;;  %v2337_v5 = vld [vmem:[#allocation2 + $0xa8] sm:$0xff] }
 0x5ff   : > { %4963 = vmatmul.msk.f32.gmra.mxu3 %vm1859_vm8, %v3688_v52 }
 0x600   : > { %3403 = vrot.lane.b32.xlu1 %v2417_v11, %s5214_s17 }
 0x601   : > { %3369 = vrot.lane.b32.xlu2 %v2400_v8, %s5214_s17 }
 0x602   : > { %v3260_v40 = vpop.permute.xlu1 %3259  ;;  %v3230_v33 = vpop.permute.xlu2 %3229 }
 0x603   : > { %v3657_v35 = vsel %vm1780_vm7, %v3625_v19, %v3260_v40  ;;  %3275 = vrot.lane.b32.xlu0 %v2385_v9, %s5213_s16  ;;  %v10164_v19 = vld [vmem:[#allocation62_spill] sm:$0xff]  ;;  %v10165_v9 = vld [vmem:[#allocation99_spill] sm:$0xff] }
 0x604   : > { %v3689_v58 = vsel %vm1813_vm6, %v3657_v35, %v3388_v22  ;;  %v3481_v22 = vsel %vm1615_vm1, %v3449_v36, %v10162_v27  ;;  %v3466_v40 = vsel %vm223_vm0, %v10164_v19, %v10163_v29  ;;  %v2386_v35 = vld [vmem:[#allocation2 + $0x171] sm:$0xff] }
 0x605   : > { %v3354_v54 = vpop.permute.xlu0 %3353  ;;  %v3513_v21 = vsel %vm1648_vm2, %v3481_v22, %v7763_v57  ;;  %v2418_v57 = vld [vmem:[#allocation2 + $0x172] sm:$0xff]  ;;  %v2355_v22 = vld [vmem:[#allocation2 + $0x180] sm:$0xff] }
 0x606   : > { %v3672_v63 = vsel %vm1813_vm6, %v3640_v25, %v3354_v54  ;;  %v3545_v1 = vsel %vm1681_vm4, %v3513_v21, %v7905_v26  ;;  %v2401_v26 = vld [vmem:[#allocation2 + $0xaa] sm:$0xff] }
 0x607   : > { %4947 = vmatmul.msk.f32.gmra.mxu1 %vm1859_vm8, %v3672_v63  ;;  %4964 = vmatmul.msk.f32.gmra.mxu3 %vm1859_vm8, %v3689_v58  ;;  %v3577_v11 = vsel %vm1714_vm3, %v3545_v1, %v7997_v24  ;;  %v3498_v24 = vsel %vm1615_vm1, %v3466_v40, %v10165_v9  ;;  %v5123_v58 = vld [vmem:[#allocation2 + $0x20] sm:$0xff]  ;;  %v10166_v25 = vld [vmem:[#allocation13_spill] sm:$0xff]  ;;  %v2338_v21 = vld [vmem:[#allocation2 + $0xb0] sm:$0xff] }
 0x608   : > { %3149 = vrot.lane.b32.xlu1 %v2354_v39, %s5212_s15  ;;  %v3609_v60 = vsel %vm1747_vm5, %v3577_v11, %v8209_v37  ;;  %v3530_v37 = vsel %vm1648_vm2, %v3498_v24, %v7843_v50  ;;  %v3450_v54 = vsel %vm223_vm0, %v5123_v58, %v10166_v25  ;;  %v10167_v39 = vld [vmem:[#allocation119_spill] sm:$0xff]  ;;  %v5124_v24 = vld [vmem:[#allocation2 + $0x30] sm:$0xff] }
 0x609   : > { %3115 = vrot.lane.b32.xlu2 %v2337_v5, %s5212_s15  ;;  %v3562_v55 = vsel %vm1681_vm4, %v3530_v37, %v7937_v61  ;;  %v3482_v15 = vsel %vm1615_vm1, %v3450_v54, %v10167_v39  ;;  %v2370_v1 = vld [vmem:[#allocation2 + $0xb1] sm:$0xff]  ;;  %v10171_v37 = vld [vmem:[#allocation56_spill] sm:$0xff] }
 0x60a   : > { %v3134_v23 = vpop.permute.xlu1 %3133  ;;  %v3264_v52 = vpop.permute.xlu2 %3263  ;;  %v3594_v63 = vsel %vm1714_vm3, %v3562_v55, %v8098_v45  ;;  %v3514_v36 = vsel %vm1648_vm2, %v3482_v15, %v7741_v62  ;;  %v10172_v55 = vld [vmem:[#allocation108_spill] sm:$0xff] }
 0x60b   : > { %3243 = vrot.lane.b32.xlu0 %v2369_v0, %s5213_s16  ;;  %v3626_v50 = vsel %vm1747_vm5, %v3594_v63, %v3134_v23  ;;  %v3546_v5 = vsel %vm1681_vm4, %v3514_v36, %v7899_v56  ;;  %v2371_v15 = vld [vmem:[#allocation2 + $0xc1] sm:$0xff]  ;;  %v5125_v36 = vld [vmem:[#allocation2 + $0x38] sm:$0xff] }
 0x60c   : > { %v3578_v45 = vsel %vm1714_vm3, %v3546_v5, %v8032_v13  ;;  %v10168_v13 = vld [vmem:[#allocation20_spill] sm:$0xff] }
 0x60d   : > { %v3228_v34 = vpop.permute.xlu0 %3227  ;;  %v3610_v23 = vsel %vm1747_vm5, %v3578_v45, %v8158_v48  ;;  %v2403_v5 = vld [vmem:[#allocation2 + $0xc2] sm:$0xff] }
 0x60e   : > { %v3641_v8 = vsel %vm1780_vm7, %v3609_v60, %v3228_v34  ;;  %v3642_v62 = vsel %vm1780_vm7, %v3610_v23, %v3230_v33  ;;  %v3467_v60 = vsel %vm223_vm0, %v10111_v20, %v10168_v13  ;;  %v10175_v13 = vld [vmem:[#allocation81_spill] sm:$0xff] }
 0x60f   : > { %v3673_v3 = vsel %vm1813_vm6, %v3641_v8, %v3356_v44  ;;  %v10169_v8 = vld [vmem:[#allocation69_spill] sm:$0xff] }
 0x610   : > { %4948 = vmatmul.msk.f32.gmra.mxu1 %vm1859_vm8, %v3673_v3  ;;  %3405 = vrot.lane.b32.xlu1 %v2418_v57, %s5214_s17  ;;  %v3499_v48 = vsel %vm1615_vm1, %v3467_v60, %v10169_v8  ;;  %v2402_v57 = vld [vmem:[#allocation2 + $0xb2] sm:$0xff]  ;;  %v2372_v8 = vld [vmem:[#allocation2 + $0xc9] sm:$0xff] }
 0x611   : > { %3371 = vrot.lane.b32.xlu2 %v2401_v26, %s5214_s17  ;;  %v3531_v33 = vsel %vm1648_vm2, %v3499_v48, %v7837_v4  ;;  %v10170_v4 = vld [vmem:[#allocation63_spill] sm:$0xff]  ;;  %v10176_v48 = vld [vmem:[#allocation38_spill] sm:$0xff] }
 0x612   : > { %v3390_v43 = vpop.permute.xlu1 %3389  ;;  %v3138_v44 = vpop.permute.xlu2 %3137  ;;  %v3563_v3 = vsel %vm1681_vm4, %v3531_v33, %v7981_v51  ;;  %v3468_v51 = vsel %vm223_vm0, %v10114_v16, %v10170_v4 }
 0x613   : > { %3277 = vrot.lane.b32.xlu0 %v2386_v35, %s5213_s16  ;;  %v3595_v29 = vsel %vm1714_vm3, %v3563_v3, %v8069_v30  ;;  %v3500_v9 = vsel %vm1615_vm1, %v3468_v51, %v7721_v2  ;;  %v2339_v2 = vld [vmem:[#allocation2 + $0xc0] sm:$0xff]  ;;  %v5127_v3 = vld [vmem:[#allocation2 + $0x48] sm:$0xff] }
 0x614   : > { %v3532_v35 = vsel %vm1648_vm2, %v3500_v9, %v7813_v38  ;;  %v2421_v51 = vld [vmem:[#allocation2 + $0x19a] sm:$0xff] }
 0x615   : > { %v3262_v7 = vpop.permute.xlu0 %3261 }
 0x616   : > { %v3658_v61 = vsel %vm1780_vm7, %v3626_v50, %v3262_v7 }
 0x617   : > { %v3690_v27 = vsel %vm1813_vm6, %v3658_v61, %v3390_v43  ;;  %v3451_v43 = vsel %vm223_vm0, %v5124_v24, %v10171_v37 }
 0x618   : > { %4965 = vmatmul.msk.f32.gmra.mxu3 %vm1859_vm8, %v3690_v27  ;;  %3151 = vrot.lane.b32.xlu1 %v2355_v22, %s5212_s15  ;;  %v3483_v16 = vsel %vm1615_vm1, %v3451_v43, %v10172_v55  ;;  %v10182_v43 = vld [vmem:[#allocation30_spill] sm:$0xff]  ;;  %v2389_v55 = vld [vmem:[#allocation2 + $0x199] sm:$0xff] }
 0x619   : > { %3117 = vrot.lane.b32.xlu2 %v2338_v21, %s5212_s15  ;;  %v3515_v58 = vsel %vm1648_vm2, %v3483_v16, %v7781_v49  ;;  %v10183_v16 = vld [vmem:[#allocation46_spill] sm:$0xff] }
 0x61a   : > { %v3358_v0 = vpop.permute.xlu1 %3357  ;;  %v3394_v56 = vpop.permute.xlu2 %3393  ;;  %v3547_v38 = vsel %vm1681_vm4, %v3515_v58, %v7877_v18 }
 0x61b   : > { %3245 = vrot.lane.b32.xlu0 %v2370_v1, %s5213_s16  ;;  %v3674_v11 = vsel %vm1813_vm6, %v3642_v62, %v3358_v0 }
 0x61c   : > { %4949 = vmatmul.msk.f32.gmra.mxu1 %vm1859_vm8, %v3674_v11  ;;  %v5126_v11 = vld [vmem:[#allocation2 + $0x108] sm:$0xff] }
 0x61d   : > { %v3136_v34 = vpop.permute.xlu0 %3135  ;;  %v3469_v60 = vsel %vm223_vm0, %v5126_v11, %v10175_v13  ;;  %v5130_v13 = vld [vmem:[#allocation2 + $0x50] sm:$0xff] }
 0x61e   : > { %v3627_v20 = vsel %vm1747_vm5, %v3595_v29, %v3136_v34 }
 0x620   : > { %3407 = vrot.lane.b32.xlu1 %v7977_v6, %s5214_s17  ;;  %v3659_v6 = vsel %vm1780_vm7, %v3627_v20, %v3264_v52  ;;  %v3564_v52 = vsel %vm1681_vm4, %v3532_v35, %v7973_v41  ;;  %v3579_v41 = vsel %vm1714_vm3, %v3547_v38, %v8026_v46  ;;  %v10173_v46 = vld [vmem:[#allocation26_spill] sm:$0xff]  ;;  %v10178_v20 = vld [vmem:[#allocation25_spill] sm:$0xff] }
 0x621   : > { %3373 = vrot.lane.b32.xlu2 %v2402_v57, %s5214_s17  ;;  %v3596_v25 = vsel %vm1714_vm3, %v3564_v52, %v8130_v42  ;;  %v3611_v49 = vsel %vm1747_vm5, %v3579_v41, %v8219_v14  ;;  %v3452_v61 = vsel %vm223_vm0, %v5125_v36, %v10173_v46  ;;  %v10174_v14 = vld [vmem:[#allocation83_spill] sm:$0xff]  ;;  %v10177_v57 = vld [vmem:[#allocation6_spill] sm:$0xff] }
 0x622   : > { %v3232_v19 = vpop.permute.xlu1 %3231  ;;  %v3362_v40 = vpop.permute.xlu2 %3361  ;;  %v3628_v54 = vsel %vm1747_vm5, %v3596_v25, %v3138_v44  ;;  %v3484_v27 = vsel %vm1615_vm1, %v3452_v61, %v10174_v14  ;;  %v3453_v29 = vsel %vm223_vm0, %v5127_v3, %v10177_v57  ;;  %v2341_v36 = vld [vmem:[#allocation2 + $0xd8] sm:$0xff]  ;;  %v2390_v3 = vld [vmem:[#allocation2 + $0x1a1] sm:$0xff]  ;;  %v10195_v57 = vld [vmem:[#allocation78_spill] sm:$0xff] }
 0x623   : > { %3279 = vrot.lane.b32.xlu0 %v7831_v59, %s5213_s16  ;;  %v2356_v59 = vld [vmem:[#allocation2 + $0x188] sm:$0xff]  ;;  %v3643_v7 = vsel %vm1780_vm7, %v3611_v49, %v3232_v19  ;;  %v3516_v22 = vsel %vm1648_vm2, %v3484_v27, %v7775_v28  ;;  %v10179_v19 = vld [vmem:[#allocation160_spill] sm:$0xff]  ;;  %v10188_v46 = vld [vmem:[#allocation143_spill] sm:$0xff] }
 0x624   : > { %v3548_v23 = vsel %vm1681_vm4, %v3516_v22, %v7917_v12  ;;  %v3501_v12 = vsel %vm1615_vm1, %v3469_v60, %v7716_v31  ;;  %v10185_v49 = vld [vmem:[#allocation36_spill] sm:$0xff]  ;;  %v10191_v60 = vld [vmem:[#allocation55_spill] sm:$0xff] }
 0x625   : > { %v3392_v26 = vpop.permute.xlu0 %3391  ;;  %v2373_v27 = vld [vmem:[#allocation2 + $0xd9] sm:$0xff] }
 0x626   : > { %v3691_v30 = vsel %vm1813_vm6, %v3659_v6, %v3392_v26  ;;  %v10180_v26 = vld [vmem:[#allocation139_spill] sm:$0xff] }
 0x627   : > { %4966 = vmatmul.msk.f32.gmra.mxu3 %vm1859_vm8, %v3691_v30  ;;  %v10181_v30 = vld [vmem:[#allocation41_spill] sm:$0xff] }
 0x628   : > { %3153 = vrot.lane.b32.xlu1 %v2356_v59, %s5212_s15  ;;  %v2404_v59 = vld [vmem:[#allocation2 + $0xca] sm:$0xff] }
 0x629   : > { %3119 = vrot.lane.b32.xlu2 %v2339_v2, %s5212_s15 }
 0x62a   : > { %v3266_v63 = vpop.permute.xlu1 %3265  ;;  %v3236_v39 = vpop.permute.xlu2 %3235 }
 0x62b   : > { %v3660_v50 = vsel %vm1780_vm7, %v3628_v54, %v3266_v63  ;;  %3247 = vrot.lane.b32.xlu0 %v2371_v15, %s5213_s16  ;;  %v5128_v54 = vld [vmem:[#allocation2 + $0x110] sm:$0xff]  ;;  %v10184_v63 = vld [vmem:[#allocation97_spill] sm:$0xff] }
 0x62c   : > { %v3692_v42 = vsel %vm1813_vm6, %v3660_v50, %v3394_v56  ;;  %v2357_v56 = vld [vmem:[#allocation2 + $0x198] sm:$0xff]  ;;  %v3470_v15 = vsel %vm223_vm0, %v5128_v54, %v10184_v63  ;;  %v2358_v50 = vld [vmem:[#allocation2 + $0x1a0] sm:$0xff] }
 0x62d   : > { %v3360_v18 = vpop.permute.xlu0 %3359 }
 0x62e   : > { %v3675_v44 = vsel %vm1813_vm6, %v3643_v7, %v3360_v18  ;;  %v10186_v7 = vld [vmem:[#allocation68_spill] sm:$0xff]  ;;  %v10187_v18 = vld [vmem:[#allocation27_spill] sm:$0xff] }
 0x62f   : > { %4950 = vmatmul.msk.f32.gmra.mxu1 %vm1859_vm8, %v3675_v44  ;;  %4967 = vmatmul.msk.f32.gmra.mxu3 %vm1859_vm8, %v3692_v42  ;;  %v3502_v42 = vsel %vm1615_vm1, %v3470_v15, %v10185_v49  ;;  %v2374_v15 = vld [vmem:[#allocation2 + $0xe1] sm:$0xff] }
 0x630   : > { %3409 = vrot.lane.b32.xlu1 %v7967_v53, %s5214_s17  ;;  %v3580_v53 = vsel %vm1714_vm3, %v3548_v23, %v8007_v10  ;;  %v3533_v10 = vsel %vm1648_vm2, %v3501_v12, %v7857_v47  ;;  %v10189_v23 = vld [vmem:[#allocation49_spill] sm:$0xff]  ;;  %v10192_v12 = vld [vmem:[#allocation122_spill] sm:$0xff] }
 0x631   : > { %3375 = vrot.lane.b32.xlu2 %v2403_v5, %s5214_s17  ;;  %v3612_v62 = vsel %vm1747_vm5, %v3580_v53, %v8216_v17  ;;  %v3565_v33 = vsel %vm1681_vm4, %v3533_v10, %v10176_v48  ;;  %v10194_v48 = vld [vmem:[#allocation150_spill] sm:$0xff] }
 0x632   : > { %v3140_v45 = vpop.permute.xlu1 %3139  ;;  %v8412_v21 = vpop.permute.xlu2 %3269  ;;  %v3597_v31 = vsel %vm1714_vm3, %v3565_v33, %v10178_v20  ;;  %v2405_v33 = vld [vmem:[#allocation2 + $0xda] sm:$0xff]  ;;  %v10196_v20 = vld [vmem:[#allocation29_spill] sm:$0xff] }
 0x633   : > { %3281 = vrot.lane.b32.xlu0 %v7845_v32, %s5213_s16  ;;  %v2340_v32 = vld [vmem:[#allocation2 + $0xc8] sm:$0xff]  ;;  %v3629_v47 = vsel %vm1747_vm5, %v3597_v31, %v3140_v45  ;;  %v5129_v45 = vld [vmem:[#allocation2 + $0x120] sm:$0xff] }
 0x634   : > { %v3471_v53 = vsel %vm223_vm0, %v5129_v45, %v10189_v23  ;;  %v10208_v23 = vld [vmem:[#allocation135_spill] sm:$0xff] }
 0x635   : > { %v3234_v0 = vpop.permute.xlu0 %3233 }
 0x636   : > { %v3644_v1 = vsel %vm1780_vm7, %v3612_v62, %v3234_v0 }
 0x637   : > { %v3676_v28 = vsel %vm1813_vm6, %v3644_v1, %v3362_v40  ;;  %v3485_v40 = vsel %vm1615_vm1, %v3453_v29, %v10179_v19  ;;  %v10190_v1 = vld [vmem:[#allocation124_spill] sm:$0xff]  ;;  %v10197_v19 = vld [vmem:[#allocation162_spill] sm:$0xff] }
 0x638   : > { %4951 = vmatmul.msk.f32.gmra.mxu1 %vm1859_vm8, %v3676_v28  ;;  %3155 = vrot.lane.b32.xlu1 %v2357_v56, %s5212_s15  ;;  %v3517_v6 = vsel %vm1648_vm2, %v3485_v40, %v10180_v26  ;;  %v2422_v56 = vld [vmem:[#allocation2 + $0x1a2] sm:$0xff]  ;;  %v3503_v28 = vsel %vm1615_vm1, %v3471_v53, %v10190_v1 }
 0x639   : > { %3121 = vrot.lane.b32.xlu2 %v2340_v32, %s5212_s15  ;;  %v3549_v24 = vsel %vm1681_vm4, %v3517_v6, %v10181_v30  ;;  %v3454_v32 = vsel %vm223_vm0, %v5130_v13, %v10191_v60  ;;  %v3535_v10 = vsel %vm1648_vm2, %v3503_v28, %v10192_v12  ;;  %v10199_v30 = vld [vmem:[#allocation42_spill] sm:$0xff]  ;;  %v10210_v28 = vld [vmem:[#allocation112_spill] sm:$0xff]  ;;  %v5133_v12 = vld [vmem:[#allocation2 + $0x68] sm:$0xff] }
 0x63a   : > { %v3396_v17 = vpop.permute.xlu1 %3395  ;;  %v8433_v34 = vpop.permute.xlu2 %3143  ;;  %v3581_v35 = vsel %vm1714_vm3, %v3549_v24, %v10182_v43 }
 0x63b   : > { %3249 = vrot.lane.b32.xlu0 %v2372_v8, %s5213_s16  ;;  %v3613_v52 = vsel %vm1747_vm5, %v3581_v35, %v10183_v16  ;;  %v10200_v16 = vld [vmem:[#allocation15_spill] sm:$0xff] }
 0x63c   : > { %v3645_v2 = vsel %vm1780_vm7, %v3613_v52, %v3236_v39  ;;  %v3534_v39 = vsel %vm1648_vm2, %v3502_v42, %v10186_v7  ;;  %v10204_v42 = vld [vmem:[#allocation59_spill] sm:$0xff] }
 0x63d   : > { %v3268_v4 = vpop.permute.xlu0 %3267  ;;  %v3566_v44 = vsel %vm1681_vm4, %v3534_v39, %v10187_v18  ;;  %v10205_v39 = vld [vmem:[#allocation111_spill] sm:$0xff] }
 0x63e   : > { %v3661_v9 = vsel %vm1780_vm7, %v3629_v47, %v3268_v4  ;;  %v3598_v61 = vsel %vm1714_vm3, %v3566_v44, %v10188_v46 }
 0x63f   : > { %v3693_v37 = vsel %vm1813_vm6, %v3661_v9, %v3396_v17  ;;  %v10193_v17 = vld [vmem:[#allocation149_spill] sm:$0xff] }
 0x640   : > { %4968 = vmatmul.msk.f32.gmra.mxu3 %vm1859_vm8, %v3693_v37  ;;  %3411 = vrot.lane.b32.xlu1 %v2421_v51, %s5214_s17  ;;  %v3486_v8 = vsel %vm1615_vm1, %v3454_v32, %v10193_v17  ;;  %v10198_v51 = vld [vmem:[#allocation102_spill] sm:$0xff] }
 0x641   : > { %3377 = vrot.lane.b32.xlu2 %v2404_v59, %s5214_s17  ;;  %v3518_v29 = vsel %vm1648_vm2, %v3486_v8, %v10195_v57  ;;  %v10212_v8 = vld [vmem:[#allocation107_spill] sm:$0xff]  ;;  %v10214_v57 = vld [vmem:[#allocation77_spill] sm:$0xff] }
 0x642   : > { %v3364_v58 = vpop.permute.xlu1 %3363  ;;  %v3400_v25 = vpop.permute.xlu2 %3399  ;;  %v3550_v40 = vsel %vm1681_vm4, %v3518_v29, %v10197_v19 }
 0x643   : > { %3283 = vrot.lane.b32.xlu0 %v2389_v55, %s5213_s16  ;;  %v3677_v38 = vsel %vm1813_vm6, %v3645_v2, %v3364_v58  ;;  %v3582_v26 = vsel %vm1714_vm3, %v3550_v40, %v10198_v51  ;;  %v5131_v55 = vld [vmem:[#allocation2 + $0x60] sm:$0xff]  ;;  %v10201_v58 = vld [vmem:[#allocation19_spill] sm:$0xff] }
 0x644   : > { %4952 = vmatmul.msk.f32.gmra.mxu1 %vm1859_vm8, %v3677_v38  ;;  %v3614_v24 = vsel %vm1747_vm5, %v3582_v26, %v10199_v30  ;;  %v3455_v52 = vsel %vm223_vm0, %v5131_v55, %v10200_v16  ;;  %v2342_v2 = vld [vmem:[#allocation2 + $0xe0] sm:$0xff]  ;;  %v10202_v38 = vld [vmem:[#allocation22_spill] sm:$0xff]  ;;  %v5134_v26 = vld [vmem:[#allocation2 + $0x138] sm:$0xff] }
 0x645   : > { %v3142_v41 = vpop.permute.xlu0 %3141  ;;  %v10220_v55 = vld [vmem:[#allocation11_spill] sm:$0xff] }
 0x646   : > { %v3630_v5 = vsel %vm1747_vm5, %v3598_v61, %v3142_v41  ;;  %v10203_v41 = vld [vmem:[#allocation104_spill] sm:$0xff]  ;;  %v5132_v61 = vld [vmem:[#allocation2 + $0x128] sm:$0xff] }
 0x647   : > { %v3662_v0 = vsel %vm1780_vm7, %v3630_v5, %v8412_v21  ;;  %v3567_v21 = vsel %vm1681_vm4, %v3535_v10, %v10194_v48  ;;  %v10206_v5 = vld [vmem:[#allocation113_spill] sm:$0xff]  ;;  %v10211_v10 = vld [vmem:[#allocation60_spill] sm:$0xff] }
 0x648   : > { %3157 = vrot.lane.b32.xlu1 %v2358_v50, %s5212_s15  ;;  %v3599_v31 = vsel %vm1714_vm3, %v3567_v21, %v10196_v20  ;;  %v3456_v17 = vsel %vm223_vm0, %v5133_v12, %v10211_v10  ;;  %v10213_v21 = vld [vmem:[#allocation140_spill] sm:$0xff] }
 0x649   : > { %3123 = vrot.lane.b32.xlu2 %v2341_v36, %s5212_s15  ;;  %v3631_v47 = vsel %vm1747_vm5, %v3599_v31, %v8433_v34  ;;  %v2406_v34 = vld [vmem:[#allocation2 + $0xe2] sm:$0xff]  ;;  %v3488_v48 = vsel %vm1615_vm1, %v3456_v17, %v10212_v8 }
 0x64a   : > { %v3238_v14 = vpop.permute.xlu1 %3237  ;;  %v10215_v20 = vld [vmem:[#allocation52_spill] sm:$0xff]  ;;  %v10227_v17 = vld [vmem:[#allocation153_spill] sm:$0xff] }
 0x64b   : > { %v3368_v22 = vpop.permute.xlu2 %3367  ;;  %3251 = vrot.lane.b32.xlu0 %v2373_v27, %s5213_s16  ;;  %v3646_v43 = vsel %vm1780_vm7, %v3614_v24, %v3238_v14  ;;  %v3472_v14 = vsel %vm223_vm0, %v5132_v61, %v10206_v5  ;;  %v10207_v27 = vld [vmem:[#allocation123_spill] sm:$0xff]  ;;  %v10217_v24 = vld [vmem:[#allocation100_spill] sm:$0xff] }
 0x64c   : > { %v3504_v45 = vsel %vm1615_vm1, %v3472_v14, %v10207_v27 }
 0x64d   : > { %v3398_v62 = vpop.permute.xlu0 %3397  ;;  %v3536_v53 = vsel %vm1648_vm2, %v3504_v45, %v10208_v23 }
 0x64e   : > { %v3694_v11 = vsel %vm1813_vm6, %v3662_v0, %v3398_v62  ;;  %v10209_v0 = vld [vmem:[#allocation75_spill] sm:$0xff] }
 0x64f   : > { %4969 = vmatmul.msk.f32.gmra.mxu3 %vm1859_vm8, %v3694_v11 }
 0x650   : > { %3413 = vrot.lane.b32.xlu1 %v2422_v56, %s5214_s17  ;;  %v3568_v56 = vsel %vm1681_vm4, %v3536_v53, %v10209_v0 }
 0x651   : > { %3379 = vrot.lane.b32.xlu2 %v2405_v33, %s5214_s17  ;;  %v3520_v33 = vsel %vm1648_vm2, %v3488_v48, %v10213_v21  ;;  %v5137_v21 = vld [vmem:[#allocation2 + $0x90] sm:$0xff] }
 0x652   : > { %v3272_v4 = vpop.permute.xlu1 %3271  ;;  %v3552_v29 = vsel %vm1681_vm4, %v3520_v33, %v10214_v57  ;;  %v10228_v33 = vld [vmem:[#allocation44_spill] sm:$0xff]  ;;  %v5138_v57 = vld [vmem:[#allocation2 + $0x150] sm:$0xff] }
 0x653   : > { %v3663_v6 = vsel %vm1780_vm7, %v3631_v47, %v3272_v4  ;;  %v3114_v9 = vpop.permute.xlu2 %3113  ;;  %3285 = vrot.lane.b32.xlu0 %v2390_v3, %s5213_s16  ;;  %v3584_v31 = vsel %vm1714_vm3, %v3552_v29, %v10215_v20  ;;  %v10229_v29 = vld [vmem:[#allocation146_spill] sm:$0xff] }
 0x654   : > { %v3695_v37 = vsel %vm1813_vm6, %v3663_v6, %v3400_v25  ;;  %v3487_v25 = vsel %vm1615_vm1, %v3455_v52, %v10201_v58  ;;  %v3616_v19 = vsel %vm1747_vm5, %v3584_v31, %v3114_v9  ;;  %v10216_v6 = vld [vmem:[#allocation34_spill] sm:$0xff]  ;;  %v10219_v9 = vld [vmem:[#allocation40_spill] sm:$0xff]  ;;  %v3475_v20 = vsel %vm223_vm0, %v5138_v57, %v10229_v29 }
 0x655   : > { %v3366_v35 = vpop.permute.xlu0 %3365  ;;  %v3519_v54 = vsel %vm1648_vm2, %v3487_v25, %v10202_v38  ;;  %v3473_v30 = vsel %vm223_vm0, %v5134_v26, %v10216_v6  ;;  %v10230_v31 = vld [vmem:[#allocation118_spill] sm:$0xff] }
 0x656   : > { %v3678_v59 = vsel %vm1813_vm6, %v3646_v43, %v3366_v35  ;;  %v3551_v50 = vsel %vm1681_vm4, %v3519_v54, %v10203_v41  ;;  %v10218_v43 = vld [vmem:[#allocation127_spill] sm:$0xff] }
 0x657   : > { %4953 = vmatmul.msk.f32.gmra.mxu1 %vm1859_vm8, %v3678_v59  ;;  %4970 = vmatmul.msk.f32.gmra.mxu3 %vm1859_vm8, %v3695_v37  ;;  %v3583_v7 = vsel %vm1714_vm3, %v3551_v50, %v10204_v42  ;;  %v3505_v37 = vsel %vm1615_vm1, %v3473_v30, %v10217_v24  ;;  %v5135_v54 = vld [vmem:[#allocation2 + $0x78] sm:$0xff]  ;;  %v10233_v24 = vld [vmem:[#allocation141_spill] sm:$0xff] }
 0x658   : > { %3381 = vrot.lane.b32.xlu1 %v2406_v34, %s5214_s17  ;;  %v3615_v18 = vsel %vm1747_vm5, %v3583_v7, %v10205_v39  ;;  %v3537_v35 = vsel %vm1648_vm2, %v3505_v37, %v10218_v43  ;;  %v10222_v41 = vld [vmem:[#allocation71_spill] sm:$0xff] }
 0x659   : > { %3125 = vrot.lane.b32.xlu2 %v2342_v2, %s5212_s15  ;;  %v3569_v34 = vsel %vm1681_vm4, %v3537_v35, %v10219_v9  ;;  %v10234_v43 = vld [vmem:[#allocation151_spill] sm:$0xff] }
 0x65a   : > { %v3146_v63 = vpop.permute.xlu1 %3145  ;;  %v3601_v16 = vsel %vm1714_vm3, %v3569_v34, %v10220_v55  ;;  %v10236_v55 = vld [vmem:[#allocation21_spill] sm:$0xff] }
 0x65b   : > { %v3370_v49 = vpop.permute.xlu2 %3369  ;;  %3253 = vrot.lane.b32.xlu0 %v2374_v15, %s5213_s16 }
 0x65d   : > { %v3240_v44 = vpop.permute.xlu0 %3239 }
 0x65e   : > { %v3647_v36 = vsel %vm1780_vm7, %v3615_v18, %v3240_v44  ;;  %v10224_v18 = vld [vmem:[#allocation12_spill] sm:$0xff] }
 0x65f   : > { %v3679_v46 = vsel %vm1813_vm6, %v3647_v36, %v3368_v22  ;;  %v3600_v22 = vsel %vm1714_vm3, %v3568_v56, %v10210_v28  ;;  %v8584_v36 = vld [vmem:[%s9560_s4] ss:$0 sm:$0xff] }
 0x660   : > { %4954 = vmatmul.msk.f32.gmra.mxu1 %vm1859_vm8, %v3679_v46  ;;  %v3632_v11 = vsel %vm1747_vm5, %v3600_v22, %v3146_v63  ;;  %v10221_v63 = vld [vmem:[#allocation39_spill] sm:$0xff] }
 0x661   : > { %v3457_v15 = vsel %vm223_vm0, %v5135_v54, %v10221_v63  ;;  %v10225_v46 = vld [vmem:[#allocation43_spill] sm:$0xff]  ;;  %v4995_v63 = vld [vmem:[%s5307_s9 + $0xe1] sm:$0xff] }
 0x662   : > { %v3402_v62 = vpop.permute.xlu1 %3401  ;;  %v3489_v50 = vsel %vm1615_vm1, %v3457_v15, %v10222_v41  ;;  %v4994_v28 = vld [vmem:[%s5307_s9 + $0xd9] sm:$0xff]  ;;  %v10239_v15 = vld [vmem:[#allocation109_spill] sm:$0xff] }
 0x663   : > { %v3116_v1 = vpop.permute.xlu2 %3115 }
 0x665   : > { %v3274_v13 = vpop.permute.xlu0 %3273 }
 0x666   : > { %v3664_v60 = vsel %vm1780_vm7, %v3632_v11, %v3274_v13 }
 0x667   : > { %v3696_v32 = vsel %vm1813_vm6, %v3664_v60, %v3402_v62  ;;  %v4978_v62 = vld [vmem:[%s5307_s9 + $0x19] sm:$0xff] }
 0x668   : > { %4971 = vmatmul.msk.f32.gmra.mxu3 %vm1859_vm8, %v3696_v32  ;;  %v5136_v32 = vld [vmem:[#allocation2 + $0x80] sm:$0xff] }
 0x66a   : > { %v3148_v3 = vpop.permute.xlu1 %3147 }
 0x66b   : > { %v3372_v40 = vpop.permute.xlu2 %3371  ;;  %v3633_v52 = vsel %vm1747_vm5, %v3601_v16, %v3148_v3  ;;  %v3459_v3 = vsel %vm223_vm0, %v5137_v21, %v10228_v33 }
 0x66c   : > { %v3491_v37 = vsel %vm1615_vm1, %v3459_v3, %v10233_v24 }
 0x66d   : > { %v3242_v47 = vpop.permute.xlu0 %3241  ;;  %v3523_v16 = vsel %vm1648_vm2, %v3491_v37, %v10236_v55 }
 0x66e   : > { %v3648_v4 = vsel %vm1780_vm7, %v3616_v19, %v3242_v47  ;;  %v10231_v47 = vld [vmem:[#allocation58_spill] sm:$0xff]  ;;  %v8633_v41 = vsel %vm1681_vm4, %v3523_v16, %v10239_v15 }
 0x66f   : > { %v3680_v51 = vsel %vm1813_vm6, %v3648_v4, %v3370_v49  ;;  %v10223_v49 = vld [vmem:[#allocation96_spill] sm:$0xff]  ;;  %v3507_v4 = vsel %vm1615_vm1, %v3475_v20, %v10231_v47 }
 0x670   : > { %4955 = vmatmul.msk.f32.gmra.mxu1 %vm1859_vm8, %v3680_v51  ;;  %v3521_v42 = vsel %vm1648_vm2, %v3489_v50, %v10223_v49  ;;  %v10232_v51 = vld [vmem:[#allocation88_spill] sm:$0xff]  ;;  %v3539_v35 = vsel %vm1648_vm2, %v3507_v4, %v10234_v43  ;;  %v10240_v50 = vld [vmem:[#allocation129_spill] sm:$0xff] }
 0x671   : > { %v3553_v44 = vsel %vm1681_vm4, %v3521_v42, %v10224_v18  ;;  %v3829_v5 = vpop.f32.mrf.mxu1 }
 0x672   : > { %v3404_v59 = vpop.permute.xlu1 %3403  ;;  %v3585_v61 = vsel %vm1714_vm3, %v3553_v44, %v10225_v46  ;;  %v3830_v23 = vadd.f32 %v8584_v36, %v3829_v5 }
 0x673   : > { %v3118_v25 = vpop.permute.xlu2 %3117  ;;  %v3877_v7 = vpop.f32.mrf.mxu3  ;;  %v3617_v14 = vsel %vm1747_vm5, %v3585_v61, %v3116_v1  ;;  %v10226_v1 = vld [vmem:[#allocation66_spill] sm:$0xff] }
 0x674   : > { %v3878_v0 = vadd.f32 %v8584_v36, %v3877_v7  ;;  %v3957_v13 = vadd.f32 %v4978_v62, %v3830_v23  ;;  %v3458_v12 = vsel %vm223_vm0, %v5136_v32, %v10226_v1 }
 0x675   : > { %v3276_v2 = vpop.permute.xlu0 %3275  ;;  %v3490_v19 = vsel %vm1615_vm1, %v3458_v12, %v10230_v31 }
 0x676   : > { %v3665_v58 = vsel %vm1780_vm7, %v3633_v52, %v3276_v2  ;;  %v3973_v10 = vadd.f32 %v4994_v28, %v3878_v0  ;;  %v3522_v26 = vsel %vm1648_vm2, %v3490_v19, %v10232_v51  ;;  %v8611_v6 = vmax.f32 %v3957_v13, 0.0  ;;  %v10237_v52 = vld [vmem:[#allocation144_spill] sm:$0xff]  ;;  %v4980_v28 = vld [vmem:[%s5307_s9 + $0x31] sm:$0xff] }
 0x677   : > { %v3697_v38 = vsel %vm1813_vm6, %v3665_v58, %v3404_v59  ;;  %v10235_v59 = vld [vmem:[#allocation117_spill] sm:$0xff]  ;;  %v3571_v2 = vsel %vm1681_vm4, %v3539_v35, %v10237_v52  ;;  %v10238_v58 = vld [vmem:[#allocation91_spill] sm:$0xff] }
 0x678   : > { %4972 = vmatmul.msk.f32.gmra.mxu3 %vm1859_vm8, %v3697_v38  ;;  %v3554_v9 = vsel %vm1681_vm4, %v3522_v26, %v10235_v59  ;;  %v8628_v54 = vmax.f32 %v3973_v10, 0.0  ;;  %v3603_v49 = vsel %vm1714_vm3, %v3571_v2, %v10240_v50  ;;  %v4108_v61 = vrot.slane %v8611_v6, 2 }
 0x679   : > { %v3586_v38 = vsel %vm1714_vm3, %v3554_v9, %v10238_v58  ;;  %v4074_v5 = vrot.slane %v8611_v6, 1  ;;  %v4244_v23 = vrot.slane %v8611_v6, 6  ;;  %v4278_v13 = vrot.slane %v8611_v6, 7 }
 0x67a   : > { %v3150_v39 = vpop.permute.xlu1 %3149  ;;  %v3618_v42 = vsel %vm1747_vm5, %v3586_v38, %v3118_v25  ;;  %v4176_v25 = vrot.slane %v8611_v6, 4  ;;  %v4122_v10 = vrot.slane %v8628_v54, 2  ;;  %v4190_v21 = vrot.slane %v8628_v54, 4 }
 0x67b   : > { %v3374_v56 = vpop.permute.xlu2 %3373  ;;  %v3634_v8 = vsel %vm1747_vm5, %v10227_v17, %v3150_v39  ;;  %v4996_v39 = vld [vmem:[%s5307_s9 + $0xf1] sm:$0xff]  ;;  %v4979_v17 = vld [vmem:[%s5307_s9 + $0x21] sm:$0xff]  ;;  %v4258_v33 = vrot.slane %v8628_v54, 6  ;;  %v4292_v29 = vrot.slane %v8628_v54, 7 }
 0x67d   : > { %v3244_v27 = vpop.permute.xlu0 %3243 }
 0x67e   : > { %v3649_v45 = vsel %vm1780_vm7, %v3617_v14, %v3244_v27  ;;  %v4142_v14 = vrot.slane %v8611_v6, 3 }
 0x67f   : > { %v3681_v53 = vsel %vm1813_vm6, %v3649_v45, %v3372_v40  ;;  %v4210_v45 = vrot.slane %v8611_v6, 5 }
 0x680   : > { %4956 = vmatmul.msk.f32.gmra.mxu1 %vm1859_vm8, %v3681_v53 }
 0x682   : > { %v3880_v22 = vpop.f32.mrf.mxu3  ;;  %v3406_v11 = vpop.permute.xlu1 %3405 }
 0x683   : > { %v3881_v34 = vadd.f32 %v8584_v36, %v3880_v22  ;;  %v8639_v44 = vpop.permute.xlu2 %3119  ;;  %v4088_v22 = vrot.slane %v8628_v54, 1 }
 0x684   : > { %v3832_v60 = vpop.f32.mrf.mxu1 }
 0x685   : > { %v3278_v48 = vpop.permute.xlu0 %3277  ;;  %v3974_v27 = vadd.f32 %v4995_v63, %v3881_v34  ;;  %v3833_v32 = vadd.f32 %v8584_v36, %v3832_v60  ;;  %v4224_v60 = vrot.slane %v8628_v54, 5 }
 0x686   : > { %v3666_v40 = vsel %vm1780_vm7, %v3634_v8, %v3278_v48 }
 0x687   : > { %v3698_v30 = vsel %vm1813_vm6, %v3666_v40, %v3406_v11  ;;  %v4156_v11 = vrot.slane %v8628_v54, 3  ;;  %v8660_v3 = vmax.f32 %v3974_v27, 0.0  ;;  %v10241_v27 = vld [vmem:[#allocation142_spill] sm:$0xff] }
 0x688   : > { %4973 = vmatmul.msk.f32.gmra.mxu3 %vm1859_vm8, %v3698_v30 }
 0x68a   : > { %v3883_v7 = vpop.f32.mrf.mxu3  ;;  %v3152_v18 = vpop.permute.xlu1 %3151 }
 0x68b   : > { %v3884_v46 = vadd.f32 %v8584_v36, %v3883_v7  ;;  %v3635_v30 = vsel %vm1747_vm5, %v3603_v49, %v3152_v18  ;;  %v3376_v55 = vpop.permute.xlu2 %3375 }
 0x68d   : > { %v3975_v53 = vadd.f32 %v4996_v39, %v3884_v46  ;;  %v3246_v62 = vpop.permute.xlu0 %3245  ;;  %v3835_v0 = vpop.f32.mrf.mxu1 }
 0x68e   : > { %v3650_v1 = vsel %vm1780_vm7, %v3618_v42, %v3246_v62  ;;  %v3836_v12 = vadd.f32 %v8584_v36, %v3835_v0  ;;  %v4981_v62 = vld [vmem:[%s5307_s9 + $0x39] sm:$0xff] }
 0x68f   : > { %v4007_v8 = vmax.f32 %v3975_v53, 0.0  ;;  %v3682_v48 = vsel %vm1813_vm6, %v3650_v1, %v3374_v56  ;;  %v3958_v56 = vadd.f32 %v4979_v17, %v3833_v32  ;;  %v4997_v1 = vld [vmem:[%s5307_s9 + $0xf9] sm:$0xff] }
 0x690   : > { %v3959_v57 = vadd.f32 %v4980_v28, %v3836_v12  ;;  %4957 = vmatmul.msk.f32.gmra.mxu1 %vm1859_vm8, %v3682_v48  ;;  %v4376_v12 = vrot.slane %v8660_v3, 1  ;;  %v4512_v48 = vrot.slane %v8660_v3, 5 }
 0x691   : > { %v8666_v20 = vsel %vm4038_vm11, %v4007_v8, %v4088_v22  ;;  %v4157_v31 = vrot.slane %v4007_v8, 2  ;;  %v4123_v19 = vrot.slane %v4007_v8, 1  ;;  %v4191_v40 = vrot.slane %v4007_v8, 3 }
 0x692   : > { %v3991_v47 = vmax.f32 %v3959_v57, 0.0  ;;  %v3408_v4 = vpop.permute.xlu1 %3407  ;;  %v4259_v51 = vrot.slane %v4007_v8, 5  ;;  %v4225_v26 = vrot.slane %v4007_v8, 4  ;;  %v4293_v34 = vrot.slane %v4007_v8, 6 }
 0x693   : > { %v8670_v24 = vsel %vm4038_vm11, %v4157_v31, %v4156_v11  ;;  %v8673_v37 = vsel %vm4038_vm11, %v4123_v19, %v4122_v10  ;;  %v8676_v43 = vsel %vm4038_vm11, %v4191_v40, %v4190_v21  ;;  %v8711_v53 = vmax.f32 %v3958_v56, 0.0  ;;  %v3122_v40 = vpop.permute.xlu2 %3121 }
 0x694   : > { %v4109_v35 = vrot.slane %v3991_v47, 1  ;;  %v8679_v59 = vsel %vm4038_vm11, %v3991_v47, %v4074_v5  ;;  %v4143_v9 = vrot.slane %v3991_v47, 2  ;;  %v4211_v52 = vrot.slane %v3991_v47, 4 }
 0x695   : > { %v3280_v16 = vpop.permute.xlu0 %3279  ;;  %v4177_v2 = vrot.slane %v3991_v47, 3  ;;  %v4245_v58 = vrot.slane %v3991_v47, 5  ;;  %v8682_v38 = vsel %vm4038_vm11, %v4259_v51, %v4258_v33  ;;  %v8692_v49 = vsel %vm4038_vm11, %v4225_v26, %v4224_v60 }
 0x696   : > { %v3667_v63 = vsel %vm1780_vm7, %v3635_v30, %v3280_v16  ;;  %v8686_v15 = vsel %vm4038_vm11, %v4109_v35, %v4108_v61  ;;  %v8689_v50 = vsel %vm4038_vm11, %v4143_v9, %v4142_v14  ;;  %v8696_v7 = vsel %vm4038_vm11, %v4211_v52, %v4210_v45 }
 0x697   : > { %v3699_v42 = vsel %vm1813_vm6, %v3667_v63, %v3408_v4  ;;  %v8699_v39 = vsel %vm4038_vm11, %v4177_v2, %v4176_v25  ;;  %v8702_v18 = vsel %vm4038_vm11, %v4245_v58, %v4244_v23  ;;  %v8706_v46 = vsel %vm4038_vm11, %v4293_v34, %v4292_v29 }
 0x698   : > { %4974 = vmatmul.msk.f32.gmra.mxu3 %vm1859_vm8, %v3699_v42  ;;  %v4279_v61 = vrot.slane %v3991_v47, 6  ;;  %v4037_v5 = vrot.slane %v3991_v47, 7  ;;  %v4058_v14 = vrot.slane %v4007_v8, 7  ;;  %v3587_v45 = vsel %vm1714_vm3, %v8633_v41, %v10241_v27 }
 0x699   : > { %v3838_v25 = vpop.f32.mrf.mxu1  ;;  %v3619_v41 = vsel %vm1747_vm5, %v3587_v45, %v8639_v44  ;;  %v4410_v10 = vrot.slane %v8660_v3, 2  ;;  %v4362_v21 = vrot.slane %v8711_v53, 1  ;;  %v4430_v44 = vrot.slane %v8711_v53, 3 }
 0x69a   : > { %v3839_v23 = vadd.f32 %v8584_v36, %v3838_v25  ;;  %v3154_v0 = vpop.permute.xlu1 %3153  ;;  %v8716_v28 = vsel %vm4038_vm11, %v4279_v61, %v4278_v13  ;;  %v8720_v22 = vsel %vm4038_vm11, %v4037_v5, %v8611_v6  ;;  %v8724_v11 = vsel %vm4038_vm11, %v4058_v14, %v8628_v54  ;;  %v10242_v25 = vld [vmem:[#allocation90_spill] sm:$0xff] }
 0x69b   : > { %v3886_v32 = vpop.f32.mrf.mxu3  ;;  %v4478_v13 = vrot.slane %v8660_v3, 4  ;;  %v4444_v6 = vrot.slane %v8660_v3, 3  ;;  %v4396_v33 = vrot.slane %v8711_v53, 2  ;;  %v4580_v57 = vrot.slane %v8660_v3, 7 }
 0x69c   : > { %v3960_v17 = vadd.f32 %v4981_v62, %v3839_v23  ;;  %v3887_v8 = vadd.f32 %v8584_v36, %v3886_v32  ;;  %v4464_v19 = vrot.slane %v8711_v53, 4  ;;  %v4532_v47 = vrot.slane %v8711_v53, 6 }
 0x69d   : > { %v3248_v54 = vpop.permute.xlu0 %3247  ;;  %v4498_v4 = vrot.slane %v8711_v53, 5  ;;  %v4566_v51 = vrot.slane %v8711_v53, 7  ;;  %v3636_v62 = vsel %vm1747_vm5, %v10242_v25, %v3154_v0 }
 0x69e   : > { %v3992_v60 = vmax.f32 %v3960_v17, 0.0  ;;  %v3976_v29 = vadd.f32 %v4997_v1, %v3887_v8  ;;  %v3651_v31 = vsel %vm1780_vm7, %v3619_v41, %v3248_v54 }
 0x69f   : > { %v3683_v56 = vsel %vm1813_vm6, %v3651_v31, %v3376_v55  ;;  %v5139_v31 = vld [vmem:[#allocation2 + $0x98] sm:$0xff] }
 0x6a0   : > { %v4008_v26 = vmax.f32 %v3976_v29, 0.0  ;;  %4958 = vmatmul.msk.f32.gmra.mxu1 %vm1859_vm8, %v3683_v56  ;;  %v4328_v30 = vrot.slane %v3992_v60, 7  ;;  %v8747_v35 = vsel %vm4038_vm11, %v3992_v60, %v4362_v21  ;;  %v4431_v9 = vrot.slane %v3992_v60, 2 }
 0x6a1   : > { %v4397_v34 = vrot.slane %v3992_v60, 1  ;;  %v4465_v16 = vrot.slane %v3992_v60, 3  ;;  %v4533_v52 = vrot.slane %v3992_v60, 5  ;;  %v4499_v2 = vrot.slane %v3992_v60, 4 }
 0x6a2   : > { %v3410_v58 = vpop.permute.xlu1 %3409  ;;  %v8751_v55 = vsel %vm4038_vm11, %v4328_v30, %v8711_v53  ;;  %v8754_v63 = vsel %vm4038_vm11, %v4008_v26, %v4376_v12  ;;  %v4342_v42 = vrot.slane %v4008_v26, 7  ;;  %v4411_v61 = vrot.slane %v4008_v26, 1 }
 0x6a3   : > { %v8757_v5 = vsel %vm4038_vm11, %v4431_v9, %v4430_v44  ;;  %v8760_v14 = vsel %vm4038_vm11, %v4397_v34, %v4396_v33  ;;  %v8763_v27 = vsel %vm4038_vm11, %v4465_v16, %v4464_v19  ;;  %v4479_v45 = vrot.slane %v4008_v26, 3  ;;  %v10243_v19 = vld [vmem:[#allocation61_spill] sm:$0xff] }
 0x6a4   : > { %v8769_v53 = vsel %vm4038_vm11, %v4342_v42, %v8660_v3  ;;  %v8772_v23 = vsel %vm4038_vm11, %v4411_v61, %v4410_v10  ;;  %v4445_v41 = vrot.slane %v4008_v26, 2  ;;  %v4513_v12 = vrot.slane %v4008_v26, 4  ;;  %v4998_v34 = vld [vmem:[%s5307_s9 + $0x109] sm:$0xff] }
 0x6a5   : > { %v3282_v32 = vpop.permute.xlu0 %3281  ;;  %v8775_v1 = vsel %vm4038_vm11, %v4479_v45, %v4478_v13  ;;  %v8778_v17 = vsel %vm4038_vm11, %v4533_v52, %v4532_v47  ;;  %v8781_v8 = vsel %vm4038_vm11, %v4499_v2, %v4498_v4  ;;  %v4567_v21 = vrot.slane %v3992_v60, 6  ;;  %v10244_v47 = vld [vmem:[#allocation67_spill] sm:$0xff]  ;;  %v3378_v4 = vpop.permute.xlu2 %3377  ;;  %v10246_v52 = vld [vmem:[#allocation76_spill] sm:$0xff]  ;;  %v10248_v61 = vld [vmem:[#allocation130_spill] sm:$0xff] }
 0x6a6   : > { %v3668_v0 = vsel %vm1780_vm7, %v3636_v62, %v3282_v32  ;;  %v8785_v54 = vsel %vm4038_vm11, %v4445_v41, %v4444_v6  ;;  %v4581_v10 = vrot.slane %v4008_v26, 6  ;;  %v8789_v13 = vsel %vm4038_vm11, %v4513_v12, %v4512_v48  ;;  %v4982_v62 = vld [vmem:[%s5307_s9 + $0x49] sm:$0xff]  ;;  %v10249_v41 = vld [vmem:[#allocation159_spill] sm:$0xff] }
 0x6a7   : > { %v3700_v44 = vsel %vm1813_vm6, %v3668_v0, %v3410_v58  ;;  %v4546_v33 = vrot.slane %v8660_v3, 6  ;;  %v4547_v29 = vrot.slane %v4008_v26, 5  ;;  %v3460_v56 = vsel %vm223_vm0, %v5139_v31, %v10243_v19  ;;  %v10245_v26 = vld [vmem:[#allocation121_spill] sm:$0xff]  ;;  %v10251_v31 = vld [vmem:[#allocation110_spill] sm:$0xff] }
 0x6a8   : > { %4975 = vmatmul.msk.f32.gmra.mxu3 %vm1859_vm8, %v3700_v44  ;;  %v8796_v6 = vsel %vm4038_vm11, %v4567_v21, %v4566_v51  ;;  %v8799_v60 = vsel %vm4038_vm11, %v4581_v10, %v4580_v57  ;;  %v3492_v48 = vsel %vm1615_vm1, %v3460_v56, %v10244_v47  ;;  %v5140_v57 = vld [vmem:[#allocation2 + $0xa8] sm:$0xff]  ;;  %v5141_v44 = vld [vmem:[#allocation2 + $0x170] sm:$0xff] }
 0x6a9   : > { %v8804_v3 = vsel %vm4038_vm11, %v4547_v29, %v4546_v33  ;;  %v3524_v30 = vsel %vm1648_vm2, %v3492_v48, %v10245_v26  ;;  %v10247_v58 = vld [vmem:[#allocation33_spill] sm:$0xff]  ;;  %v10250_v33 = vld [vmem:[#allocation87_spill] sm:$0xff] }
 0x6aa   : > { %v3889_v9 = vpop.f32.mrf.mxu3  ;;  %v3156_v16 = vpop.permute.xlu1 %3155  ;;  %v3556_v51 = vsel %vm1681_vm4, %v3524_v30, %v10246_v52  ;;  %v3461_v42 = vsel %vm223_vm0, %v5140_v57, %v10247_v58  ;;  %v3478_v29 = vsel %vm223_vm0, %v5141_v44, %v10250_v33  ;;  %v10252_v47 = vld [vmem:[#allocation73_spill] sm:$0xff]  ;;  %v10254_v52 = vld [vmem:[#allocation103_spill] sm:$0xff] }
 0x6ab   : > { %v3890_v2 = vadd.f32 %v8584_v36, %v3889_v9  ;;  %v3588_v45 = vsel %vm1714_vm3, %v3556_v51, %v10248_v61  ;;  %v3493_v32 = vsel %vm1615_vm1, %v3461_v42, %v10249_v41  ;;  %v10253_v9 = vld [vmem:[#allocation128_spill] sm:$0xff] }
 0x6ac   : > { %v3841_v25 = vpop.f32.mrf.mxu1  ;;  %v3620_v12 = vsel %vm1747_vm5, %v3588_v45, %v3122_v40  ;;  %v3525_v19 = vsel %vm1648_vm2, %v3493_v32, %v10251_v31 }
 0x6ad   : > { %v3977_v0 = vadd.f32 %v4998_v34, %v3890_v2  ;;  %v3842_v21 = vadd.f32 %v8584_v36, %v3841_v25  ;;  %v3250_v10 = vpop.permute.xlu0 %3249  ;;  %v3557_v48 = vsel %vm1681_vm4, %v3525_v19, %v10252_v47  ;;  %v8833_v34 = vsel %vm1615_vm1, %v3478_v29, %v10253_v9  ;;  %v4999_v25 = vld [vmem:[%s5307_s9 + $0x111] sm:$0xff] }
 0x6ae   : > { %v3652_v56 = vsel %vm1780_vm7, %v3620_v12, %v3250_v10  ;;  %v3589_v51 = vsel %vm1714_vm3, %v3557_v48, %v10254_v52  ;;  %v3124_v10 = vpop.permute.xlu2 %3123 }
 0x6af   : > { %v8828_v26 = vmax.f32 %v3977_v0, 0.0  ;;  %v3961_v40 = vadd.f32 %v4982_v62, %v3842_v21  ;;  %v3684_v30 = vsel %vm1813_vm6, %v3652_v56, %v3378_v4  ;;  %v10255_v4 = vld [vmem:[#allocation80_spill] sm:$0xff] }
 0x6b0   : > { %4959 = vmatmul.msk.f32.gmra.mxu1 %vm1859_vm8, %v3684_v30  ;;  %v3637_v61 = vsel %vm1747_vm5, %v10255_v4, %v3156_v16 }
 0x6b1   : > { %v8838_v2 = vmax.f32 %v3961_v40, 0.0  ;;  %v4090_v57 = vrot.slane %v8828_v26, 7  ;;  %v4159_v58 = vrot.slane %v8828_v26, 1  ;;  %v8845_v42 = vsel %vm4041_vm12, %v8828_v26, %v8673_v37 }
 0x6b2   : > { %v3892_v45 = vpop.f32.mrf.mxu3  ;;  %v3412_v62 = vpop.permute.xlu1 %3411  ;;  %v4193_v41 = vrot.slane %v8828_v26, 2  ;;  %v4261_v32 = vrot.slane %v8828_v26, 4  ;;  %v4227_v12 = vrot.slane %v8828_v26, 3 }
 0x6b3   : > { %v3893_v0 = vadd.f32 %v8584_v36, %v3892_v45  ;;  %v8856_v21 = vsel %vm4041_vm12, %v4090_v57, %v8666_v20  ;;  %v8861_v37 = vsel %vm4041_vm12, %v8838_v2, %v8686_v15  ;;  %v4076_v16 = vrot.slane %v8838_v2, 7  ;;  %v4983_v15 = vld [vmem:[%s5307_s9 + $0x51] sm:$0xff] }
 0x6b4   : > { %v4145_v44 = vrot.slane %v8838_v2, 1  ;;  %v8867_v33 = vsel %vm4041_vm12, %v4159_v58, %v8670_v24  ;;  %v8871_v29 = vsel %vm4041_vm12, %v4193_v41, %v8676_v43  ;;  %v4295_v20 = vrot.slane %v8828_v26, 5 }
 0x6b5   : > { %v3978_v31 = vadd.f32 %v4999_v25, %v3893_v0  ;;  %v3284_v19 = vpop.permute.xlu0 %3283  ;;  %v3844_v56 = vpop.f32.mrf.mxu1  ;;  %v8877_v47 = vsel %vm4041_vm12, %v4076_v16, %v8679_v59  ;;  %v4213_v48 = vrot.slane %v8838_v2, 3  ;;  %v4179_v40 = vrot.slane %v8838_v2, 2 }
 0x6b6   : > { %v3669_v24 = vsel %vm1780_vm7, %v3637_v61, %v3284_v19  ;;  %v3845_v30 = vadd.f32 %v8584_v36, %v3844_v56  ;;  %v8885_v43 = vsel %vm4041_vm12, %v4145_v44, %v8689_v50  ;;  %v4247_v9 = vrot.slane %v8838_v2, 4 }
 0x6b7   : > { %v4010_v52 = vmax.f32 %v3978_v31, 0.0  ;;  %v3701_v57 = vsel %vm1813_vm6, %v3669_v24, %v3412_v62  ;;  %v8891_v59 = vsel %vm4041_vm12, %v4213_v48, %v8696_v7  ;;  %v8895_v58 = vsel %vm4041_vm12, %v4179_v40, %v8699_v39 }
 0x6b8   : > { %v3962_v4 = vadd.f32 %v4983_v15, %v3845_v30  ;;  %4976 = vmatmul.msk.f32.gmra.mxu3 %vm1859_vm8, %v3701_v57  ;;  %v8900_v50 = vsel %vm4041_vm12, %v4247_v9, %v8702_v18  ;;  %v8904_v61 = vsel %vm4041_vm12, %v4261_v32, %v8682_v38  ;;  %v8908_v45 = vsel %vm4041_vm12, %v4227_v12, %v8692_v49 }
 0x6b9   : > { %v8912_v7 = vsel %vm4041_vm12, %v4295_v20, %v8706_v46  ;;  %v4281_v39 = vrot.slane %v8838_v2, 5  ;;  %v4378_v25 = vrot.slane %v4010_v52, 7  ;;  %v4344_v62 = vrot.slane %v4010_v52, 6 }
 0x6ba   : > { %v3994_v41 = vmax.f32 %v3962_v4, 0.0  ;;  %v3158_v0 = vpop.permute.xlu1 %3157  ;;  %v8917_v18 = vsel %vm4041_vm12, %v4010_v52, %v8772_v23  ;;  %v4481_v38 = vrot.slane %v4010_v52, 2  ;;  %v4447_v32 = vrot.slane %v4010_v52, 1 }
 0x6bb   : > { %v3621_v16 = vsel %vm1747_vm5, %v3589_v51, %v3124_v10  ;;  %v8922_v49 = vsel %vm4041_vm12, %v4281_v39, %v8716_v28  ;;  %v8926_v46 = vsel %vm4041_vm12, %v4378_v25, %v8754_v63  ;;  %v8930_v12 = vsel %vm4041_vm12, %v4344_v62, %v8769_v53  ;;  %v3380_v53 = vpop.permute.xlu2 %3379  ;;  %v10257_v25 = vld [vmem:[#allocation158_spill] sm:$0xff] }
 0x6bc   : > { %v4330_v44 = vrot.slane %v3994_v41, 6  ;;  %v4364_v20 = vrot.slane %v3994_v41, 7  ;;  %v4433_v23 = vrot.slane %v3994_v41, 1  ;;  %v8934_v31 = vsel %vm4041_vm12, %v3994_v41, %v8760_v14 }
 0x6bd   : > { %v3252_v51 = vpop.permute.xlu0 %3251  ;;  %v4467_v10 = vrot.slane %v3994_v41, 2  ;;  %v8938_v28 = vsel %vm4041_vm12, %v4481_v38, %v8775_v1  ;;  %v8942_v63 = vsel %vm4041_vm12, %v4447_v32, %v8785_v54  ;;  %v4515_v19 = vrot.slane %v4010_v52, 3 }
 0x6be   : > { %v3653_v56 = vsel %vm1780_vm7, %v3621_v16, %v3252_v51  ;;  %v8947_v15 = vsel %vm4041_vm12, %v4330_v44, %v8751_v55  ;;  %v8951_v14 = vsel %vm4041_vm12, %v4364_v20, %v8747_v35  ;;  %v8955_v1 = vsel %vm4041_vm12, %v4433_v23, %v8757_v5  ;;  %v10256_v5 = vld [vmem:[#allocation163_spill] sm:$0xff]  ;;  %v10258_v16 = vld [vmem:[#allocation164_spill] sm:$0xff] }
 0x6bf   : > { %v3685_v48 = vsel %vm1813_vm6, %v3653_v56, %v3380_v53  ;;  %v8960_v54 = vsel %vm4041_vm12, %v4467_v10, %v8763_v27  ;;  %v8964_v40 = vsel %vm4041_vm12, %v4515_v19, %v8789_v13  ;;  %v4535_v55 = vrot.slane %v3994_v41, 4  ;;  %v5000_v23 = vld [vmem:[%s5307_s9 + $0x121] sm:$0xff] }
 0x6c0   : > { %4960 = vmatmul.msk.f32.gmra.mxu1 %vm1859_vm8, %v3685_v48  ;;  %v4501_v35 = vrot.slane %v3994_v41, 3  ;;  %v4569_v24 = vrot.slane %v3994_v41, 5  ;;  %v4583_v30 = vrot.slane %v4010_v52, 5  ;;  %v4549_v9 = vrot.slane %v4010_v52, 4  ;;  %v10259_v48 = vld [vmem:[#allocation165_spill] sm:$0xff] }
 0x6c1   : > { %v3542_v57 = vsel %vm1648_vm2, %v8833_v34, %v10256_v5  ;;  %v3847_v4 = vpop.f32.mrf.mxu1  ;;  %v8972_v27 = vsel %vm4041_vm12, %v4535_v55, %v8778_v17  ;;  %v4040_v13 = vrot.slane %v8838_v2, 6  ;;  %v4060_v39 = vrot.slane %v8828_v26, 6  ;;  %v4984_v17 = vld [vmem:[%s5307_s9 + $0x61] sm:$0xff] }
 0x6c2   : > { %v3574_v62 = vsel %vm1681_vm4, %v3542_v57, %v10257_v25  ;;  %v3848_v41 = vadd.f32 %v8584_v36, %v3847_v4  ;;  %v8981_v52 = vsel %vm4041_vm12, %v4501_v35, %v8781_v8  ;;  %v8985_v34 = vsel %vm4041_vm12, %v4569_v24, %v8796_v6  ;;  %v3414_v44 = vpop.permute.xlu1 %3413 }
 0x6c3   : > { %v3895_v38 = vpop.f32.mrf.mxu3  ;;  %v8990_v2 = vsel %vm4041_vm12, %v4583_v30, %v8799_v60  ;;  %v8994_v26 = vsel %vm4041_vm12, %v4549_v9, %v8804_v3  ;;  %v4042_v32 = vsel %vm4041_vm12, %v4040_v13, %v8720_v22  ;;  %v4061_v8 = vsel %vm4041_vm12, %v4060_v39, %v8724_v11  ;;  %v3126_v22 = vpop.permute.xlu2 %3125  ;;  %v5001_v39 = vld [vmem:[%s5307_s9 + $0x129] sm:$0xff] }
 0x6c4   : > { %v3606_v6 = vsel %vm1714_vm3, %v3574_v62, %v10258_v16  ;;  %v3896_v20 = vadd.f32 %v8584_v36, %v3895_v38  ;;  %v3963_v10 = vadd.f32 %v4984_v17, %v3848_v41  ;;  %v3622_v55 = vsel %vm1747_vm5, %v10259_v48, %v3126_v22  ;;  %v4985_v41 = vld [vmem:[%s5307_s9 + $0x69] sm:$0xff] }
 0x6c5   : > { %v3638_v60 = vsel %vm1747_vm5, %v3606_v6, %v3158_v0  ;;  %v3286_v51 = vpop.permute.xlu0 %3285 }
 0x6c6   : > { %v3670_v3 = vsel %vm1780_vm7, %v3638_v60, %v3286_v51  ;;  %v3979_v19 = vadd.f32 %v5000_v23, %v3896_v20  ;;  %v9008_v11 = vmax.f32 %v3963_v10, 0.0 }
 0x6c7   : > { %v3702_v53 = vsel %vm1813_vm6, %v3670_v3, %v3414_v44 }
 0x6c8   : > { %4977 = vmatmul.msk.f32.gmra.mxu3 %vm1859_vm8, %v3702_v53  ;;  %v9010_v56 = vmax.f32 %v3979_v19, 0.0  ;;  %v4043_v30 = vrot.slane %v9008_v11, 5 }
 0x6ca   : > { %v3382_v35 = vpop.permute.xlu1 %3381  ;;  %v4062_v5 = vrot.slane %v9010_v56, 5  ;;  %v4045_v57 = vsel %vm4044_vm13, %v4043_v30, %v4042_v32  ;;  %v4986_v30 = vld [vmem:[%s5307_s9 + $0x79] sm:$0xff] }
 0x6cc   : > { %v4063_v4 = vsel %vm4044_vm13, %v4062_v5, %v4061_v8 }
 0x6cd   : > { %v3254_v0 = vpop.permute.xlu0 %3253 }
 0x6ce   : > { %v3654_v24 = vsel %vm1780_vm7, %v3622_v55, %v3254_v0 }
 0x6cf   : > { %v3686_v9 = vsel %vm1813_vm6, %v3654_v24, %v3382_v35 }
 0x6d0   : > { %4961 = vmatmul.msk.f32.gmra.mxu1 %vm1859_vm8, %v3686_v9 }
 0x6d2   : > { %v3898_v13 = vpop.f32.mrf.mxu3 }
 0x6d3   : > { %v3899_v25 = vadd.f32 %v8584_v36, %v3898_v13  ;;  %v5002_v13 = vld [vmem:[%s5307_s9 + $0x139] sm:$0xff] }
 0x6d4   : > { %v3850_v62 = vpop.f32.mrf.mxu1 }
 0x6d5   : > { %v3980_v17 = vadd.f32 %v5001_v39, %v3899_v25  ;;  %v3851_v38 = vadd.f32 %v8584_v36, %v3850_v62 }
 0x6d7   : > { %v4012_v16 = vmax.f32 %v3980_v17, 0.0  ;;  %v3964_v6 = vadd.f32 %v4985_v41, %v3851_v38 }
 0x6d9   : > { %v3996_v44 = vmax.f32 %v3964_v6, 0.0  ;;  %v4380_v20 = vrot.slane %v4012_v16, 6  ;;  %v4346_v23 = vrot.slane %v4012_v16, 5  ;;  %v4414_v60 = vrot.slane %v4012_v16, 7 }
 0x6da   : > { %v3901_v51 = vpop.f32.mrf.mxu3  ;;  %v4483_v32 = vrot.slane %v4012_v16, 1  ;;  %v9027_v8 = vsel %vm4044_vm13, %v4012_v16, %v8942_v63  ;;  %v4517_v10 = vrot.slane %v4012_v16, 2  ;;  %v4585_v22 = vrot.slane %v4012_v16, 4 }
 0x6db   : > { %v4332_v3 = vrot.slane %v3996_v44, 5  ;;  %v4366_v19 = vrot.slane %v3996_v44, 6  ;;  %v4381_v53 = vsel %vm4044_vm13, %v4380_v20, %v8926_v46  ;;  %v4347_v48 = vsel %vm4044_vm13, %v4346_v23, %v8930_v12 }
 0x6dc   : > { %v4415_v55 = vsel %vm4044_vm13, %v4414_v60, %v8917_v18  ;;  %v4435_v0 = vsel %vm4044_vm13, %v3996_v44, %v8955_v1  ;;  %v4400_v35 = vrot.slane %v3996_v44, 7  ;;  %v3902_v63 = vadd.f32 %v8584_v36, %v3901_v51  ;;  %v5003_v51 = vld [vmem:[%s5307_s9 + $0x141] sm:$0xff] }
 0x6dd   : > { %v3853_v24 = vpop.f32.mrf.mxu1  ;;  %v4333_v9 = vsel %vm4044_vm13, %v4332_v3, %v8947_v15  ;;  %v4367_v46 = vsel %vm4044_vm13, %v4366_v19, %v8951_v14  ;;  %v4469_v5 = vrot.slane %v3996_v44, 1  ;;  %v4484_v1 = vsel %vm4044_vm13, %v4483_v32, %v8938_v28 }
 0x6de   : > { %v3854_v12 = vadd.f32 %v8584_v36, %v3853_v24  ;;  %v4401_v18 = vsel %vm4044_vm13, %v4400_v35, %v8934_v31  ;;  %v4518_v39 = vsel %vm4044_vm13, %v4517_v10, %v8964_v40  ;;  %v4586_v14 = vsel %vm4044_vm13, %v4585_v22, %v8990_v2  ;;  %v4987_v10 = vld [vmem:[%s5307_s9 + $0x81] sm:$0xff] }
 0x6df   : > { %v4470_v25 = vsel %vm4044_vm13, %v4469_v5, %v8960_v54  ;;  %v3981_v62 = vadd.f32 %v5002_v13, %v3902_v63  ;;  %v4537_v41 = vrot.slane %v3996_v44, 3  ;;  %v4503_v38 = vrot.slane %v3996_v44, 2 }
 0x6e0   : > { %v3965_v15 = vadd.f32 %v4986_v30, %v3854_v12  ;;  %v4571_v31 = vrot.slane %v3996_v44, 4  ;;  %v4551_v6 = vrot.slane %v4012_v16, 3 }
 0x6e1   : > { %v9057_v28 = vmax.f32 %v3981_v62, 0.0  ;;  %v4538_v40 = vsel %vm4044_vm13, %v4537_v41, %v8972_v27  ;;  %v4504_v54 = vsel %vm4044_vm13, %v4503_v38, %v8981_v52 }
 0x6e2   : > { %v9055_v17 = vmax.f32 %v3965_v15, 0.0  ;;  %v4572_v2 = vsel %vm4044_vm13, %v4571_v31, %v8985_v34  ;;  %v4552_v20 = vsel %vm4044_vm13, %v4551_v6, %v8994_v26 }
 0x6e3   : > { %v4064_v44 = vrot.slane %v9057_v28, 4 }
 0x6e4   : > { %v4046_v23 = vrot.slane %v9055_v17, 4 }
 0x6e5   : > { %v4065_v27 = vsel %vm4047_vm14, %v4064_v44, %v4063_v4 }
 0x6e6   : > { %v4048_v16 = vsel %vm4047_vm14, %v4046_v23, %v4045_v57 }
 0x6eb   : > { %v3904_v60 = vpop.f32.mrf.mxu3 }
 0x6ec   : > { %v3905_v32 = vadd.f32 %v8584_v36, %v3904_v60 }
 0x6ed   : > { %v3856_v52 = vpop.f32.mrf.mxu1 }
 0x6ee   : > { %v3982_v3 = vadd.f32 %v5003_v51, %v3905_v32  ;;  %v3857_v34 = vadd.f32 %v8584_v36, %v3856_v52 }
 0x6f0   : > { %v4014_v19 = vmax.f32 %v3982_v3, 0.0  ;;  %v3966_v26 = vadd.f32 %v4987_v10, %v3857_v34  ;;  %v4988_v34 = vld [vmem:[%s5307_s9 + $0x91] sm:$0xff] }
 0x6f2   : > { %v3998_v22 = vmax.f32 %v3966_v26, 0.0  ;;  %v4382_v35 = vrot.slane %v4014_v19, 5  ;;  %v4348_v63 = vrot.slane %v4014_v19, 4  ;;  %v4416_v24 = vrot.slane %v4014_v19, 6 }
 0x6f3   : > { %v9076_v30 = vsel %vm4047_vm14, %v4014_v19, %v4484_v1  ;;  %v4450_v57 = vrot.slane %v4014_v19, 7  ;;  %v4519_v5 = vrot.slane %v4014_v19, 1  ;;  %v4587_v13 = vrot.slane %v4014_v19, 3 }
 0x6f4   : > { %v4334_v4 = vrot.slane %v3998_v22, 4  ;;  %v4368_v12 = vrot.slane %v3998_v22, 5  ;;  %v4383_v15 = vsel %vm4047_vm14, %v4382_v35, %v4381_v53  ;;  %v4349_v62 = vsel %vm4047_vm14, %v4348_v63, %v4347_v48 }
 0x6f5   : > { %v4417_v41 = vsel %vm4047_vm14, %v4416_v24, %v4415_v55  ;;  %v4436_v38 = vrot.slane %v3998_v22, 7  ;;  %v4402_v31 = vrot.slane %v3998_v22, 6  ;;  %v9082_v6 = vsel %vm4047_vm14, %v3998_v22, %v4470_v25  ;;  %v5005_v24 = vld [vmem:[%s5307_s9 + $0x159] sm:$0xff] }
 0x6f6   : > { %10260 = vst [vmem:[#allocation74_spill] sm:$0xff] %v9082_v6  ;;  %v9085_v23 = vsel %vm4047_vm14, %v4334_v4, %v4333_v9  ;;  %v9088_v1 = vsel %vm4047_vm14, %v4368_v12, %v4367_v46  ;;  %v4451_v44 = vsel %vm4047_vm14, %v4450_v57, %v9027_v8  ;;  %v4520_v53 = vsel %vm4047_vm14, %v4519_v5, %v4518_v39 }
 0x6f7   : > { %v9094_v48 = vsel %vm4047_vm14, %v4436_v38, %v4435_v0  ;;  %v9097_v55 = vsel %vm4047_vm14, %v4402_v31, %v4401_v18  ;;  %v4539_v25 = vrot.slane %v3998_v22, 2  ;;  %v4505_v60 = vrot.slane %v3998_v22, 1  ;;  %v5004_v18 = vld [vmem:[%s5307_s9 + $0x151] sm:$0xff] }
 0x6f8   : > { %10261 = vst [vmem:[#allocation152_spill] sm:$0xff] %v9097_v55  ;;  %v4573_v9 = vrot.slane %v3998_v22, 3  ;;  %v4588_v51 = vsel %vm4047_vm14, %v4587_v13, %v4586_v14  ;;  %v4553_v46 = vrot.slane %v4014_v19, 2  ;;  %v4989_v13 = vld [vmem:[%s5307_s9 + $0x99] sm:$0xff] }
 0x6f9   : > { %v4540_v32 = vsel %vm4047_vm14, %v4539_v25, %v4538_v40  ;;  %v4506_v52 = vsel %vm4047_vm14, %v4505_v60, %v4504_v54 }
 0x6fa   : > { %v4574_v8 = vsel %vm4047_vm14, %v4573_v9, %v4572_v2  ;;  %v4554_v39 = vsel %vm4047_vm14, %v4553_v46, %v4552_v20 }
 0x6fb   : > { %v3907_v10 = vpop.f32.mrf.mxu3 }
 0x6fc   : > { %v3908_v0 = vadd.f32 %v8584_v36, %v3907_v10 }
 0x6fd   : > { %v3859_v3 = vpop.f32.mrf.mxu1 }
 0x6fe   : > { %v3860_v26 = vadd.f32 %v8584_v36, %v3859_v3  ;;  %v3983_v14 = vadd.f32 %v5004_v18, %v3908_v0 }
 0x700   : > { %v3967_v19 = vadd.f32 %v4988_v34, %v3860_v26  ;;  %v9108_v22 = vmax.f32 %v3983_v14, 0.0 }
 0x702   : > { %v9110_v40 = vmax.f32 %v3967_v19, 0.0  ;;  %v4066_v2 = vrot.slane %v9108_v22, 3 }
 0x704   : > { %v4049_v54 = vrot.slane %v9110_v40, 3  ;;  %v4067_v35 = vsel %vm4050_vm15, %v4066_v2, %v4065_v27 }
 0x706   : > { %v4051_v20 = vsel %vm4050_vm15, %v4049_v54, %v4048_v16 }
 0x70b   : > { %v3910_v63 = vpop.f32.mrf.mxu3 }
 0x70c   : > { %v3911_v57 = vadd.f32 %v8584_v36, %v3910_v63 }
 0x70d   : > { %v3862_v5 = vpop.f32.mrf.mxu1 }
 0x70e   : > { %v3984_v4 = vadd.f32 %v5005_v24, %v3911_v57  ;;  %v3863_v12 = vadd.f32 %v8584_v36, %v3862_v5  ;;  %v5006_v24 = vld [vmem:[%s5307_s9 + $0x169] sm:$0xff] }
 0x70f   : > { %v4990_v5 = vld [vmem:[%s5307_s9 + $0xa9] sm:$0xff] }
 0x710   : > { %v4016_v38 = vmax.f32 %v3984_v4, 0.0  ;;  %v3968_v31 = vadd.f32 %v4989_v13, %v3863_v12 }
 0x712   : > { %v4384_v25 = vrot.slane %v4016_v38, 4  ;;  %v4350_v60 = vrot.slane %v4016_v38, 3  ;;  %v4418_v9 = vrot.slane %v4016_v38, 5  ;;  %v9120_v46 = vmax.f32 %v3968_v31, 0.0 }
 0x713   : > { %v4486_v10 = vrot.slane %v4016_v38, 7  ;;  %v4452_v16 = vrot.slane %v4016_v38, 6  ;;  %v4521_v27 = vsel %vm4050_vm15, %v4016_v38, %v4520_v53  ;;  %v4589_v3 = vrot.slane %v4016_v38, 2 }
 0x714   : > { %v9124_v0 = vsel %vm4050_vm15, %v4384_v25, %v4383_v15  ;;  %v9127_v18 = vsel %vm4050_vm15, %v4350_v60, %v4349_v62  ;;  %v9130_v34 = vsel %vm4050_vm15, %v4418_v9, %v4417_v41  ;;  %v4541_v53 = vrot.slane %v9120_v46, 1  ;;  %v5007_v25 = vld [vmem:[%s5307_s9 + $0x171] sm:$0xff] }
 0x715   : > { %v9134_v26 = vsel %vm4050_vm15, %v4486_v10, %v9076_v30  ;;  %v9137_v14 = vsel %vm4050_vm15, %v4452_v16, %v4451_v44  ;;  %v4507_v15 = vsel %vm4050_vm15, %v9120_v46, %v4506_v52  ;;  %v4575_v62 = vrot.slane %v9120_v46, 2  ;;  %v4991_v10 = vld [vmem:[%s5307_s9 + $0xb1] sm:$0xff] }
 0x716   : > { %10262 = vst [vmem:[#allocation167_spill] sm:$0xff] %v9134_v26  ;;  %v4590_v19 = vsel %vm4050_vm15, %v4589_v3, %v4588_v51  ;;  %v4555_v54 = vrot.slane %v4016_v38, 1  ;;  %v4542_v41 = vsel %vm4050_vm15, %v4541_v53, %v4540_v32  ;;  %v4148_v26 = vrot.slane %v9055_v17, 7 }
 0x717   : > { %10263 = vst [vmem:[#allocation45_spill] sm:$0xff] %v9137_v14  ;;  %v4576_v2 = vsel %vm4050_vm15, %v4575_v62, %v4574_v8 }
 0x718   : > { %v4556_v30 = vsel %vm4050_vm15, %v4555_v54, %v4554_v39 }
 0x71b   : > { %v3913_v63 = vpop.f32.mrf.mxu3 }
 0x71c   : > { %v3914_v44 = vadd.f32 %v8584_v36, %v3913_v63  ;;  %v4112_v63 = vrot.slane %v9008_v11, 7 }
 0x71d   : > { %v3865_v57 = vpop.f32.mrf.mxu1 }
 0x71e   : > { %v3866_v52 = vadd.f32 %v8584_v36, %v3865_v57  ;;  %v3985_v13 = vadd.f32 %v5006_v24, %v3914_v44 }
 0x720   : > { %v3969_v4 = vadd.f32 %v4990_v5, %v3866_v52  ;;  %v9151_v51 = vmax.f32 %v3985_v13, 0.0  ;;  %v4078_v13 = vrot.slane %v9008_v11, 6 }
 0x722   : > { %v9153_v12 = vmax.f32 %v3969_v4, 0.0  ;;  %v4068_v8 = vrot.slane %v9151_v51, 2 }
 0x724   : > { %v4052_v32 = vrot.slane %v9153_v12, 2  ;;  %v9161_v38 = vsel %vm4053_vm9, %v4068_v8, %v4067_v35  ;;  %v5008_v8 = vld [vmem:[%s5307_s9 + $0x181] sm:$0xff]  ;;  %v4084_v14 = vrot.slane %v9153_v12, 3 }
 0x726   : > { %v9158_v39 = vsel %vm4053_vm9, %v4052_v32, %v4051_v20 }
 0x72b   : > { %v3916_v31 = vpop.f32.mrf.mxu3 }
 0x72c   : > { %v3917_v60 = vadd.f32 %v8584_v36, %v3916_v31  ;;  %v4147_v31 = vsel %vm4044_vm13, %v9008_v11, %v8885_v43  ;;  %v4079_v43 = vsel %vm4044_vm13, %v4078_v13, %v8877_v47  ;;  %v4098_v47 = vrot.slane %v9151_v51, 3 }
 0x72d   : > { %v3868_v9 = vpop.f32.mrf.mxu1 }
 0x72e   : > { %v3986_v16 = vadd.f32 %v5007_v25, %v3917_v60  ;;  %v3869_v3 = vadd.f32 %v8584_v36, %v3868_v9  ;;  %v4181_v25 = vrot.slane %v9008_v11, 1 }
 0x730   : > { %v9167_v53 = vmax.f32 %v3986_v16, 0.0  ;;  %v3970_v62 = vadd.f32 %v4991_v10, %v3869_v3  ;;  %v4992_v10 = vld [vmem:[%s5307_s9 + $0xc1] sm:$0xff]  ;;  %v4094_v16 = vrot.slane %v9057_v28, 5  ;;  %v4161_v3 = vsel %vm4044_vm13, %v9010_v56, %v8867_v33 }
 0x731   : > { %v4080_v33 = vrot.slane %v9055_v17, 5 }
 0x732   : > { %v4522_v54 = vrot.slane %v9167_v53, 7  ;;  %v9170_v20 = vmax.f32 %v3970_v62, 0.0  ;;  %v4591_v35 = vrot.slane %v9167_v53, 1  ;;  %v9189_v4 = vsel %vm4053_vm9, %v9167_v53, %v4556_v30 }
 0x733   : > { %v4092_v30 = vrot.slane %v9010_v56, 6 }
 0x734   : > { %v9175_v44 = vsel %vm4053_vm9, %v4522_v54, %v4521_v27  ;;  %v9179_v24 = vsel %vm4053_vm9, %v9170_v20, %v4542_v41  ;;  %v4508_v57 = vrot.slane %v9170_v20, 7  ;;  %v4577_v5 = vrot.slane %v9170_v20, 1 }
 0x735   : > { %v9184_v52 = vsel %vm4053_vm9, %v4591_v35, %v4590_v19  ;;  %v4215_v19 = vrot.slane %v9008_v11, 2  ;;  %v4096_v35 = vrot.slane %v9108_v22, 4 }
 0x736   : > { %v9192_v27 = vsel %vm4053_vm9, %v4508_v57, %v4507_v15  ;;  %v9195_v41 = vsel %vm4053_vm9, %v4577_v5, %v4576_v2  ;;  %v4113_v15 = vsel %vm4044_vm13, %v4112_v63, %v8861_v37  ;;  %v9219_v37 = vld [vmem:[%s9560_s4] ss:$0 sm:$0xff]  ;;  %v4114_v63 = vrot.slane %v9055_v17, 6 }
 0x737   : > { %v4116_v57 = vrot.slane %v9110_v40, 5  ;;  %v4118_v2 = vrot.slane %v9153_v12, 4 }
 0x73b   : > { %v3919_v32 = vpop.f32.mrf.mxu3 }
 0x73c   : > { %v3920_v60 = vadd.f32 %v8584_v36, %v3919_v32  ;;  %v4126_v36 = vrot.slane %v9010_v56, 7 }
 0x73d   : > { %v3871_v9 = vpop.f32.mrf.mxu1 }
 0x73e   : > { %v3987_v62 = vadd.f32 %v5008_v8, %v3920_v60  ;;  %v3872_v54 = vadd.f32 %v9219_v37, %v3871_v9  ;;  %v4093_v8 = vsel %vm4044_vm13, %v4092_v30, %v8856_v21  ;;  %v4082_v60 = vrot.slane %v9110_v40, 4 }
 0x73f   : > { %v4095_v9 = vsel %vm4047_vm14, %v4094_v16, %v4093_v8  ;;  %v4081_v16 = vsel %vm4047_vm14, %v4080_v33, %v4079_v43  ;;  %v4162_v33 = vrot.slane %v9057_v28, 7 }
 0x740   : > { %v9228_v13 = vmax.f32 %v3987_v62, 0.0  ;;  %v3971_v32 = vadd.f32 %v4992_v10, %v3872_v54  ;;  %v4097_v5 = vsel %vm4050_vm15, %v4096_v35, %v4095_v9  ;;  %v4115_v10 = vsel %vm4047_vm14, %v4114_v63, %v4113_v15 }
 0x741   : > { %v4099_v21 = vsel %vm4053_vm9, %v4098_v47, %v4097_v5  ;;  %v4117_v30 = vsel %vm4050_vm15, %v4116_v57, %v4115_v10  ;;  %v4150_v63 = vrot.slane %v9110_v40, 6  ;;  %v9255_v47 = vsel %vm4044_vm13, %v4215_v19, %v8891_v59 }
 0x742   : > { %v9237_v6 = vmax.f32 %v3971_v32, 0.0  ;;  %v4100_v62 = vrot.slane %v9228_v13, 2  ;;  %v4083_v32 = vsel %vm4050_vm15, %v4082_v60, %v4081_v16  ;;  %v4119_v35 = vsel %vm4053_vm9, %v4118_v2, %v4117_v30 }
 0x743   : > { %v4085_v15 = vsel %vm4053_vm9, %v4084_v14, %v4083_v32  ;;  %v4182_v5 = vsel %vm4044_vm13, %v4181_v25, %v8895_v58  ;;  %v4149_v14 = vsel %vm4047_vm14, %v4148_v26, %v4147_v31  ;;  %v4152_v2 = vrot.slane %v9153_v12, 5 }
 0x744   : > { %v4101_v54 = vsel %vm4056_vm10, %v4100_v62, %v4099_v21  ;;  %v4120_v8 = vrot.slane %v9237_v6, 3  ;;  %v4086_v55 = vrot.slane %v9237_v6, 2  ;;  %v4164_v59 = vrot.slane %v9108_v22, 6 }
 0x745   : > { %4104 = vrot.lane.b32.xlu0 %v4101_v54, %s5207_s10  ;;  %v4128_v19 = vrot.slane %v9057_v28, 6  ;;  %v4130_v60 = vrot.slane %v9108_v22, 5  ;;  %v4055_v9 = vrot.slane %v9237_v6, 1  ;;  %v4070_v58 = vrot.slane %v9228_v13, 1 }
 0x746   : > { %v4121_v43 = vsel %vm4056_vm10, %v4120_v8, %v4119_v35  ;;  %v4087_v57 = vsel %vm4056_vm10, %v4086_v55, %v4085_v15  ;;  %v4154_v55 = vrot.slane %v9237_v6, 4  ;;  %v4151_v25 = vsel %vm4050_vm15, %v4150_v63, %v4149_v14  ;;  %v5009_v8 = vld [vmem:[%s5307_s9 + $0x189] sm:$0xff] }
 0x747   : > { %4136 = vrot.lane.b32.xlu1 %v4121_v43, %s5208_s11  ;;  %4102 = vrot.lane.b32.xlu2 %v4087_v57, %s5207_s10  ;;  %v4166_v62 = vrot.slane %v9151_v51, 5  ;;  %v4127_v26 = vsel %vm4044_vm13, %v4126_v36, %v8845_v42  ;;  %v4132_v31 = vrot.slane %v9151_v51, 4  ;;  %v4168_v10 = vrot.slane %v9228_v13, 4  ;;  %v4993_v14 = vld [vmem:[%s5307_s9 + $0xc9] sm:$0xff]  ;;  %s5216_s9 = smov 72  }
 0x748   : > { %v4134_v21 = vrot.slane %v9228_v13, 3  ;;  %v9281_v30 = vsel %vm4056_vm10, %v4055_v9, %v9158_v39  ;;  %v9285_v16 = vsel %vm4056_vm10, %v4070_v58, %v9161_v38  ;;  %v4153_v32 = vsel %vm4053_vm9, %v4152_v2, %v4151_v25 }
 0x749   : > { %v4163_v42 = vsel %vm4047_vm14, %v4162_v33, %v4161_v3  ;;  %v4129_v36 = vsel %vm4047_vm14, %v4128_v19, %v4127_v26  ;;  %v10264_v35 = vrot.slane %v9008_v11, 3  ;;  %v4155_v63 = vsel %vm4056_vm10, %v4154_v55, %v4153_v32 }
 0x74a   : > { %v4165_v38 = vsel %vm4050_vm15, %v4164_v59, %v4163_v42  ;;  %v4131_v43 = vsel %vm4050_vm15, %v4130_v60, %v4129_v36  ;;  %v4198_v2 = vrot.slane %v9108_v22, 7  ;;  %v10265_v60 = vrot.slane %v9010_v56, 1 }
 0x74b   : > { %v3922_v54 = vpop.f32.mrf.mxu3  ;;  %v4250_v15 = vsel %vm4044_vm13, %v10264_v35, %v8900_v50  ;;  %v4167_v3 = vsel %vm4053_vm9, %v4166_v62, %v4165_v38  ;;  %v4133_v33 = vsel %vm4053_vm9, %v4132_v31, %v4131_v43  ;;  %v4263_v50 = vrot.slane %v9010_v56, 3 }
 0x74c   : > { %v3923_v39 = vadd.f32 %v9219_v37, %v3922_v54  ;;  %v4169_v55 = vsel %vm4056_vm10, %v4168_v10, %v4167_v3  ;;  %v4135_v59 = vsel %vm4056_vm10, %v4134_v21, %v4133_v33  ;;  %v4196_v58 = vsel %vm4044_vm13, %v10265_v60, %v8871_v29 }
 0x74d   : > { %v3874_v57 = vpop.f32.mrf.mxu1  ;;  %4170 = vrot.lane.b32.xlu0 %v4155_v63, %s5209_s12  ;;  %v4200_v25 = vrot.slane %v9151_v51, 6  ;;  %v4217_v62 = vrot.slane %v9055_v17, 1  ;;  %v4229_v26 = vrot.slane %v9010_v56, 2  ;;  %v4202_v10 = vrot.slane %v9228_v13, 5 }
 0x74e   : > { %v3988_v19 = vadd.f32 %v5009_v8, %v3923_v39  ;;  %v3875_v9 = vadd.f32 %v9219_v37, %v3874_v57  ;;  %v4184_v21 = vrot.slane %v9110_v40, 7  ;;  %v4197_v54 = vsel %vm4047_vm14, %v9057_v28, %v4196_v58 }
 0x74f   : > { %4172 = vrot.lane.b32.xlu1 %v4169_v55, %s5209_s12  ;;  %4138 = vrot.lane.b32.xlu2 %v4135_v59, %s5208_s11  ;;  %v4220_v8 = vrot.slane %v9153_v12, 7  ;;  %v4183_v29 = vsel %vm4047_vm14, %v9055_v17, %v4182_v5  ;;  %v4186_v32 = vrot.slane %v9153_v12, 6  ;;  %v4199_v42 = vsel %vm4050_vm15, %v4198_v2, %v4197_v54  ;;  %s5217_s11 = smov 80   ;;  %s5218_s12 = smov 88  }
 0x750   : > { %v9317_v37 = vmax.f32 %v3988_v19, 0.0  ;;  %v3972_v31 = vadd.f32 %v4993_v14, %v3875_v9  ;;  %v4222_v36 = vrot.slane %v9237_v6, 6  ;;  %v4188_v35 = vrot.slane %v9237_v6, 5 }
 0x751   : > { %v4251_v39 = vrot.slane %v9055_v17, 2  ;;  %v4201_v38 = vsel %vm4053_vm9, %v4200_v25, %v4199_v42  ;;  %v4218_v43 = vsel %vm4047_vm14, %v4217_v62, %v9255_v47  ;;  %v4185_v3 = vsel %vm4050_vm15, %v4184_v21, %v4183_v29 }
 0x752   : > { %v9331_v63 = vmax.f32 %v3972_v31, 0.0  ;;  %v9339_v5 = vsel %vm4056_vm10, %v9317_v37, %v9184_v52  ;;  %v4203_v57 = vsel %vm4056_vm10, %v4202_v10, %v4201_v38  ;;  %v4219_v14 = vsel %vm4050_vm15, %v9110_v40, %v4218_v43 }
 0x753   : > { %v4524_v33 = vrot.slane %v9317_v37, 6  ;;  %v4221_v2 = vsel %vm4053_vm9, %v4220_v8, %v4219_v14  ;;  %v4187_v47 = vsel %vm4053_vm9, %v4186_v32, %v4185_v3  ;;  %v4253_v19 = vrot.slane %v9110_v40, 1 }
 0x754   : > { %v4264_v52 = vsel %vm4044_vm13, %v4263_v50, %v8904_v61  ;;  %v4223_v9 = vsel %vm4056_vm10, %v4222_v36, %v4221_v2  ;;  %v4189_v55 = vsel %vm4056_vm10, %v4188_v35, %v4187_v47  ;;  %v4265_v59 = vrot.slane %v9057_v28, 2 }
 0x755   : > { %4206 = vrot.lane.b32.xlu0 %v4203_v57, %s5210_s13  ;;  %v4231_v60 = vrot.slane %v9057_v28, 1  ;;  %v4252_v58 = vsel %vm4047_vm14, %v4251_v39, %v4250_v15  ;;  %v4256_v25 = vrot.slane %v9237_v6, 7  ;;  %v4267_v62 = vrot.slane %v9108_v22, 1 }
 0x756   : > { %v4544_v61 = vrot.slane %v9331_v63, 7  ;;  %v9364_v50 = vsel %vm4056_vm10, %v4524_v33, %v9175_v44  ;;  %v4510_v31 = vrot.slane %v9331_v63, 6  ;;  %v9370_v10 = vsel %vm4056_vm10, %v9331_v63, %v9195_v41 }
 0x757   : > { %4238 = vrot.lane.b32.xlu1 %v4223_v9, %s5211_s14  ;;  %4204 = vrot.lane.b32.xlu2 %v4189_v55, %s5210_s13  ;;  %v4558_v21 = vrot.slane %v9317_v37, 7  ;;  %v4254_v15 = vsel %vm4050_vm15, %v4253_v19, %v4252_v58  ;;  %v4230_v54 = vsel %vm4044_vm13, %v4229_v26, %v8908_v45  ;;  %v4234_v8 = vrot.slane %v9151_v51, 7  ;;  %s5219_s13 = smov 96  }
 0x758   : > { %v9379_v44 = vsel %vm4056_vm10, %v4544_v61, %v9179_v24  ;;  %v4270_v29 = vrot.slane %v9228_v13, 7  ;;  %v4236_v32 = vrot.slane %v9228_v13, 6  ;;  %v9385_v41 = vsel %vm4056_vm10, %v4510_v31, %v9192_v27 }
 0x759   : > { %v9389_v42 = vsel %vm4056_vm10, %v4558_v21, %v9189_v4  ;;  %v4255_v45 = vsel %vm4053_vm9, %v9153_v12, %v4254_v15  ;;  %v4266_v26 = vsel %vm4047_vm14, %v4265_v59, %v4264_v52  ;;  %v4232_v24 = vsel %vm4047_vm14, %v4231_v60, %v4230_v54 }
 0x75a   : > { %v4257_v36 = vsel %vm4056_vm10, %v4256_v25, %v4255_v45  ;;  %v4268_v35 = vsel %vm4050_vm15, %v4267_v62, %v4266_v26  ;;  %v4233_v39 = vsel %vm4050_vm15, %v9108_v22, %v4232_v24  ;;  %v4297_v27 = vrot.slane %v9010_v56, 4 }
 0x75b   : > { %v4269_v4 = vsel %vm4053_vm9, %v9151_v51, %v4268_v35  ;;  %v4235_v38 = vsel %vm4053_vm9, %v4234_v8, %v4233_v39  ;;  %v4299_v43 = vrot.slane %v9057_v28, 3  ;;  %v4301_v3 = vrot.slane %v9108_v22, 2 }
 0x75c   : > { %v4271_v57 = vsel %vm4056_vm10, %v4270_v29, %v4269_v4  ;;  %v4237_v14 = vsel %vm4056_vm10, %v4236_v32, %v4235_v38  ;;  %v4283_v33 = vrot.slane %v9008_v11, 4  ;;  %v4303_v56 = vrot.slane %v9151_v51, 1 }
 0x75d   : > { %4272 = vrot.lane.b32.xlu0 %v4257_v36, %s5212_s15  ;;  %v4285_v2 = vrot.slane %v9055_v17, 3  ;;  %v4298_v47 = vsel %vm4044_vm13, %v4297_v27, %v8912_v7  ;;  %v4336_v28 = vrot.slane %v9120_v46, 3  ;;  %v4287_v19 = vrot.slane %v9110_v40, 2 }
 0x75e   : > { %v4300_v52 = vsel %vm4047_vm14, %v4299_v43, %v4298_v47  ;;  %v4338_v22 = vrot.slane %v9170_v20, 2  ;;  %v4289_v11 = vrot.slane %v9153_v12, 1  ;;  %v4340_v55 = vrot.slane %v9331_v63, 1 }
 0x75f   : > { %4274 = vrot.lane.b32.xlu1 %v4271_v57, %s5212_s15  ;;  %4240 = vrot.lane.b32.xlu2 %v4237_v14, %s5211_s14  ;;  %v4302_v9 = vsel %vm4050_vm15, %v4301_v3, %v4300_v52  ;;  %v4284_v17 = vsel %vm4044_vm13, %v4283_v33, %v8922_v49  ;;  %v4337_v59 = vsel %vm4050_vm15, %v4336_v28, %v9085_v23  ;;  %v4370_v62 = vrot.slane %v9120_v46, 4  ;;  %v10266_v57 = vld [vmem:[#allocation152_spill] sm:$0xff]  ;;  %v10267_v52 = vld [vmem:[#allocation74_spill] sm:$0xff]  ;;  %s5220_s14 = smov 104   ;;  %s5221_s15 = smov 112  }
 0x760   : > { %v4304_v51 = vsel %vm4053_vm9, %v4303_v56, %v4302_v9  ;;  %v4286_v7 = vsel %vm4047_vm14, %v4285_v2, %v4284_v17  ;;  %v4339_v12 = vsel %vm4053_vm9, %v4338_v22, %v4337_v59  ;;  %v4372_v23 = vrot.slane %v9170_v20, 3  ;;  %v10269_v17 = vld [vmem:[#allocation45_spill] sm:$0xff] }
 0x761   : > { %v4305_v40 = vsel %vm4056_vm10, %v9228_v13, %v4304_v51  ;;  %v4288_v60 = vsel %vm4050_vm15, %v4287_v19, %v4286_v7  ;;  %v4341_v49 = vsel %vm4056_vm10, %v4340_v55, %v4339_v12  ;;  %v4374_v13 = vrot.slane %v9331_v63, 2 }
 0x762   : > { %v4290_v58 = vsel %vm4053_vm9, %v4289_v11, %v4288_v60  ;;  %v4386_v61 = vrot.slane %v9167_v53, 3  ;;  %v4352_v31 = vrot.slane %v9167_v53, 2  ;;  %v4371_v21 = vsel %vm4050_vm15, %v4370_v62, %v9088_v1 }
 0x763   : > { %v4291_v25 = vsel %vm4056_vm10, %v9237_v6, %v4290_v58  ;;  %v4388_v15 = vrot.slane %v9317_v37, 2  ;;  %v4354_v6 = vrot.slane %v9317_v37, 1  ;;  %v4373_v54 = vsel %vm4053_vm9, %v4372_v23, %v4371_v21 }
 0x764   : > { %v4375_v8 = vsel %vm4056_vm10, %v4374_v13, %v4373_v54  ;;  %v4387_v29 = vsel %vm4053_vm9, %v4386_v61, %v9124_v0  ;;  %v4353_v32 = vsel %vm4053_vm9, %v4352_v31, %v9127_v18  ;;  %v4420_v26 = vrot.slane %v9167_v53, 4 }
 0x765   : > { %4308 = vrot.lane.b32.xlu0 %v4305_v40, %s5213_s16  ;;  %v4389_v45 = vsel %vm4056_vm10, %v4388_v15, %v4387_v29  ;;  %v4355_v1 = vsel %vm4056_vm10, %v4354_v6, %v4353_v32  ;;  %v4422_v24 = vrot.slane %v9317_v37, 3  ;;  %v4438_v36 = vrot.slane %v9120_v46, 6 }
 0x766   : > { %v4404_v35 = vrot.slane %v9120_v46, 5  ;;  %v4440_v0 = vrot.slane %v9170_v20, 5  ;;  %v4406_v39 = vrot.slane %v9170_v20, 4  ;;  %v4442_v18 = vrot.slane %v9331_v63, 4 }
 0x767   : > { %4356 = vrot.lane.b32.xlu1 %v4341_v49, %s5214_s17  ;;  %4306 = vrot.lane.b32.xlu2 %v4291_v25, %s5213_s16  ;;  %v4408_v27 = vrot.slane %v9331_v63, 3  ;;  %v4421_v4 = vsel %vm4053_vm9, %v4420_v26, %v9130_v34  ;;  %v4439_v43 = vsel %vm4050_vm15, %v4438_v36, %v9094_v48  ;;  %v4472_v34 = vrot.slane %v9120_v46, 7  ;;  %s5222_s16 = smov 120  }
 0x768   : > { %v4423_v38 = vsel %vm4056_vm10, %v4422_v24, %v4421_v4  ;;  %v4405_v14 = vsel %vm4050_vm15, %v4404_v35, %v10266_v57  ;;  %v4441_v3 = vsel %vm4053_vm9, %v4440_v0, %v4439_v43  ;;  %v4474_v48 = vrot.slane %v9170_v20, 6  ;;  %v10268_v20 = vld [vmem:[#allocation167_spill] sm:$0xff] }
 0x769   : > { %v4407_v33 = vsel %vm4053_vm9, %v4406_v39, %v4405_v14  ;;  %v4443_v56 = vsel %vm4056_vm10, %v4442_v18, %v4441_v3  ;;  %v4476_v47 = vrot.slane %v9331_v63, 5  ;;  %v4488_v28 = vrot.slane %v9167_v53, 6 }
 0x76a   : > { %v4409_v2 = vsel %vm4056_vm10, %v4408_v27, %v4407_v33  ;;  %v4454_v19 = vrot.slane %v9167_v53, 5  ;;  %v4473_v22 = vsel %vm4050_vm15, %v4472_v34, %v10267_v52  ;;  %v4490_v11 = vrot.slane %v9317_v37, 5 }
 0x76b   : > { %v4456_v9 = vrot.slane %v9317_v37, 4  ;;  %v4475_v46 = vsel %vm4053_vm9, %v4474_v48, %v4473_v22  ;;  %v4489_v63 = vsel %vm4053_vm9, %v4488_v28, %v10268_v20 }
 0x76c   : > { %v4477_v55 = vsel %vm4056_vm10, %v4476_v47, %v4475_v46  ;;  %v4455_v51 = vsel %vm4053_vm9, %v4454_v19, %v10269_v17  ;;  %v4491_v53 = vsel %vm4056_vm10, %v4490_v11, %v4489_v63 }
 0x76d   : > { %4390 = vrot.lane.b32.xlu0 %v4375_v8, %s5216_s9  ;;  %v4457_v7 = vsel %vm4056_vm10, %v4456_v9, %v4455_v51 }
 0x76f   : > { %4392 = vrot.lane.b32.xlu1 %v4389_v45, %s5216_s9  ;;  %4358 = vrot.lane.b32.xlu2 %v4355_v1, %s5214_s17  ;;  %s215_s17 = sand.u32 1, %s5197_s19  }
 0x770   : > { %s4720_s23 = sshll.u32 %s215_s17, 4  ;;  %s4639_s9 = scalar_lea.sflag [#allocation4], %s215_s17 }
 0x771   : > { %s217_s7 = scalar_lea.vmem [#allocation3], %s4720_s23 }
 0x772   : > { %s4651_s8 = sshll.u32 %s217_s7, 4  ;;  %s4652_s8 = int_to_ptr.vmem [resolvable:$true] %s4651_s8 }
 0x775   : > { %4426 = vrot.lane.b32.xlu0 %v4423_v38, %s5217_s11 }
 0x777   : > { %4458 = vrot.lane.b32.xlu1 %v4443_v56, %s5218_s12  ;;  %4424 = vrot.lane.b32.xlu2 %v4409_v2, %s5217_s11  ;;  %s5157_s11 = sshra.s32 %s4654_s22, 4  ;;  %s5158_s11 = int_to_ptr.hbm [resolvable:$true] %s5157_s11 }
 0x778   : > { %p5164_p0 = scmp.lt.s32.totalorder %s5158_s11, %s9561_s5 }
 0x77d   : > { %4492 = vrot.lane.b32.xlu0 %v4477_v55, %s5219_s13 }
 0x77f   : > { %4494 = vrot.lane.b32.xlu1 %v4491_v53, %s5219_s13  ;;  %4460 = vrot.lane.b32.xlu2 %v4457_v7, %s5218_s12  ;;  %s5159_s12 = scalar_lea.hbm %s5158_s11, 16 }
 0x780   : > { %p5160_p11 = scmp.ne.s32.totalorder %s5158_s11, %s5159_s12 }
 0x782   : > { %p5161_p12 = pnand %p5160_p11, %p5292_p5 }
 0x784   : > { %p5162_p13 = pneg %p5161_p12 }
 0x785   : > { %4528 = vrot.lane.b32.xlu0 %v9364_v50, %s5220_s14 }
 0x787   : > { %4560 = vrot.lane.b32.xlu1 %v9379_v44, %s5221_s15  ;;  %4526 = vrot.lane.b32.xlu2 %v9385_v41, %s5220_s14 }
 0x78d   : > { %4594 = vrot.lane.b32.xlu0 %v9370_v10, %s5222_s16 }
 0x78f   : > { %4596 = vrot.lane.b32.xlu1 %v9339_v5, %s5222_s16  ;;  %4562 = vrot.lane.b32.xlu2 %v9389_v42, %s5221_s15  ;;  %s5163_s15 = scalar_lea.hbm %s9561_s5, 32 }
 0x790   : > { %p5165_p1 = scmp.lt.s32.totalorder %s5163_s15, %s5159_s12 }
 0x792   : > { %p5166_p2 = por %p5165_p1, %p5164_p0 }
 0x794   : > { %p5167_p3 = pnand %p5166_p2, %p5162_p13 }
 0x7a1   : > { %v4103_v37 = vpop.permute.xlu2 %4102 }
 0x7a2   : > { %v4600_v6 = vsel %vm223_vm0, %v9281_v30, %v4103_v37 }
 0x7a9   : > { %v4139_v40 = vpop.permute.xlu2 %4138 }
 0x7b1   : > { %v4205_v12 = vpop.permute.xlu2 %4204 }
 0x7b7   : > { %v4105_v59 = vpop.permute.xlu0 %4104 }
 0x7b8   : > { %v4601_v54 = vsel %vm223_vm0, %v9285_v16, %v4105_v59  ;;  %vm4618_vm0 = vcmask 654336  }
 0x7b9   : > { %v4137_v60 = vpop.permute.xlu1 %4136  ;;  %v4241_v50 = vpop.permute.xlu2 %4240  ;;  %v4603_v45 = vsel %vm1615_vm1, %v4601_v54, %v4139_v40 }
 0x7ba   : > { %v4602_v8 = vsel %vm1615_vm1, %v4600_v6, %v4137_v60  ;;  %vm4621_vm1 = vcmask 719872  }
 0x7bf   : > { %v4171_v58 = vpop.permute.xlu0 %4170 }
 0x7c0   : > { %v4604_v29 = vsel %vm1648_vm2, %v4602_v8, %v4171_v58 }
 0x7c1   : > { %v4173_v49 = vpop.permute.xlu1 %4172  ;;  %v4307_v44 = vpop.permute.xlu2 %4306  ;;  %v4606_v24 = vsel %vm1681_vm4, %v4604_v29, %v4205_v12 }
 0x7c2   : > { %v4605_v1 = vsel %vm1648_vm2, %v4603_v45, %v4173_v49  ;;  %vm4624_vm2 = vcmask 785408  }
 0x7c7   : > { %v4207_v25 = vpop.permute.xlu0 %4206 }
 0x7c8   : > { %v4607_v26 = vsel %vm1681_vm4, %v4605_v1, %v4207_v25  ;;  %vm4630_vm4 = vcmask 916480  }
 0x7c9   : > { %v4239_v62 = vpop.permute.xlu1 %4238  ;;  %v4359_v61 = vpop.permute.xlu2 %4358  ;;  %v4609_v0 = vsel %vm1714_vm3, %v4607_v26, %v4241_v50 }
 0x7ca   : > { %v4608_v30 = vsel %vm1714_vm3, %v4606_v24, %v4239_v62  ;;  %vm4627_vm3 = vcmask 850944  }
 0x7cf   : > { %v4273_v23 = vpop.permute.xlu0 %4272 }
 0x7d0   : > { %v4610_v16 = vsel %vm1747_vm5, %v4608_v30, %v4273_v23 }
 0x7d1   : > { %v4275_v41 = vpop.permute.xlu1 %4274  ;;  %v4425_v21 = vpop.permute.xlu2 %4424  ;;  %v4612_v27 = vsel %vm1780_vm7, %v4610_v16, %v4307_v44 }
 0x7d2   : > { %v4611_v39 = vsel %vm1747_vm5, %v4609_v0, %v4275_v41  ;;  %vm4633_vm5 = vcmask 982016  }
 0x7d7   : > { %v4309_v13 = vpop.permute.xlu0 %4308 }
 0x7d8   : > { %v4613_v18 = vsel %vm1780_vm7, %v4611_v39, %v4309_v13 }
 0x7d9   : > { %v4357_v10 = vpop.permute.xlu1 %4356  ;;  %v4461_v32 = vpop.permute.xlu2 %4460  ;;  %v4615_v57 = vsel %vm1813_vm6, %v4613_v18, %v4359_v61 }
 0x7da   : > { %v4614_v4 = vsel %vm1813_vm6, %v4612_v27, %v4357_v10 }
 0x7df   : > { %v4391_v31 = vpop.permute.xlu0 %4390 }
 0x7e0   : > { %v4616_v38 = vsel %vm1859_vm8, %v4614_v4, %v4391_v31 }
 0x7e1   : > { %v4393_v5 = vpop.permute.xlu1 %4392  ;;  %v4527_v43 = vpop.permute.xlu2 %4526  ;;  %v4619_v56 = vsel %vm4618_vm0, %v4616_v38, %v4425_v21 }
 0x7e2   : > { %v4617_v3 = vsel %vm1859_vm8, %v4615_v57, %v4393_v5 }
 0x7e7   : > { %v4427_v42 = vpop.permute.xlu0 %4426 }
 0x7e8   : > { %v4620_v33 = vsel %vm4618_vm0, %v4617_v3, %v4427_v42 }
 0x7e9   : > { %v4459_v15 = vpop.permute.xlu1 %4458  ;;  %v4623_v47 = vsel %vm4621_vm1, %v4620_v33, %v4461_v32  ;;  %v4563_v9 = vpop.permute.xlu2 %4562 }
 0x7ea   : > { %v4622_v34 = vsel %vm4621_vm1, %v4619_v56, %v4459_v15 }
 0x7ef   : > { %v4493_v36 = vpop.permute.xlu0 %4492 }
 0x7f0   : > { %v4625_v48 = vsel %vm4624_vm2, %v4622_v34, %v4493_v36 }
 0x7f1   : > { %v4495_v35 = vpop.permute.xlu1 %4494  ;;  %v4628_v52 = vsel %vm4627_vm3, %v4625_v48, %v4527_v43 }
 0x7f2   : > { %v4626_v28 = vsel %vm4624_vm2, %v4623_v47, %v4495_v35 }
 0x7f7   : > { %v4529_v14 = vpop.permute.xlu0 %4528 }
 0x7f8   : > { %v4629_v19 = vsel %vm4627_vm3, %v4626_v28, %v4529_v14 }
 0x7f9   : > { %v4561_v2 = vpop.permute.xlu1 %4560  ;;  %v4632_v20 = vsel %vm4630_vm4, %v4629_v19, %v4563_v9 }
 0x7fa   : > { %v4631_v22 = vsel %vm4630_vm4, %v4628_v52, %v4561_v2 }
 0x7ff   : > { %v4595_v11 = vpop.permute.xlu0 %4594 }
 0x800   : > { %v4634_v46 = vsel %vm4633_vm5, %v4631_v22, %v4595_v11 }
 0x801   : > { %4636 = vst [vmem:[%s217_s7] sm:$0xff] %v4634_v46  ;;  %v4597_v55 = vpop.permute.xlu1 %4596 }
 0x802   : > { %v4635_v63 = vsel %vm4633_vm5, %v4632_v20, %v4597_v55 }
 0x803   : > { %4637 = vst [vmem:[%s217_s7 + $0x8] sm:$0xff] %v4635_v63 }
 0x804   : > { %5170 = shalt.err (!%p5167_p3)
}
 0x805   : > { %s5223_s17 = smov 128  }
 0x806   : > { %5035 = dma.vmem_to_hbm [thread:$0]  (%p5292_p5), %s4652_s8, 256, %s4654_s22, %s4639_s9, %s5223_s17, %s5223_s17, %s5207_s10  }
 0x807 PF: > { %p5041_p4 = scmp.ge.s32.totalorder %s5205_s21, 2  ;;  %s4668_s25 = sand.u32 1, %s5193_s18  }
 0x808   : > { %s4669_s26 = scalar_lea.sflag [#allocation4], %s4668_s25 }
 0x809   : > { %p5038_p7 = pnand %p5041_p4, %p5296_p6 }
 0x80b   : > { %p5039_p8 = pneg %p5038_p7 }
 0x80d   : > { %5188 = dma.done.wait (%p5039_p8), %s4669_s26, 256  }
 0x80e   : > { %5190 = vsyncadd (%p5039_p8), %s4669_s26, 4294967040  ;;  %p15_p9 = scmp.ge.s32.totalorder %s5279_s24, 4   ;;  %s10270_s18 = smov %s5197_s19 }
 0x80f   : > { %s10271_s19 = smov %s5201_s20  ;;  %s10272_s20 = smov %s5290_s27 }
 0x810   : > { %s10273_s21 = smov %s5279_s24  ;;  %17 = sbr.rel (!%p15_p9) target bundleno = 3 (0x3), region = 80 }
 0x815   :  { %4675 = vsyncpa [#allocation4], 1 }
 0x816   :  { %4677 = vsyncpa [#allocation4 + $0x1], 1 }

</bundles_post_ra>
